<compile_context>
chip_gen: v7x
topology: tpu7x:2x2x1
jax: 0.10.0
libtpu: 0.0.40
codegen_flags: <defaults>
</compile_context>

<pallas_src>
import jax
import jax.numpy as jnp
import numpy as np
from jax import lax
from jax.experimental import pallas as pl
from jax.experimental.pallas import tpu as pltpu


# ----------------------------- in-kernel math helpers -------------------------

def _erf(x):
    # Abramowitz & Stegun 7.1.26 rational approximation, |err| < 1.5e-7.
    a1, a2, a3, a4, a5 = (0.254829592, -0.284496736, 1.421413741,
                          -1.453152027, 1.061405429)
    p = 0.3275911
    s = jnp.where(x >= 0.0, 1.0, -1.0)
    z = jnp.abs(x)
    t = 1.0 / (1.0 + p * z)
    poly = ((((a5 * t + a4) * t + a3) * t + a2) * t + a1) * t
    return s * (1.0 - poly * jnp.exp(-z * z))


def _gelu_exact(x):
    # matches F.gelu default (erf-based) to ~1e-7
    return 0.5 * x * (1.0 + _erf(x * 0.7071067811865476))


def _softplus(x):
    return jnp.maximum(x, 0.0) + jnp.log(1.0 + jnp.exp(-jnp.abs(x)))


def _sigmoid(x):
    # divide goes to the EUP slot (approx reciprocal) instead of the VALU.
    return pl.reciprocal(1.0 + jnp.exp(-x), approx=True)


# ----------------------------- fused kernel ------------------------------------

def _make_yaad_kernel(S, d_model, d_head, d_mlp, low_rank, chunk, mxu_dtype):
    NC = S // chunk
    f32 = jnp.float32

    def mm(a, b, dims=None):
        # MXU matmul with optional bf16 operand cast; accumulate in f32.
        a = a.astype(mxu_dtype)
        b = b.astype(mxu_dtype)
        if dims is None:
            return jnp.dot(a, b, preferred_element_type=f32)
        return lax.dot_general(a, b, dims, preferred_element_type=f32)

    def kernel(x_ref, wpackT_ref, d2T_ref, ea1T_ref, ea2T_ref,
               convw_ref, convb_ref, kg_ref, kb_ref, woutT_ref,
               w1T0_ref, b10_ref, w20_ref, b20_ref,
               out_ref,
               k_s, v_s, delta_s, mem_s):
        # ------------- per-token preprocessing (whole sequence in VMEM) -------
        x = x_ref[0]                                           # (S, d_model)

        # one lane-dense packed projection: x @ [wk^T | wv^T | wgate^T | d_a^T]
        h = mm(x, wpackT_ref[...])                             # (S, 2dh+dm+lr)
        kv = h[:, :2 * d_head]                                 # packed [k | v]
        gate_pre = h[:, 2 * d_head:2 * d_head + d_model]       # (S, d_model)
        lr_d = h[:, 2 * d_head + d_model:]                     # (S, low_rank)

        # depthwise causal conv (kernel=4, left pad 3) on packed [k|v] using
        # XLU sublane rolls + mask (no concatenate / unaligned slices).
        row = lax.broadcasted_iota(jnp.int32, kv.shape, 0)
        conv = convb_ref[...] + convw_ref[3:4, :] * kv          # tap j=3, shift 0
        for j in range(3):                                      # taps 0,1,2 -> shift 3,2,1
            d = 3 - j
            shifted = pltpu.roll(kv, shift=d, axis=0)
            shifted = jnp.where(row >= d, shifted, 0.0)
            conv = conv + convw_ref[j:j + 1, :] * shifted
        k = conv[:, :d_head]
        v = conv[:, d_head:]

        # LayerNorm(k) over the feature axis (eps=1e-5, biased variance).
        mu = jnp.mean(k, axis=-1, keepdims=True)
        var = jnp.mean((k - mu) ** 2, axis=-1, keepdims=True)
        k = (k - mu) * lax.rsqrt(var + 1e-5) * kg_ref[...] + kb_ref[...]

        delta = _softplus(mm(lr_d, d2T_ref[...]))               # (S, d_head)
        gate = _sigmoid(gate_pre)                               # (S, d_model)

        k_s[...] = k
        v_s[...] = v
        delta_s[...] = delta

        # ------------- chunked memory-MLP recurrence (in-kernel loop) ---------
        init = (w1T0_ref[...],                                  # w1^T (dh, d_mlp)
                b10_ref[...],                                   # b1   (1, d_mlp)
                w20_ref[...],                                   # w2   (dh, d_mlp)
                b20_ref[...])                                   # b2   (1, dh)

        def chunk_body(c, carry):
            w1T, b1, w2, b2 = carry
            cs = pl.multiple_of(c * chunk, chunk)

            kc = k_s[pl.ds(cs, chunk), :]                       # (C, dh)
            vc = v_s[pl.ds(cs, chunk), :]
            dc = delta_s[pl.ds(cs, chunk), :]

            # memory MLP forward (state BEFORE this chunk's update)
            inter = mm(kc, w1T) + b1                            # (C, d_mlp)
            act = _gelu_exact(inter)
            mem = mm(act, w2, (((1,), (1,)), ((), ()))) + b2    # (C, dh)
            mem_s[pl.ds(cs, chunk), :] = mem

            # eta / alpha only at the chunk's last row (all that is consumed)
            xl = x_ref[0, pl.ds(cs + chunk - 1, 1), :]          # (1, d_model)
            ea = mm(mm(xl, ea1T_ref[...]), ea2T_ref[...])       # (1, 2*dh)
            eta_last = _softplus(ea[:, :d_head])                # (1, dh)
            alpha_last = _sigmoid(ea[:, d_head:])               # (1, dh)
            alpha_w = jnp.mean(alpha_last)                      # scalar
            eta_w = jnp.mean(eta_last)

            # fast-weight update (training branch); all arithmetic in f32
            error = mem - vc
            err_norm = jnp.sqrt(jnp.sum(error * error, axis=-1, keepdims=True))
            inv_norm = pl.reciprocal(err_norm + 1e-9, approx=True)
            grad_pred = jnp.where(err_norm > dc, dc * (error * inv_norm), error)

            gm = jnp.mean(grad_pred, axis=0, keepdims=True)     # (1, dh)
            am = jnp.mean(act, axis=0, keepdims=True)           # (1, d_mlp)
            # rank-1 outer(gm, am) via a K=1 matmul (no ones-vector dot)
            outer = lax.dot_general(gm, am, (((0,), (0,)), ((), ())),
                                    preferred_element_type=f32)  # (dh, d_mlp)
            # mean over chunk commutes with the matmul: mean(grad) @ w2_old
            b1_upd = jnp.dot(gm, w2, preferred_element_type=f32)  # (1, d_mlp)

            w1T_n = alpha_w * w1T - eta_w * outer
            w2_n = alpha_w * w2 - eta_w * outer
            b2_n = alpha_last * b2 - eta_last * gm
            b1_n = alpha_w * b1 - eta_w * b1_upd
            return (w1T_n, b1_n, w2_n, b2_n)

        lax.fori_loop(0, NC, chunk_body, init)

        # ------------- fused out_proj + output gating (full sequence) ---------
        y = mm(mem_s[...], woutT_ref[...])                      # (S, d_model)
        out_ref[0] = (y * gate).astype(out_ref.dtype)

    return kernel


# ----------------------------- wrapper ------------------------------------------

def yaad_forward(x, p, chunk_size=64, mxu_dtype=jnp.float32):
    """Fused YAADLayer forward (training mode: fast-weight updates applied).

    mxu_dtype: operand dtype for MXU matmuls. jnp.bfloat16 is recommended on
    v6e/v7x (fast-weight state & update math stay f32); keep f32 on v5e.
    """
    B, S, d_model = x.shape
    d_head = p["wk"].shape[0]
    d_mlp = p["w1"].shape[0]
    low_rank = p["eta_a"].shape[0]
    f32 = jnp.float32

    # TODO(synk): partial final chunk (S % chunk_size != 0) not handled.
    assert S % chunk_size == 0

    # ---- host-side weight packing (PyTorch Linear is (out,in): pre-transpose)
    wkT, wvT, wgT = p["wk"].T, p["wv"].T, p["wgate"].T
    d1T, d2T = p["delta_a"].T, p["delta_b"].T
    e1T, e2T = p["eta_a"].T, p["eta_b"].T
    a1T, a2T = p["alpha_a"].T, p["alpha_b"].T

    # one lane-dense projection matrix: [wk^T | wv^T | wgate^T | delta_a^T]
    wpackT = jnp.concatenate([wkT, wvT, wgT, d1T], axis=1)       # (dm, 2dh+dm+lr)
    # eta/alpha (chunk-final rows only): packed stage-1 + block-diag stage-2
    ea1T = jnp.concatenate([e1T, a1T], axis=1)                   # (dm, 2*lr)
    ea2T = jnp.zeros((2 * low_rank, 2 * d_head), f32)
    ea2T = ea2T.at[:low_rank, :d_head].set(e2T)
    ea2T = ea2T.at[low_rank:, d_head:].set(a2T)

    convw = p["conv_w"][:, 0, :].T                               # (4, dh)
    convw_kv = jnp.concatenate([convw, convw], axis=1)           # (4, 2*dh)
    convb_kv = jnp.concatenate([p["conv_b"], p["conv_b"]])[None, :]
    kg, kb = p["k_norm_g"][None, :], p["k_norm_b"][None, :]
    woutT = p["wout"].T                                          # (dh, dm)
    w1T0 = p["w1"].T                                             # (dh, d_mlp)
    w20 = p["w2"]                                                # (dh, d_mlp)
    b10 = p["b1"][None, :]
    b20 = p["b2"][None, :]

    if mxu_dtype != f32:
        # halve HBM traffic of the matmul-only operands (state stays f32)
        x = x.astype(mxu_dtype)
        wpackT = wpackT.astype(mxu_dtype)
        d2T = d2T.astype(mxu_dtype)
        ea1T = ea1T.astype(mxu_dtype)
        ea2T = ea2T.astype(mxu_dtype)
        woutT = woutT.astype(mxu_dtype)

    weights = (wpackT, d2T, ea1T, ea2T, convw_kv, convb_kv, kg, kb,
               woutT, w1T0, b10, w20, b20)

    kernel = _make_yaad_kernel(S, d_model, d_head, d_mlp, low_rank,
                               chunk_size, mxu_dtype)

    seq_spec = lambda F_: pl.BlockSpec((1, S, F_), lambda b: (b, 0, 0))
    w_spec = lambda a: pl.BlockSpec(a.shape, lambda b: (0, 0))

    # Explicit VMEM budget (v7x only has 64 MiB physical; default scoped 32 MiB).
    # TODO(synk): tile the seq axis (with a 3-row conv halo) when S is large
    # enough that the per-batch (S,F) blocks + scratch overflow this budget.
    blk = 2 * S * d_model * x.dtype.itemsize + 2 * S * d_model * 4
    wts = 2 * sum(int(np.prod(a.shape)) * a.dtype.itemsize for a in weights)
    scr = 4 * S * d_head * 4
    vmem_limit = int(min(max(blk + wts + scr + (4 << 20), 16 << 20), 64 << 20))

    out = pl.pallas_call(
        kernel,
        grid=(B,),
        in_specs=[seq_spec(d_model)] + [w_spec(a) for a in weights],
        out_specs=seq_spec(d_model),
        out_shape=jax.ShapeDtypeStruct((B, S, d_model), f32),
        scratch_shapes=[pltpu.VMEM((S, d_head), f32),   # k (post conv+norm)
                        pltpu.VMEM((S, d_head), f32),   # v (post conv)
                        pltpu.VMEM((S, d_head), f32),   # delta
                        pltpu.VMEM((S, d_head), f32)],  # memory-MLP outputs
        compiler_params=pltpu.CompilerParams(
            dimension_semantics=("parallel",),          # batches split across TCs
            vmem_limit_bytes=vmem_limit),
    )(x, *weights)
    return out


# ----------------------------- params & pure-JAX reference ----------------------

def init_params(key, d_model, d_head, d_state, low_rank_dim=64, expansion_factor=2):
    d_mlp = d_state * expansion_factor
    ks = jax.random.split(key, 18)
    n = lambda k, shape, s=0.08: (s * jax.random.normal(k, shape)).astype(jnp.float32)
    return dict(
        wk=n(ks[0], (d_head, d_model)),
        wv=n(ks[1], (d_head, d_model)),
        eta_a=n(ks[2], (low_rank_dim, d_model)),
        eta_b=n(ks[3], (d_head, low_rank_dim)),
        delta_a=n(ks[4], (low_rank_dim, d_model)),
        delta_b=n(ks[5], (d_head, low_rank_dim)),
        alpha_a=n(ks[6], (low_rank_dim, d_model)),
        alpha_b=n(ks[7], (d_head, low_rank_dim)),
        conv_w=n(ks[8], (d_head, 1, 4), 0.3),
        conv_b=n(ks[9], (d_head,), 0.1),
        k_norm_g=1.0 + n(ks[10], (d_head,), 0.1),
        k_norm_b=n(ks[11], (d_head,), 0.1),
        wout=n(ks[12], (d_model, d_head)),
        wgate=n(ks[13], (d_model, d_model)),
        w1=n(ks[14], (d_mlp, d_head), 0.2),
        b1=n(ks[15], (d_mlp,), 0.1),
        w2=n(ks[16], (d_head, d_mlp), 0.2),
        b2=n(ks[17], (d_head,), 0.1),
    )


def reference_forward(x, p, chunk_size=64):
    """Pure-JAX mirror of the PyTorch forward (training mode) for verification."""
    B, S, _ = x.shape
    erf = jax.scipy.special.erf
    gelu = lambda t: 0.5 * t * (1.0 + erf(t / jnp.sqrt(2.0)))

    k = x @ p["wk"].T
    v = x @ p["wv"].T
    eta = jax.nn.softplus((x @ p["eta_a"].T) @ p["eta_b"].T)
    delta = jax.nn.softplus((x @ p["delta_a"].T) @ p["delta_b"].T)
    alpha = jax.nn.sigmoid((x @ p["alpha_a"].T) @ p["alpha_b"].T)

    cw = p["conv_w"][:, 0, :]                         # (d_head, 4)

    def conv(t):
        tp = jnp.pad(t, ((0, 0), (3, 0), (0, 0)))
        out = p["conv_b"][None, None, :]
        for j in range(4):
            out = out + cw[:, j][None, None, :] * tp[:, j:j + S, :]
        return out

    k, v = conv(k), conv(v)
    mu = k.mean(-1, keepdims=True)
    var = ((k - mu) ** 2).mean(-1, keepdims=True)
    k = (k - mu) / jnp.sqrt(var + 1e-5) * p["k_norm_g"] + p["k_norm_b"]

    w1 = jnp.broadcast_to(p["w1"], (B,) + p["w1"].shape)
    b1 = jnp.broadcast_to(p["b1"], (B,) + p["b1"].shape)
    w2 = jnp.broadcast_to(p["w2"], (B,) + p["w2"].shape)
    b2 = jnp.broadcast_to(p["b2"], (B,) + p["b2"].shape)

    outs = []
    for i in range(S // chunk_size):
        s0, s1 = i * chunk_size, (i + 1) * chunk_size
        kc, vc = k[:, s0:s1], v[:, s0:s1]
        ec, dc, ac = eta[:, s0:s1], delta[:, s0:s1], alpha[:, s0:s1]
        inter = jnp.einsum("bcd,bmd->bcm", kc, w1) + b1[:, None, :]
        act = gelu(inter)
        mem = jnp.einsum("bcm,bdm->bcd", act, w2) + b2[:, None, :]
        outs.append(mem)

        err = mem - vc
        en = jnp.linalg.norm(err, axis=-1, keepdims=True)
        gl1 = dc * (err / (en + 1e-9))
        gp = jnp.where(en > dc, gl1, err)
        aw = ac[:, -1, :].mean(-1)[:, None, None]
        ew = ec[:, -1, :].mean(-1)[:, None, None]
        us = gp.mean(1, keepdims=True)
        am = act.mean(1, keepdims=True)
        w1n = aw * w1 - ew * jnp.einsum("bxm,bxd->bmd", am, us)
        w2n = aw * w2 - ew * jnp.einsum("bxd,bxm->bdm", us, am)
        ab, eb = ac[:, -1, :], ec[:, -1, :]
        b2u = gp.mean(1)
        b1u = jnp.einsum("bcd,bdm->bcm", gp, w2).mean(1)
        b2n = ab * b2 - eb * b2u
        b1n = ab.mean(-1, keepdims=True) * b1 - eb.mean(-1, keepdims=True) * b1u
        w1, b1, w2, b2 = w1n, b1n, w2n, b2n

    y = jnp.concatenate(outs, axis=1)
    gated_y = y @ p["wout"].T
    gate = jax.nn.sigmoid(x @ p["wgate"].T)
    return gated_y * gate


# ----------------------------- main ----------------------------------------------

if __name__ == "__main__":
    B, S = 2, 128
    d_model, d_head, d_state, low_rank = 32, 32, 16, 16
    chunk_size = 64

    key = jax.random.PRNGKey(0)
    kx, kp = jax.random.split(key)
    params = init_params(kp, d_model, d_head, d_state, low_rank_dim=low_rank)
    x = jax.random.normal(kx, (B, S, d_model), dtype=jnp.float32)

    fwd = jax.jit(yaad_forward, static_argnames=("chunk_size", "mxu_dtype"))
    out = fwd(x, params, chunk_size=chunk_size)   # f32 MXU path (v5e-safe);
    out = jax.block_until_ready(out)              # pass mxu_dtype=jnp.bfloat16 on v6e/v7x

    ref = reference_forward(x, params, chunk_size=chunk_size)
    np.testing.assert_allclose(np.asarray(out), np.asarray(ref),
                               rtol=2e-2, atol=2e-3)

    print("KERNEL_OK")
</pallas_src>

<mosaic_0001>
module attributes {stable_mosaic.version = 11 : i64} {
  func.func @kernel(%arg0: i32, %arg1: memref<1x128x32xf32, #tpu.memory_space<vmem>>, %arg2: memref<32x112xf32, #tpu.memory_space<vmem>>, %arg3: memref<16x32xf32, #tpu.memory_space<vmem>>, %arg4: memref<32x32xf32, #tpu.memory_space<vmem>>, %arg5: memref<32x64xf32, #tpu.memory_space<vmem>>, %arg6: memref<4x64xf32, #tpu.memory_space<vmem>>, %arg7: memref<1x64xf32, #tpu.memory_space<vmem>>, %arg8: memref<1x32xf32, #tpu.memory_space<vmem>>, %arg9: memref<1x32xf32, #tpu.memory_space<vmem>>, %arg10: memref<32x32xf32, #tpu.memory_space<vmem>>, %arg11: memref<32x32xf32, #tpu.memory_space<vmem>>, %arg12: memref<1x32xf32, #tpu.memory_space<vmem>>, %arg13: memref<32x32xf32, #tpu.memory_space<vmem>>, %arg14: memref<1x32xf32, #tpu.memory_space<vmem>>, %arg15: memref<1x128x32xf32, #tpu.memory_space<vmem>>, %arg16: memref<128x32xf32, #tpu.memory_space<vmem>>, %arg17: memref<128x32xf32, #tpu.memory_space<vmem>>, %arg18: memref<128x32xf32, #tpu.memory_space<vmem>>, %arg19: memref<128x32xf32, #tpu.memory_space<vmem>>) attributes {dimension_semantics = [#tpu.dimension_semantics<parallel>], iteration_bounds = array<i64: 2>, scalar_prefetch = 0 : i64, scratch_operands = 4 : i64, tpu.core_type = #tpu.core_type<tc>, window_params = [{transform_indices = @transform_0, window_bounds = array<i64: 1, 128, 32>}, {pipeline_mode = #tpu.pipeline_mode<synchronous>, transform_indices = @transform_1, window_bounds = array<i64: 32, 112>}, {pipeline_mode = #tpu.pipeline_mode<synchronous>, transform_indices = @transform_2, window_bounds = array<i64: 16, 32>}, {pipeline_mode = #tpu.pipeline_mode<synchronous>, transform_indices = @transform_3, window_bounds = array<i64: 32, 32>}, {pipeline_mode = #tpu.pipeline_mode<synchronous>, transform_indices = @transform_4, window_bounds = array<i64: 32, 64>}, {pipeline_mode = #tpu.pipeline_mode<synchronous>, transform_indices = @transform_5, window_bounds = array<i64: 4, 64>}, {pipeline_mode = #tpu.pipeline_mode<synchronous>, transform_indices = @transform_6, window_bounds = array<i64: 1, 64>}, {pipeline_mode = #tpu.pipeline_mode<synchronous>, transform_indices = @transform_7, window_bounds = array<i64: 1, 32>}, {pipeline_mode = #tpu.pipeline_mode<synchronous>, transform_indices = @transform_8, window_bounds = array<i64: 1, 32>}, {pipeline_mode = #tpu.pipeline_mode<synchronous>, transform_indices = @transform_9, window_bounds = array<i64: 32, 32>}, {pipeline_mode = #tpu.pipeline_mode<synchronous>, transform_indices = @transform_10, window_bounds = array<i64: 32, 32>}, {pipeline_mode = #tpu.pipeline_mode<synchronous>, transform_indices = @transform_11, window_bounds = array<i64: 1, 32>}, {pipeline_mode = #tpu.pipeline_mode<synchronous>, transform_indices = @transform_12, window_bounds = array<i64: 32, 32>}, {pipeline_mode = #tpu.pipeline_mode<synchronous>, transform_indices = @transform_13, window_bounds = array<i64: 1, 32>}, {transform_indices = @transform_14, window_bounds = array<i64: 1, 128, 32>}]} {
    %c0 = arith.constant 0 : index
    %c0_0 = arith.constant 0 : index
    %c0_1 = arith.constant 0 : index
    %0 = vector.load %arg1[%c0, %c0_0, %c0_1] : memref<1x128x32xf32, #tpu.memory_space<vmem>>, vector<1x128x32xf32>
    %1 = vector.shape_cast %0 : vector<1x128x32xf32> to vector<128x32xf32>
    %c0_2 = arith.constant 0 : index
    %c0_3 = arith.constant 0 : index
    %2 = vector.load %arg2[%c0_2, %c0_3] : memref<32x112xf32, #tpu.memory_space<vmem>>, vector<32x112xf32>
    %cst = arith.constant dense<0.000000e+00> : vector<128x112xf32>
    %3 = tpu.matmul %1, %2, %cst {dimension_numbers = #tpu.dot_dimension_numbers<[1], [0], [0], [1], [0, 0, 1, 1], [], []>} : vector<128x32xf32>, vector<32x112xf32>, vector<128x112xf32> -> vector<128x112xf32>
    %4 = vector.extract_strided_slice %3 {offsets = [0, 0], sizes = [128, 64], strides = [1, 1]} : vector<128x112xf32> to vector<128x64xf32>
    %5 = vector.extract_strided_slice %3 {offsets = [0, 64], sizes = [128, 32], strides = [1, 1]} : vector<128x112xf32> to vector<128x32xf32>
    %6 = vector.extract_strided_slice %3 {offsets = [0, 96], sizes = [128, 16], strides = [1, 1]} : vector<128x112xf32> to vector<128x16xf32>
    %7 = tpu.iota {dimensions = array<i32: 0>} : vector<128x64xi32>
    %c0_4 = arith.constant 0 : index
    %c0_5 = arith.constant 0 : index
    %8 = vector.load %arg7[%c0_4, %c0_5] : memref<1x64xf32, #tpu.memory_space<vmem>>, vector<1x64xf32>
    %c3 = arith.constant 3 : index
    %c0_6 = arith.constant 0 : index
    %9 = vector.load %arg6[%c3, %c0_6] : memref<4x64xf32, #tpu.memory_space<vmem>>, vector<1x64xf32>
    %10 = vector.broadcast %9 : vector<1x64xf32> to vector<128x64xf32>
    %11 = arith.mulf %10, %4 : vector<128x64xf32>
    %12 = vector.broadcast %8 : vector<1x64xf32> to vector<128x64xf32>
    %13 = arith.addf %12, %11 : vector<128x64xf32>
    %c3_i32 = arith.constant 3 : i32
    %14 = tpu.dynamic_rotate %4 by %c3_i32 dim 0 : vector<128x64xf32>, i32 -> vector<128x64xf32>
    %c3_i32_7 = arith.constant 3 : i32
    %15 = vector.broadcast %c3_i32_7 : i32 to vector<128x64xi32>
    %16 = arith.cmpi sge, %7, %15 : vector<128x64xi32>
    %cst_8 = arith.constant 0.000000e+00 : f32
    %17 = vector.broadcast %cst_8 : f32 to vector<128x64xf32>
    %18 = arith.select %16, %14, %17 : vector<128x64xi1>, vector<128x64xf32>
    %c0_9 = arith.constant 0 : index
    %c0_10 = arith.constant 0 : index
    %19 = vector.load %arg6[%c0_9, %c0_10] : memref<4x64xf32, #tpu.memory_space<vmem>>, vector<1x64xf32>
    %20 = vector.broadcast %19 : vector<1x64xf32> to vector<128x64xf32>
    %21 = arith.mulf %20, %18 : vector<128x64xf32>
    %22 = arith.addf %13, %21 : vector<128x64xf32>
    %c2_i32 = arith.constant 2 : i32
    %23 = tpu.dynamic_rotate %4 by %c2_i32 dim 0 : vector<128x64xf32>, i32 -> vector<128x64xf32>
    %c2_i32_11 = arith.constant 2 : i32
    %24 = vector.broadcast %c2_i32_11 : i32 to vector<128x64xi32>
    %25 = arith.cmpi sge, %7, %24 : vector<128x64xi32>
    %cst_12 = arith.constant 0.000000e+00 : f32
    %26 = vector.broadcast %cst_12 : f32 to vector<128x64xf32>
    %27 = arith.select %25, %23, %26 : vector<128x64xi1>, vector<128x64xf32>
    %c1 = arith.constant 1 : index
    %c0_13 = arith.constant 0 : index
    %28 = vector.load %arg6[%c1, %c0_13] : memref<4x64xf32, #tpu.memory_space<vmem>>, vector<1x64xf32>
    %29 = vector.broadcast %28 : vector<1x64xf32> to vector<128x64xf32>
    %30 = arith.mulf %29, %27 : vector<128x64xf32>
    %31 = arith.addf %22, %30 : vector<128x64xf32>
    %c1_i32 = arith.constant 1 : i32
    %32 = tpu.dynamic_rotate %4 by %c1_i32 dim 0 : vector<128x64xf32>, i32 -> vector<128x64xf32>
    %c1_i32_14 = arith.constant 1 : i32
    %33 = vector.broadcast %c1_i32_14 : i32 to vector<128x64xi32>
    %34 = arith.cmpi sge, %7, %33 : vector<128x64xi32>
    %cst_15 = arith.constant 0.000000e+00 : f32
    %35 = vector.broadcast %cst_15 : f32 to vector<128x64xf32>
    %36 = arith.select %34, %32, %35 : vector<128x64xi1>, vector<128x64xf32>
    %c2 = arith.constant 2 : index
    %c0_16 = arith.constant 0 : index
    %37 = vector.load %arg6[%c2, %c0_16] : memref<4x64xf32, #tpu.memory_space<vmem>>, vector<1x64xf32>
    %38 = vector.broadcast %37 : vector<1x64xf32> to vector<128x64xf32>
    %39 = arith.mulf %38, %36 : vector<128x64xf32>
    %40 = arith.addf %31, %39 : vector<128x64xf32>
    %41 = vector.extract_strided_slice %40 {offsets = [0, 0], sizes = [128, 32], strides = [1, 1]} : vector<128x64xf32> to vector<128x32xf32>
    %42 = vector.extract_strided_slice %40 {offsets = [0, 32], sizes = [128, 32], strides = [1, 1]} : vector<128x64xf32> to vector<128x32xf32>
    %cst_17 = arith.constant dense<0.000000e+00> : vector<128xf32>
    %43 = vector.multi_reduction <add>, %41, %cst_17 [1] : vector<128x32xf32> to vector<128xf32>
    %44 = vector.shape_cast %43 : vector<128xf32> to vector<128x1xf32>
    %cst_18 = arith.constant 3.200000e+01 : f32
    %45 = vector.broadcast %cst_18 : f32 to vector<128x1xf32>
    %46 = arith.divf %44, %45 : vector<128x1xf32>
    %47 = vector.broadcast %46 : vector<128x1xf32> to vector<128x32xf32>
    %48 = arith.subf %41, %47 : vector<128x32xf32>
    %49 = arith.mulf %48, %48 : vector<128x32xf32>
    %cst_19 = arith.constant dense<0.000000e+00> : vector<128xf32>
    %50 = vector.multi_reduction <add>, %49, %cst_19 [1] : vector<128x32xf32> to vector<128xf32>
    %51 = vector.shape_cast %50 : vector<128xf32> to vector<128x1xf32>
    %cst_20 = arith.constant 3.200000e+01 : f32
    %52 = vector.broadcast %cst_20 : f32 to vector<128x1xf32>
    %53 = arith.divf %51, %52 : vector<128x1xf32>
    %54 = vector.broadcast %46 : vector<128x1xf32> to vector<128x32xf32>
    %55 = arith.subf %41, %54 : vector<128x32xf32>
    %cst_21 = arith.constant 9.99999974E-6 : f32
    %56 = vector.broadcast %cst_21 : f32 to vector<128x1xf32>
    %57 = arith.addf %53, %56 : vector<128x1xf32>
    %58 = math.rsqrt %57 : vector<128x1xf32>
    %59 = vector.broadcast %58 : vector<128x1xf32> to vector<128x32xf32>
    %60 = arith.mulf %55, %59 : vector<128x32xf32>
    %c0_22 = arith.constant 0 : index
    %c0_23 = arith.constant 0 : index
    %61 = vector.load %arg8[%c0_22, %c0_23] : memref<1x32xf32, #tpu.memory_space<vmem>>, vector<1x32xf32>
    %62 = vector.broadcast %61 : vector<1x32xf32> to vector<128x32xf32>
    %63 = arith.mulf %60, %62 : vector<128x32xf32>
    %c0_24 = arith.constant 0 : index
    %c0_25 = arith.constant 0 : index
    %64 = vector.load %arg9[%c0_24, %c0_25] : memref<1x32xf32, #tpu.memory_space<vmem>>, vector<1x32xf32>
    %65 = vector.broadcast %64 : vector<1x32xf32> to vector<128x32xf32>
    %66 = arith.addf %63, %65 : vector<128x32xf32>
    %c0_26 = arith.constant 0 : index
    %c0_27 = arith.constant 0 : index
    %67 = vector.load %arg3[%c0_26, %c0_27] : memref<16x32xf32, #tpu.memory_space<vmem>>, vector<16x32xf32>
    %cst_28 = arith.constant dense<0.000000e+00> : vector<128x32xf32>
    %68 = tpu.matmul %6, %67, %cst_28 {dimension_numbers = #tpu.dot_dimension_numbers<[1], [0], [0], [1], [0, 0, 1, 1], [], []>} : vector<128x16xf32>, vector<16x32xf32>, vector<128x32xf32> -> vector<128x32xf32>
    %cst_29 = arith.constant 0.000000e+00 : f32
    %69 = vector.broadcast %cst_29 : f32 to vector<128x32xf32>
    %70 = arith.maximumf %68, %69 : vector<128x32xf32>
    %71 = math.absf %68 : vector<128x32xf32>
    %cst_30 = arith.constant 0.000000e+00 : f32
    %72 = vector.broadcast %cst_30 : f32 to vector<128x32xf32>
    %73 = arith.subf %72, %71 : vector<128x32xf32>
    %74 = math.exp %73 : vector<128x32xf32>
    %cst_31 = arith.constant 1.000000e+00 : f32
    %75 = vector.broadcast %cst_31 : f32 to vector<128x32xf32>
    %76 = arith.addf %75, %74 : vector<128x32xf32>
    %77 = math.log %76 : vector<128x32xf32>
    %78 = arith.addf %70, %77 : vector<128x32xf32>
    %cst_32 = arith.constant 0.000000e+00 : f32
    %79 = vector.broadcast %cst_32 : f32 to vector<128x32xf32>
    %80 = arith.subf %79, %5 : vector<128x32xf32>
    %81 = math.exp %80 : vector<128x32xf32>
    %cst_33 = arith.constant 1.000000e+00 : f32
    %82 = vector.broadcast %cst_33 : f32 to vector<128x32xf32>
    %83 = arith.addf %82, %81 : vector<128x32xf32>
    %84 = tpu.reciprocal %83 {approx = true} : vector<128x32xf32> -> vector<128x32xf32>
    %c0_34 = arith.constant 0 : index
    %c0_35 = arith.constant 0 : index
    %85 = vector.load %arg16[%c0_34, %c0_35] : memref<128x32xf32, #tpu.memory_space<vmem>>, vector<128x32xf32>
    tpu.vector_store %arg16[%c0_34, %c0_35], %66 {strides = array<i32>} : memref<128x32xf32, #tpu.memory_space<vmem>>, vector<128x32xf32>,
    %c0_36 = arith.constant 0 : index
    %c0_37 = arith.constant 0 : index
    %86 = vector.load %arg17[%c0_36, %c0_37] : memref<128x32xf32, #tpu.memory_space<vmem>>, vector<128x32xf32>
    tpu.vector_store %arg17[%c0_36, %c0_37], %42 {strides = array<i32>} : memref<128x32xf32, #tpu.memory_space<vmem>>, vector<128x32xf32>,
    %c0_38 = arith.constant 0 : index
    %c0_39 = arith.constant 0 : index
    %87 = vector.load %arg18[%c0_38, %c0_39] : memref<128x32xf32, #tpu.memory_space<vmem>>, vector<128x32xf32>
    tpu.vector_store %arg18[%c0_38, %c0_39], %78 {strides = array<i32>} : memref<128x32xf32, #tpu.memory_space<vmem>>, vector<128x32xf32>,
    %c0_40 = arith.constant 0 : index
    %c0_41 = arith.constant 0 : index
    %88 = vector.load %arg11[%c0_40, %c0_41] : memref<32x32xf32, #tpu.memory_space<vmem>>, vector<32x32xf32>
    %c0_42 = arith.constant 0 : index
    %c0_43 = arith.constant 0 : index
    %89 = vector.load %arg12[%c0_42, %c0_43] : memref<1x32xf32, #tpu.memory_space<vmem>>, vector<1x32xf32>
    %c0_44 = arith.constant 0 : index
    %c0_45 = arith.constant 0 : index
    %90 = vector.load %arg13[%c0_44, %c0_45] : memref<32x32xf32, #tpu.memory_space<vmem>>, vector<32x32xf32>
    %c0_46 = arith.constant 0 : index
    %c0_47 = arith.constant 0 : index
    %91 = vector.load %arg14[%c0_46, %c0_47] : memref<1x32xf32, #tpu.memory_space<vmem>>, vector<1x32xf32>
    %c0_i32 = arith.constant 0 : i32
    %c2_i32_48 = arith.constant 2 : i32
    %92 = arith.addi %c0_i32, %c2_i32_48 : i32
    %c1_i32_49 = arith.constant 1 : i32
    %93:4 = scf.for %arg20 = %c0_i32 to %92 step %c1_i32_49 iter_args(%arg21 = %88, %arg22 = %89, %arg23 = %90, %arg24 = %91) -> (vector<32x32xf32>, vector<1x32xf32>, vector<32x32xf32>, vector<1x32xf32>)  : i32 {
      %c64_i32 = arith.constant 64 : i32
      %101 = arith.muli %arg20, %c64_i32 : i32
      %102 = tpu.assume_multiple %101, 64 : i32
      %103 = arith.index_cast %102 : i32 to index
      %c0_59 = arith.constant 0 : index
      %104 = vector.load %arg16[%103, %c0_59] : memref<128x32xf32, #tpu.memory_space<vmem>>, vector<64x32xf32>
      %105 = arith.index_cast %102 : i32 to index
      %c0_60 = arith.constant 0 : index
      %106 = vector.load %arg17[%105, %c0_60] : memref<128x32xf32, #tpu.memory_space<vmem>>, vector<64x32xf32>
      %107 = arith.index_cast %102 : i32 to index
      %c0_61 = arith.constant 0 : index
      %108 = vector.load %arg18[%107, %c0_61] : memref<128x32xf32, #tpu.memory_space<vmem>>, vector<64x32xf32>
      %cst_62 = arith.constant dense<0.000000e+00> : vector<64x32xf32>
      %109 = tpu.matmul %104, %arg21, %cst_62 {dimension_numbers = #tpu.dot_dimension_numbers<[1], [0], [0], [1], [0, 0, 1, 1], [], []>} : vector<64x32xf32>, vector<32x32xf32>, vector<64x32xf32> -> vector<64x32xf32>
      %110 = vector.broadcast %arg22 : vector<1x32xf32> to vector<64x32xf32>
      %111 = arith.addf %109, %110 : vector<64x32xf32>
      %cst_63 = arith.constant 5.000000e-01 : f32
      %112 = vector.broadcast %cst_63 : f32 to vector<64x32xf32>
      %113 = arith.mulf %112, %111 : vector<64x32xf32>
      %cst_64 = arith.constant 0.707106769 : f32
      %114 = vector.broadcast %cst_64 : f32 to vector<64x32xf32>
      %115 = arith.mulf %111, %114 : vector<64x32xf32>
      %cst_65 = arith.constant 0.000000e+00 : f32
      %116 = vector.broadcast %cst_65 : f32 to vector<64x32xf32>
      %117 = arith.cmpf oge, %115, %116 : vector<64x32xf32>
      %cst_66 = arith.constant 1.000000e+00 : f32
      %cst_67 = arith.constant -1.000000e+00 : f32
      %118 = vector.broadcast %cst_66 : f32 to vector<64x32xf32>
      %119 = vector.broadcast %cst_67 : f32 to vector<64x32xf32>
      %120 = arith.select %117, %118, %119 : vector<64x32xi1>, vector<64x32xf32>
      %121 = math.absf %115 : vector<64x32xf32>
      %cst_68 = arith.constant 0.327591091 : f32
      %122 = vector.broadcast %cst_68 : f32 to vector<64x32xf32>
      %123 = arith.mulf %122, %121 : vector<64x32xf32>
      %cst_69 = arith.constant 1.000000e+00 : f32
      %124 = vector.broadcast %cst_69 : f32 to vector<64x32xf32>
      %125 = arith.addf %124, %123 : vector<64x32xf32>
      %cst_70 = arith.constant 1.000000e+00 : f32
      %126 = vector.broadcast %cst_70 : f32 to vector<64x32xf32>
      %127 = arith.divf %126, %125 : vector<64x32xf32>
      %cst_71 = arith.constant 1.06140542 : f32
      %128 = vector.broadcast %cst_71 : f32 to vector<64x32xf32>
      %129 = arith.mulf %128, %127 : vector<64x32xf32>
      %cst_72 = arith.constant -1.45315206 : f32
      %130 = vector.broadcast %cst_72 : f32 to vector<64x32xf32>
      %131 = arith.addf %129, %130 : vector<64x32xf32>
      %132 = arith.mulf %131, %127 : vector<64x32xf32>
      %cst_73 = arith.constant 1.42141378 : f32
      %133 = vector.broadcast %cst_73 : f32 to vector<64x32xf32>
      %134 = arith.addf %132, %133 : vector<64x32xf32>
      %135 = arith.mulf %134, %127 : vector<64x32xf32>
      %cst_74 = arith.constant -0.284496725 : f32
      %136 = vector.broadcast %cst_74 : f32 to vector<64x32xf32>
      %137 = arith.addf %135, %136 : vector<64x32xf32>
      %138 = arith.mulf %137, %127 : vector<64x32xf32>
      %cst_75 = arith.constant 0.254829586 : f32
      %139 = vector.broadcast %cst_75 : f32 to vector<64x32xf32>
      %140 = arith.addf %138, %139 : vector<64x32xf32>
      %141 = arith.mulf %140, %127 : vector<64x32xf32>
      %cst_76 = arith.constant 0.000000e+00 : f32
      %142 = vector.broadcast %cst_76 : f32 to vector<64x32xf32>
      %143 = arith.subf %142, %121 : vector<64x32xf32>
      %144 = arith.mulf %143, %121 : vector<64x32xf32>
      %145 = math.exp %144 : vector<64x32xf32>
      %146 = arith.mulf %141, %145 : vector<64x32xf32>
      %cst_77 = arith.constant 1.000000e+00 : f32
      %147 = vector.broadcast %cst_77 : f32 to vector<64x32xf32>
      %148 = arith.subf %147, %146 : vector<64x32xf32>
      %149 = arith.mulf %120, %148 : vector<64x32xf32>
      %cst_78 = arith.constant 1.000000e+00 : f32
      %150 = vector.broadcast %cst_78 : f32 to vector<64x32xf32>
      %151 = arith.addf %150, %149 : vector<64x32xf32>
      %152 = arith.mulf %113, %151 : vector<64x32xf32>
      %cst_79 = arith.constant dense<0.000000e+00> : vector<64x32xf32>
      %153 = tpu.matmul %152, %arg23, %cst_79 {dimension_numbers = #tpu.dot_dimension_numbers<[1], [1], [0], [0], [0, 0, 1, 0], [], []>} : vector<64x32xf32>, vector<32x32xf32>, vector<64x32xf32> -> vector<64x32xf32>
      %154 = vector.broadcast %arg24 : vector<1x32xf32> to vector<64x32xf32>
      %155 = arith.addf %153, %154 : vector<64x32xf32>
      %156 = arith.index_cast %102 : i32 to index
      %c0_80 = arith.constant 0 : index
      %157 = vector.load %arg19[%156, %c0_80] : memref<128x32xf32, #tpu.memory_space<vmem>>, vector<64x32xf32>
      tpu.vector_store %arg19[%156, %c0_80], %155 {strides = array<i32>} : memref<128x32xf32, #tpu.memory_space<vmem>>, vector<64x32xf32>,
      %c64_i32_81 = arith.constant 64 : i32
      %158 = arith.addi %102, %c64_i32_81 : i32
      %c1_i32_82 = arith.constant 1 : i32
      %159 = arith.subi %158, %c1_i32_82 : i32
      %c0_83 = arith.constant 0 : index
      %160 = arith.index_cast %159 : i32 to index
      %c0_84 = arith.constant 0 : index
      %161 = vector.load %arg1[%c0_83, %160, %c0_84] : memref<1x128x32xf32, #tpu.memory_space<vmem>>, vector<1x1x32xf32>
      %162 = vector.shape_cast %161 : vector<1x1x32xf32> to vector<1x32xf32>
      %c0_85 = arith.constant 0 : index
      %c0_86 = arith.constant 0 : index
      %163 = vector.load %arg4[%c0_85, %c0_86] : memref<32x32xf32, #tpu.memory_space<vmem>>, vector<32x32xf32>
      %cst_87 = arith.constant dense<0.000000e+00> : vector<1x32xf32>
      %164 = tpu.matmul %162, %163, %cst_87 {dimension_numbers = #tpu.dot_dimension_numbers<[1], [0], [0], [1], [0, 0, 1, 1], [], []>} : vector<1x32xf32>, vector<32x32xf32>, vector<1x32xf32> -> vector<1x32xf32>
      %c0_88 = arith.constant 0 : index
      %c0_89 = arith.constant 0 : index
      %165 = vector.load %arg5[%c0_88, %c0_89] : memref<32x64xf32, #tpu.memory_space<vmem>>, vector<32x64xf32>
      %cst_90 = arith.constant dense<0.000000e+00> : vector<1x64xf32>
      %166 = tpu.matmul %164, %165, %cst_90 {dimension_numbers = #tpu.dot_dimension_numbers<[1], [0], [0], [1], [0, 0, 1, 1], [], []>} : vector<1x32xf32>, vector<32x64xf32>, vector<1x64xf32> -> vector<1x64xf32>
      %167 = vector.extract_strided_slice %166 {offsets = [0, 0], sizes = [1, 32], strides = [1, 1]} : vector<1x64xf32> to vector<1x32xf32>
      %cst_91 = arith.constant 0.000000e+00 : f32
      %168 = vector.broadcast %cst_91 : f32 to vector<1x32xf32>
      %169 = arith.maximumf %167, %168 : vector<1x32xf32>
      %170 = math.absf %167 : vector<1x32xf32>
      %cst_92 = arith.constant 0.000000e+00 : f32
      %171 = vector.broadcast %cst_92 : f32 to vector<1x32xf32>
      %172 = arith.subf %171, %170 : vector<1x32xf32>
      %173 = math.exp %172 : vector<1x32xf32>
      %cst_93 = arith.constant 1.000000e+00 : f32
      %174 = vector.broadcast %cst_93 : f32 to vector<1x32xf32>
      %175 = arith.addf %174, %173 : vector<1x32xf32>
      %176 = math.log %175 : vector<1x32xf32>
      %177 = arith.addf %169, %176 : vector<1x32xf32>
      %178 = vector.extract_strided_slice %166 {offsets = [0, 32], sizes = [1, 32], strides = [1, 1]} : vector<1x64xf32> to vector<1x32xf32>
      %cst_94 = arith.constant 0.000000e+00 : f32
      %179 = vector.broadcast %cst_94 : f32 to vector<1x32xf32>
      %180 = arith.subf %179, %178 : vector<1x32xf32>
      %181 = math.exp %180 : vector<1x32xf32>
      %cst_95 = arith.constant 1.000000e+00 : f32
      %182 = vector.broadcast %cst_95 : f32 to vector<1x32xf32>
      %183 = arith.addf %182, %181 : vector<1x32xf32>
      %184 = tpu.reciprocal %183 {approx = true} : vector<1x32xf32> -> vector<1x32xf32>
      %185 = vector.shape_cast %184 : vector<1x32xf32> to vector<1x1x32xf32>
      %cst_96 = arith.constant dense<0.000000e+00> : vector<1xf32>
      %186 = vector.multi_reduction <add>, %185, %cst_96 [1, 2] : vector<1x1x32xf32> to vector<1xf32>
      %187 = vector.shape_cast %186 : vector<1xf32> to vector<1x1x1xf32>
      %188 = vector.extract %187[0, 0, 0] : f32 from vector<1x1x1xf32>
      %cst_97 = arith.constant 3.200000e+01 : f32
      %189 = arith.divf %188, %cst_97 : f32
      %190 = vector.shape_cast %177 : vector<1x32xf32> to vector<1x1x32xf32>
      %cst_98 = arith.constant dense<0.000000e+00> : vector<1xf32>
      %191 = vector.multi_reduction <add>, %190, %cst_98 [1, 2] : vector<1x1x32xf32> to vector<1xf32>
      %192 = vector.shape_cast %191 : vector<1xf32> to vector<1x1x1xf32>
      %193 = vector.extract %192[0, 0, 0] : f32 from vector<1x1x1xf32>
      %cst_99 = arith.constant 3.200000e+01 : f32
      %194 = arith.divf %193, %cst_99 : f32
      %195 = arith.subf %155, %106 : vector<64x32xf32>
      %196 = arith.mulf %195, %195 : vector<64x32xf32>
      %cst_100 = arith.constant dense<0.000000e+00> : vector<64xf32>
      %197 = vector.multi_reduction <add>, %196, %cst_100 [1] : vector<64x32xf32> to vector<64xf32>
      %198 = vector.shape_cast %197 : vector<64xf32> to vector<64x1xf32>
      %199 = math.sqrt %198 : vector<64x1xf32>
      %cst_101 = arith.constant 9.99999971E-10 : f32
      %200 = vector.broadcast %cst_101 : f32 to vector<64x1xf32>
      %201 = arith.addf %199, %200 : vector<64x1xf32>
      %202 = tpu.reciprocal %201 {approx = true} : vector<64x1xf32> -> vector<64x1xf32>
      %203 = vector.broadcast %199 : vector<64x1xf32> to vector<64x32xf32>
      %204 = arith.cmpf ogt, %203, %108 : vector<64x32xf32>
      %205 = vector.broadcast %202 : vector<64x1xf32> to vector<64x32xf32>
      %206 = arith.mulf %195, %205 : vector<64x32xf32>
      %207 = arith.mulf %108, %206 : vector<64x32xf32>
      %208 = arith.select %204, %207, %195 : vector<64x32xi1>, vector<64x32xf32>
      %cst_102 = arith.constant dense<0.000000e+00> : vector<32xf32>
      %209 = vector.multi_reduction <add>, %208, %cst_102 [0] : vector<64x32xf32> to vector<32xf32>
      %210 = vector.shape_cast %209 : vector<32xf32> to vector<1x32xf32>
      %cst_103 = arith.constant 6.400000e+01 : f32
      %211 = vector.broadcast %cst_103 : f32 to vector<1x32xf32>
      %212 = arith.divf %210, %211 : vector<1x32xf32>
      %cst_104 = arith.constant dense<0.000000e+00> : vector<32xf32>
      %213 = vector.multi_reduction <add>, %152, %cst_104 [0] : vector<64x32xf32> to vector<32xf32>
      %214 = vector.shape_cast %213 : vector<32xf32> to vector<1x32xf32>
      %cst_105 = arith.constant 6.400000e+01 : f32
      %215 = vector.broadcast %cst_105 : f32 to vector<1x32xf32>
      %216 = arith.divf %214, %215 : vector<1x32xf32>
      %cst_106 = arith.constant dense<0.000000e+00> : vector<32x32xf32>
      %217 = tpu.matmul %212, %216, %cst_106 {dimension_numbers = #tpu.dot_dimension_numbers<[0], [0], [1], [1], [0, 1, 1, 1], [], []>} : vector<1x32xf32>, vector<1x32xf32>, vector<32x32xf32> -> vector<32x32xf32>
      %cst_107 = arith.constant dense<0.000000e+00> : vector<1x32xf32>
      %218 = tpu.matmul %212, %arg23, %cst_107 {dimension_numbers = #tpu.dot_dimension_numbers<[1], [0], [0], [1], [0, 0, 1, 1], [], []>} : vector<1x32xf32>, vector<32x32xf32>, vector<1x32xf32> -> vector<1x32xf32>
      %219 = vector.broadcast %189 : f32 to vector<32x32xf32>
      %220 = arith.mulf %219, %arg21 : vector<32x32xf32>
      %221 = vector.broadcast %194 : f32 to vector<32x32xf32>
      %222 = arith.mulf %221, %217 : vector<32x32xf32>
      %223 = arith.subf %220, %222 : vector<32x32xf32>
      %224 = vector.broadcast %189 : f32 to vector<32x32xf32>
      %225 = arith.mulf %224, %arg23 : vector<32x32xf32>
      %226 = vector.broadcast %194 : f32 to vector<32x32xf32>
      %227 = arith.mulf %226, %217 : vector<32x32xf32>
      %228 = arith.subf %225, %227 : vector<32x32xf32>
      %229 = arith.mulf %184, %arg24 : vector<1x32xf32>
      %230 = arith.mulf %177, %212 : vector<1x32xf32>
      %231 = arith.subf %229, %230 : vector<1x32xf32>
      %232 = vector.broadcast %189 : f32 to vector<1x32xf32>
      %233 = arith.mulf %232, %arg22 : vector<1x32xf32>
      %234 = vector.broadcast %194 : f32 to vector<1x32xf32>
      %235 = arith.mulf %234, %218 : vector<1x32xf32>
      %236 = arith.subf %233, %235 : vector<1x32xf32>
      scf.yield %223, %236, %228, %231 : vector<32x32xf32>, vector<1x32xf32>, vector<32x32xf32>, vector<1x32xf32>
    }
    %c2_i32_50 = arith.constant 2 : i32
    %c0_51 = arith.constant 0 : index
    %c0_52 = arith.constant 0 : index
    %94 = vector.load %arg19[%c0_51, %c0_52] : memref<128x32xf32, #tpu.memory_space<vmem>>, vector<128x32xf32>
    %c0_53 = arith.constant 0 : index
    %c0_54 = arith.constant 0 : index
    %95 = vector.load %arg10[%c0_53, %c0_54] : memref<32x32xf32, #tpu.memory_space<vmem>>, vector<32x32xf32>
    %cst_55 = arith.constant dense<0.000000e+00> : vector<128x32xf32>
    %96 = tpu.matmul %94, %95, %cst_55 {dimension_numbers = #tpu.dot_dimension_numbers<[1], [0], [0], [1], [0, 0, 1, 1], [], []>} : vector<128x32xf32>, vector<32x32xf32>, vector<128x32xf32> -> vector<128x32xf32>
    %97 = arith.mulf %96, %84 : vector<128x32xf32>
    %c0_56 = arith.constant 0 : index
    %c0_57 = arith.constant 0 : index
    %c0_58 = arith.constant 0 : index
    %98 = vector.load %arg15[%c0_56, %c0_57, %c0_58] : memref<1x128x32xf32, #tpu.memory_space<vmem>>, vector<1x128x32xf32>
    %99 = vector.shape_cast %98 : vector<1x128x32xf32> to vector<128x32xf32>
    %100 = vector.shape_cast %97 : vector<128x32xf32> to vector<1x128x32xf32>
    tpu.vector_store %arg15[%c0_56, %c0_57, %c0_58], %100 {strides = array<i32>} : memref<1x128x32xf32, #tpu.memory_space<vmem>>, vector<1x128x32xf32>,
    return
  }
  func.func @transform_0(%arg0: i32) -> (i32, i32, i32) {
    %c0_i32 = arith.constant 0 : i32
    %c0_i32_0 = arith.constant 0 : i32
    %c0_i32_1 = arith.constant 0 : i32
    return %arg0, %c0_i32, %c0_i32_0 : i32, i32, i32
  }
  func.func @transform_1(%arg0: i32) -> (i32, i32) {
    %c0_i32 = arith.constant 0 : i32
    %c0_i32_0 = arith.constant 0 : i32
    %c0_i32_1 = arith.constant 0 : i32
    return %c0_i32, %c0_i32_0 : i32, i32
  }
  func.func @transform_2(%arg0: i32) -> (i32, i32) {
    %c0_i32 = arith.constant 0 : i32
    %c0_i32_0 = arith.constant 0 : i32
    %c0_i32_1 = arith.constant 0 : i32
    return %c0_i32, %c0_i32_0 : i32, i32
  }
  func.func @transform_3(%arg0: i32) -> (i32, i32) {
    %c0_i32 = arith.constant 0 : i32
    %c0_i32_0 = arith.constant 0 : i32
    %c0_i32_1 = arith.constant 0 : i32
    return %c0_i32, %c0_i32_0 : i32, i32
  }
  func.func @transform_4(%arg0: i32) -> (i32, i32) {
    %c0_i32 = arith.constant 0 : i32
    %c0_i32_0 = arith.constant 0 : i32
    %c0_i32_1 = arith.constant 0 : i32
    return %c0_i32, %c0_i32_0 : i32, i32
  }
  func.func @transform_5(%arg0: i32) -> (i32, i32) {
    %c0_i32 = arith.constant 0 : i32
    %c0_i32_0 = arith.constant 0 : i32
    %c0_i32_1 = arith.constant 0 : i32
    return %c0_i32, %c0_i32_0 : i32, i32
  }
  func.func @transform_6(%arg0: i32) -> (i32, i32) {
    %c0_i32 = arith.constant 0 : i32
    %c0_i32_0 = arith.constant 0 : i32
    %c0_i32_1 = arith.constant 0 : i32
    return %c0_i32, %c0_i32_0 : i32, i32
  }
  func.func @transform_7(%arg0: i32) -> (i32, i32) {
    %c0_i32 = arith.constant 0 : i32
    %c0_i32_0 = arith.constant 0 : i32
    %c0_i32_1 = arith.constant 0 : i32
    return %c0_i32, %c0_i32_0 : i32, i32
  }
  func.func @transform_8(%arg0: i32) -> (i32, i32) {
    %c0_i32 = arith.constant 0 : i32
    %c0_i32_0 = arith.constant 0 : i32
    %c0_i32_1 = arith.constant 0 : i32
    return %c0_i32, %c0_i32_0 : i32, i32
  }
  func.func @transform_9(%arg0: i32) -> (i32, i32) {
    %c0_i32 = arith.constant 0 : i32
    %c0_i32_0 = arith.constant 0 : i32
    %c0_i32_1 = arith.constant 0 : i32
    return %c0_i32, %c0_i32_0 : i32, i32
  }
  func.func @transform_10(%arg0: i32) -> (i32, i32) {
    %c0_i32 = arith.constant 0 : i32
    %c0_i32_0 = arith.constant 0 : i32
    %c0_i32_1 = arith.constant 0 : i32
    return %c0_i32, %c0_i32_0 : i32, i32
  }
  func.func @transform_11(%arg0: i32) -> (i32, i32) {
    %c0_i32 = arith.constant 0 : i32
    %c0_i32_0 = arith.constant 0 : i32
    %c0_i32_1 = arith.constant 0 : i32
    return %c0_i32, %c0_i32_0 : i32, i32
  }
  func.func @transform_12(%arg0: i32) -> (i32, i32) {
    %c0_i32 = arith.constant 0 : i32
    %c0_i32_0 = arith.constant 0 : i32
    %c0_i32_1 = arith.constant 0 : i32
    return %c0_i32, %c0_i32_0 : i32, i32
  }
  func.func @transform_13(%arg0: i32) -> (i32, i32) {
    %c0_i32 = arith.constant 0 : i32
    %c0_i32_0 = arith.constant 0 : i32
    %c0_i32_1 = arith.constant 0 : i32
    return %c0_i32, %c0_i32_0 : i32, i32
  }
  func.func @transform_14(%arg0: i32) -> (i32, i32, i32) {
    %c0_i32 = arith.constant 0 : i32
    %c0_i32_0 = arith.constant 0 : i32
    %c0_i32_1 = arith.constant 0 : i32
    return %arg0, %c0_i32, %c0_i32_0 : i32, i32, i32
  }
}

</mosaic_0001>

<bundles_post_ra>
// kernel: yaad_forward.1
= control target key start
LH: loop header
LB: loop body
LE: loop exit
PB: predicated region body
PF: predicated region fallthrough
CT: control target
= control target key end

     0   :  { %s4432_s29 = smov 0   ;;  %s6168_s0 = inlined_call_operand.vmem [shape: f32[2,128,32], index: 0, kind: input, shape index: {}]   ;;  %s6169_s1 = inlined_call_operand.vmem [shape: f32[32,112], index: 1, kind: input, shape index: {}]   ;;  %s6170_s2 = inlined_call_operand.vmem [shape: f32[16,32], index: 2, kind: input, shape index: {}]   ;;  %s6171_s3 = inlined_call_operand.vmem [shape: f32[32,32], index: 3, kind: input, shape index: {}]   ;;  %s6172_s4 = inlined_call_operand.vmem [shape: f32[32,64], index: 4, kind: input, shape index: {}]   ;;  %s6173_s5 = inlined_call_operand.vmem [shape: f32[4,64], index: 5, kind: input, shape index: {}]   ;;  %s6174_s6 = inlined_call_operand.vmem [shape: f32[1,64], index: 6, kind: input, shape index: {}]   ;;  %s6175_s7 = inlined_call_operand.vmem [shape: f32[1,32], index: 7, kind: input, shape index: {}]   ;;  %s6176_s8 = inlined_call_operand.vmem [shape: f32[1,32], index: 8, kind: input, shape index: {}]   ;;  %s6177_s9 = inlined_call_operand.vmem [shape: f32[32,32], index: 9, kind: input, shape index: {}]   ;;  %s6178_s10 = inlined_call_operand.vmem [shape: f32[32,32], index: 10, kind: input, shape index: {}]   ;;  %s6179_s11 = inlined_call_operand.vmem [shape: f32[1,32], index: 11, kind: input, shape index: {}]   ;;  %s6180_s12 = inlined_call_operand.vmem [shape: f32[32,32], index: 12, kind: input, shape index: {}]   ;;  %s6181_s13 = inlined_call_operand.vmem [shape: f32[1,32], index: 13, kind: input, shape index: {}]   ;;  %s6182_s14 = inlined_call_operand.vmem [shape: f32[2,128,32], index: 14, kind: output, shape index: {}]  }
   0x1 LB: > { %s3475_s30 = sadd.s32 4294967295, %s4302_s29   ;;  %p3479_p0 = scmp.ge.s32.totalorder %s4302_s29, 1  ;;  %s4302_s29 = sphi %s4432_s29, %s24_s29  }
   0x2   : > { %p412_p1 = scmp.lt.s32.totalorder %s4302_s29, 3 }
   0x4   : > { %p413_p2 = pnand %p3479_p0, %p412_p1 }
   0x6   : > { %416 = sbr.rel (%p413_p2) target bundleno = 2051 (0x803), region = 76 }
   0xd   : > { %v484_v0 = vld [vmem:[%s6169_s1] sm:$0xff]  ;;  %v485_v1 = vld [vmem:[%s6169_s1 + $0x8] sm:$0xff]  ;;  %v486_v2 = vld [vmem:[%s6169_s1 + $0x10] sm:$0xff]  ;;  %p458_p3 = scmp.lt.s32.totalorder %s3475_s30, 1  ;;  %vm488_vm0 = vcmask 261120   ;;  %v682_v25 = vlaneseq  ;;  %s4348_s21 = smov 32  }
   0xe   : > { %v3849_v3 = vpack.c.bf16 %v485_v1, %v484_v0  ;;  %v487_v4 = vld [vmem:[%s6169_s1 + $0x18] sm:$0xff]  ;;  %v1304_v22 = vld [vmem:[%s6170_s2] sm:$0xff]  ;;  %v1305_v23 = vld [vmem:[%s6170_s2 + $0x8] sm:$0xff]  ;;  %s4349_s17 = smov 96   ;;  %vm1354_vm7 = vcmask 130048   ;;  %s5581_s16 = smov 0  }
   0xf   : > { %v3853_v5 = vpack.c.bf16 %v487_v4, %v486_v2  ;;  %s6288_s30 = smov (!%p458_p3, %s3475_s30), 1  ;;  %v3857_v24 = vpack.c.bf16 %v1305_v23, %v1304_v22  ;;  %v4500_v26 = vshrl.u32 %v682_v25, 7  ;;  %v4505_v27 = vld [vmem:[%s6173_s5 + $0x3] ss:$0 sm:$0xff]  ;;  %v4530_v40 = vld [vmem:[%s6174_s6] ss:$0 sm:$0xff] }
  0x10   : > { %3850 = vmatprep.subr.bf16.mxu0 %v3849_v3  ;;  %s3572_s23 = sshll.u32 %s6288_s30, 7 }
  0x11   : > { %3852 = vmatpush3.bf16.msra.mxu0 %v3849_v3  ;;  %s4455_s26 = scalar_lea.vmem %s6168_s0, %s3572_s23  ;;  %s4460_s15 = scalar_lea.vmem %s6182_s14, %s3572_s23  ;;  %3858 = vmatprep.subr.bf16.mxu1 %v3857_v24  ;;  %vm759_vm1 = vcmp.lt.s32.totalorder %v4500_v26, 3  ;;  %vm861_vm2 = vcmp.lt.s32.totalorder %v4500_v26, 2  ;;  %vm963_vm3 = vcmp.lt.s32.totalorder %v4500_v26, 1  ;;  %vm776_vm4 = vcmp.ge.s32.totalorder %v4500_v26, 3 }
  0x12   : > { %3854 = vmatprep.subr.bf16.mxu0 %v3853_v5  ;;  %v468_v6 = vld [vmem:[%s4455_s26] sm:$0xff]  ;;  %v469_v7 = vld [vmem:[%s4455_s26 + $0x8] sm:$0xff]  ;;  %v470_v8 = vld [vmem:[%s4455_s26 + $0x10] sm:$0xff]  ;;  %3860 = vmatpush3.bf16.msra.mxu1 %v3857_v24  ;;  %vm878_vm5 = vcmp.ge.s32.totalorder %v4500_v26, 2  ;;  %vm980_vm6 = vcmp.ge.s32.totalorder %v4500_v26, 1 }
  0x13   : > { %3684 = vmatprep.mubr.msk.f32.mxu0 %vm488_vm0, %v468_v6  ;;  %v471_v9 = vld [vmem:[%s4455_s26 + $0x18] sm:$0xff]  ;;  %v472_v10 = vld [vmem:[%s4455_s26 + $0x20] sm:$0xff]  ;;  %v473_v11 = vld [vmem:[%s4455_s26 + $0x28] sm:$0xff] }
  0x14   : > { %v474_v12 = vld [vmem:[%s4455_s26 + $0x30] sm:$0xff]  ;;  %v475_v13 = vld [vmem:[%s4455_s26 + $0x38] sm:$0xff]  ;;  %v476_v14 = vld [vmem:[%s4455_s26 + $0x40] sm:$0xff] }
  0x15   : > { %3856 = vmatpush3.bf16.msra.mxu0 %v3853_v5  ;;  %v477_v15 = vld [vmem:[%s4455_s26 + $0x48] sm:$0xff]  ;;  %v478_v16 = vld [vmem:[%s4455_s26 + $0x50] sm:$0xff]  ;;  %v479_v17 = vld [vmem:[%s4455_s26 + $0x58] sm:$0xff] }
  0x16   : > { %v480_v18 = vld [vmem:[%s4455_s26 + $0x60] sm:$0xff]  ;;  %v481_v19 = vld [vmem:[%s4455_s26 + $0x68] sm:$0xff]  ;;  %v482_v20 = vld [vmem:[%s4455_s26 + $0x70] sm:$0xff] }
  0x17   : > { %v483_v21 = vld [vmem:[%s4455_s26 + $0x78] sm:$0xff] }
  0x18   : > { %3685 = vmatmul.mubr.msk.f32.vlgmr.msra.gmra.mrb[0].mxu0 %vm488_vm0, %v469_v7 }
  0x19   : > { %3687 = vmatprep.mubr.msk.f32.mxu0 %vm488_vm0, %v470_v8 }
  0x1c   : > { %3688 = vmatmul.mubr.msk.f32.gmra.mrb[2].mxu0 %vm488_vm0, %v471_v9 }
  0x1d   : > { %3690 = vmatprep.mubr.msk.f32.mxu0 %vm488_vm0, %v472_v10 }
  0x20   : > { %3691 = vmatmul.mubr.msk.f32.gmra.mrb[4].mxu0 %vm488_vm0, %v473_v11 }
  0x21   : > { %3693 = vmatprep.mubr.msk.f32.mxu0 %vm488_vm0, %v474_v12 }
  0x24   : > { %3694 = vmatmul.mubr.msk.f32.gmra.mrb[6].mxu0 %vm488_vm0, %v475_v13 }
  0x25   : > { %3696 = vmatprep.mubr.msk.f32.mxu0 %vm488_vm0, %v476_v14 }
  0x28   : > { %3697 = vmatmul.mubr.msk.f32.gmra.mrb[8].mxu0 %vm488_vm0, %v477_v15 }
  0x29   : > { %3699 = vmatprep.mubr.msk.f32.mxu0 %vm488_vm0, %v478_v16 }
  0x2c   : > { %3700 = vmatmul.mubr.msk.f32.gmra.mrb[10].mxu0 %vm488_vm0, %v479_v17 }
  0x2d   : > { %3702 = vmatprep.mubr.msk.f32.mxu0 %vm488_vm0, %v480_v18 }
  0x30   : > { %3703 = vmatmul.mubr.msk.f32.gmra.mrb[12].mxu0 %vm488_vm0, %v481_v19 }
  0x31   : > { %3705 = vmatprep.mubr.msk.f32.mxu0 %vm488_vm0, %v482_v20 }
  0x34   : > { %3706 = vmatmul.mubr.msk.f32.gmra.mrb[14].mxu0 %vm488_vm0, %v483_v21  ;;  %v4624_v21 = vld [vmem:[%s6173_s5] ss:$0 sm:$0xff] }
  0xeb   : > { %v4507_v28 = vpop.f32.mrb[0].mxu0 }
  0xec   : > { %v744_v29 = vrot.slane %v4507_v28, 5  ;;  %v846_v30 = vrot.slane %v4507_v28, 6  ;;  %v4511_v31 = vpop.f32.mrb[1].mxu0  ;;  %v1677_v32 = vsub.f32 0.0, %v4507_v28  ;;  %v706_v36 = vmul.f32 %v4507_v28, %v4505_v27 }
  0xed   : > { %v705_v33 = vmul.f32 %v4505_v27, %v4511_v31  ;;  %v6184_v34 = vrot.slane %v4511_v31, 5  ;;  %v6183_v35 = vrot.slane %v4511_v31, 6  ;;  %1322 = vrot.lane.b32.xlu0 %v4511_v31, %s4348_s21  ;;  %v1676_v37 = vsub.f32 0.0, %v4511_v31 }
  0xee   : > { %v1694_v38 = vmul.f32 1.442695, %v1677_v32  ;;  %v948_v43 = vrot.slane %v4507_v28, 7  ;;  %v6187_v44 = vrot.slane %v4511_v31, 7  ;;  %v4559_v51 = vadd.f32 %v4530_v40, %v706_v36 }
  0xef   : > { %v4525_v39 = vpop.f32.mrb[2].mxu0  ;;  %v4536_v41 = vsel %vm759_vm1, %v6184_v34, %v744_v29  ;;  %v4542_v42 = vsel %vm861_vm2, %v6183_v35, %v846_v30  ;;  %v1692_v45 = vmul.f32 1.442695, %v1676_v37  ;;  %v4562_v52 = vadd.f32 %v4530_v40, %v705_v33 }
  0xf0   : > { %1328 = vrot.lane.b32.xlu1 %v4525_v39, %s4348_s21  ;;  %v4548_v46 = vpop.f32.mrb[3].mxu0  ;;  %4020 = vpow2.f32 %v1694_v38  ;;  %v708_v47 = vmul.f32 %v4525_v39, %v4505_v27  ;;  %v1679_v48 = vsub.f32 0.0, %v4525_v39  ;;  %v746_v50 = vrot.slane %v4525_v39, 5 }
  0xf1   : > { %v707_v49 = vmul.f32 %v4505_v27, %v4548_v46  ;;  %1324 = vrot.lane.b32.xlu0 %v4507_v28, %s4348_s21  ;;  %4022 = vpow2.f32 %v1692_v45  ;;  %v745_v54 = vrot.slane %v4548_v46, 5  ;;  %v847_v55 = vrot.slane %v4548_v46, 6 }
  0xf2   : > { %v1698_v53 = vmul.f32 1.442695, %v1679_v48  ;;  %v1678_v56 = vsub.f32 0.0, %v4548_v46  ;;  %v6185_v58 = vrot.slane %v4525_v39, 6  ;;  %v6186_v59 = vrot.slane %v4525_v39, 7 }
  0xf3   : > { %v4567_v57 = vpop.f32.mrb[4].mxu0  ;;  %v949_v60 = vrot.slane %v4548_v46, 7  ;;  %v729_v62 = vadd.f32 %v4530_v40, %v707_v49  ;;  %v4581_v1 = vadd.f32 %v4530_v40, %v708_v47  ;;  %v773_v8 = vsel %vm759_vm1, %v744_v29, %v745_v54 }
  0xf4   : > { %1326 = vrot.lane.b32.xlu1 %v4548_v46, %s4348_s21  ;;  %v4574_v61 = vpop.f32.mrb[5].mxu0  ;;  %4024 = vpow2.f32 %v1698_v53  ;;  %v1696_v63 = vmul.f32 1.442695, %v1678_v56  ;;  %v1681_v0 = vsub.f32 0.0, %v4567_v57  ;;  %v4585_v2 = vmul.f32 %v4567_v57, %v4505_v27  ;;  %v4647_v53 = vld [vmem:[%s6173_s5 + $0x1] ss:$0 sm:$0xff] }
  0xf5   : > { %1330 = vrot.lane.b32.xlu0 %v4574_v61, %s4348_s21  ;;  %v748_v3 = vrot.slane %v4567_v57, 5  ;;  %v1680_v5 = vsub.f32 0.0, %v4574_v61  ;;  %v875_v9 = vsel %vm861_vm2, %v846_v30, %v847_v55  ;;  %v4603_v11 = vmul.f32 %v4505_v27, %v4574_v61 }
  0xf6   : > { %4026 = vpow2.f32 %v1696_v63  ;;  %v1702_v6 = vmul.f32 1.442695, %v1681_v0  ;;  %v815_v30 = vmul.f32 %v4624_v21, %v773_v8  ;;  %v4655_v0 = vmul.f32 %v4647_v53, %v875_v9 }
  0xf7   : > { %v4590_v7 = vpop.f32.mrb[6].mxu0  ;;  %v1700_v13 = vmul.f32 1.442695, %v1680_v5  ;;  %v814_v46 = vmul.f32 %v4624_v21, %v4536_v41  ;;  %v6195_v28 = vrot.slane %v4574_v61, 5 }
  0xf8   : > { %1332 = vrot.lane.b32.xlu1 %v4567_v57, %s4348_s21  ;;  %v4608_v14 = vpop.f32.mrb[7].mxu0  ;;  %4028 = vpow2.f32 %v1702_v6  ;;  %v1683_v17 = vsub.f32 0.0, %v4590_v7  ;;  %v4617_v18 = vmul.f32 %v4590_v7, %v4505_v27 }
  0xf9   : > { %1334 = vrot.lane.b32.xlu0 %v4608_v14, %s4348_s21  ;;  %4030 = vpow2.f32 %v1700_v13  ;;  %v1682_v25 = vsub.f32 0.0, %v4608_v14  ;;  %v4633_v36 = vmul.f32 %v4505_v27, %v4608_v14  ;;  %v830_v41 = vadd.f32 %v814_v46, %v4559_v51 }
  0xfa   : > { %v4021_v22 = vpop.eup %4020  ;;  %v1706_v24 = vmul.f32 1.442695, %v1683_v17  ;;  %v4660_v17 = vadd.f32 %v815_v30, %v729_v62  ;;  %v6198_v51 = vrot.slane %v4567_v57, 7 }
  0xfb   : > { %v4628_v29 = vpop.f32.mrb[8].mxu0  ;;  %v4023_v32 = vpop.eup %4022  ;;  %v1725_v33 = vadd.f32 1.0, %v4021_v22  ;;  %v1704_v48 = vmul.f32 1.442695, %v1682_v25 }
  0xfc   : > { %1336 = vrot.lane.b32.xlu1 %v4590_v7, %s4348_s21  ;;  %v4639_v45 = vpop.f32.mrb[9].mxu0  ;;  %v1724_v47 = vadd.f32 1.0, %v4023_v32  ;;  %4032 = vpow2.f32 %v1706_v24  ;;  %v1685_v49 = vsub.f32 0.0, %v4628_v29  ;;  %v4652_v63 = vmul.f32 %v4628_v29, %v4505_v27 }
  0xfd   : > { %1338 = vrot.lane.b32.xlu0 %v4639_v45, %s4348_s21  ;;  %4034 = vrcp.f32 %v1725_v33  ;;  %v1684_v8 = vsub.f32 0.0, %v4639_v45  ;;  %v4674_v62 = vmul.f32 %v4505_v27, %v4639_v45  ;;  %v933_v12 = vadd.f32 %v4655_v0, %v4660_v17 }
  0xfe   : > { %v4025_v5 = vpop.eup %4024  ;;  %4036 = vrcp.f32 %v1724_v47  ;;  %v1710_v6 = vmul.f32 1.442695, %v1685_v49  ;;  %v772_v0 = vsel %vm759_vm1, %v745_v54, %v746_v50 }
  0xff   : > { %v4658_v13 = vpop.f32.mrb[10].mxu0  ;;  %v1727_v22 = vadd.f32 1.0, %v4025_v5  ;;  %4038 = vpow2.f32 %v1704_v48  ;;  %v1708_v30 = vmul.f32 1.442695, %v1684_v8 }
 0x100   : > { %v4665_v25 = vmul.f32 %v4658_v13, %v4505_v27  ;;  %1340 = vrot.lane.b32.xlu1 %v4628_v29, %s4348_s21  ;;  %v4669_v9 = vpop.f32.mrb[11].mxu0  ;;  %v4027_v32 = vpop.eup %4026  ;;  %4040 = vpow2.f32 %v1710_v6  ;;  %v1687_v48 = vsub.f32 0.0, %v4658_v13 }
 0x101   : > { %1342 = vrot.lane.b32.xlu0 %v4669_v9, %s4348_s21  ;;  %4042 = vrcp.f32 %v1727_v22  ;;  %v1726_v47 = vadd.f32 1.0, %v4027_v32  ;;  %v4681_v49 = vmul.f32 %v4505_v27, %v4669_v9  ;;  %v1686_v24 = vsub.f32 0.0, %v4669_v9 }
 0x102   : > { %v4029_v5 = vpop.eup %4028  ;;  %4044 = vpow2.f32 %v1708_v30  ;;  %v1714_v32 = vmul.f32 1.442695, %v1687_v48 }
 0x103   : > { %v4686_v8 = vpop.f32.mrb[12].mxu0  ;;  %v4031_v33 = vpop.eup %4030  ;;  %4046 = vrcp.f32 %v1726_v47  ;;  %v1729_v22 = vadd.f32 1.0, %v4029_v5  ;;  %v1712_v48 = vmul.f32 1.442695, %v1686_v24 }
 0x104   : > { %1344 = vrot.lane.b32.xlu1 %v4658_v13, %s4348_s21  ;;  %v4691_v56 = vpop.f32.mrb[13].mxu0  ;;  %v1728_v23 = vadd.f32 1.0, %v4031_v33  ;;  %v4697_v34 = vmul.f32 %v4686_v8, %v4505_v27  ;;  %v1689_v5 = vsub.f32 0.0, %v4686_v8 }
 0x105   : > { %1346 = vrot.lane.b32.xlu0 %v4691_v56, %s4348_s21  ;;  %4048 = vrcp.f32 %v1729_v22  ;;  %v4708_v6 = vmul.f32 %v4505_v27, %v4691_v56  ;;  %v1688_v37 = vsub.f32 0.0, %v4691_v56 }
 0x106   : > { %v4033_v33 = vpop.eup %4032  ;;  %4050 = vrcp.f32 %v1728_v23  ;;  %v1718_v47 = vmul.f32 1.442695, %v1689_v5  ;;  %v977_v5 = vsel %vm963_vm3, %v948_v43, %v949_v60 }
 0x107   : > { %v4710_v38 = vpop.f32.mrb[14].mxu0  ;;  %v4712_v20 = vpop.eup %4034  ;;  %v1731_v22 = vadd.f32 1.0, %v4033_v33  ;;  %4052 = vpow2.f32 %v1714_v32  ;;  %v1716_v30 = vmul.f32 1.442695, %v1688_v37 }
 0x108   : > { %6191 = vst [vmem:[#allocation6_spill] sm:$0xff] %v4712_v20  ;;  %1348 = vrot.lane.b32.xlu1 %v4686_v8, %s4348_s21  ;;  %v4717_v23 = vpop.f32.mrb[15].mxu0  ;;  %v4719_v35 = vpop.eup %4036  ;;  %4054 = vpow2.f32 %v1712_v48  ;;  %v4725_v19 = vmul.f32 %v4710_v38, %v4505_v27  ;;  %v1691_v24 = vsub.f32 0.0, %v4710_v38 }
 0x109   : > { %1350 = vrot.lane.b32.xlu0 %v4717_v23, %s4348_s21  ;;  %v4039_v32 = vpop.eup %4038  ;;  %4056 = vrcp.f32 %v1731_v22  ;;  %v4734_v10 = vmul.f32 %v4505_v27, %v4717_v23  ;;  %v1690_v27 = vsub.f32 0.0, %v4717_v23 }
 0x10a   : > { %v4041_v48 = vpop.eup %4040  ;;  %v1730_v16 = vadd.f32 1.0, %v4039_v32  ;;  %4058 = vpow2.f32 %v1718_v47  ;;  %v1722_v47 = vmul.f32 1.442695, %v1691_v24 }
 0x10b   : > { %v4736_v15 = vpop.eup %4042  ;;  %v1733_v4 = vadd.f32 1.0, %v4041_v48  ;;  %v1720_v24 = vmul.f32 1.442695, %v1690_v27 }
 0x10c   : > { %1352 = vrot.lane.b32.xlu1 %v4710_v38, %s4348_s21  ;;  %v4045_v33 = vpop.eup %4044  ;;  %4060 = vrcp.f32 %v1730_v16  ;;  %v4758_v16 = vld [vmem:[%s6173_s5 + $0x2] ss:$0 sm:$0xff] }
 0x10d   : > { %v4745_v32 = vpop.eup %4046  ;;  %4062 = vrcp.f32 %v1733_v4  ;;  %v1732_v48 = vadd.f32 1.0, %v4045_v33  ;;  %v1019_v4 = vmul.f32 %v4758_v16, %v977_v5  ;;  %v816_v33 = vmul.f32 %v4624_v21, %v772_v0 }
 0x10e   : > { %4064 = vpow2.f32 %v1716_v30  ;;  %v874_v30 = vsel %vm861_vm2, %v847_v55, %v6185_v58  ;;  %v976_v5 = vsel %vm963_vm3, %v949_v60, %v6186_v59  ;;  %v916_v59 = vmul.f32 %v4647_v53, %v4542_v42 }
 0x10f   : > { %v4767_v17 = vpop.eup %4048  ;;  %4066 = vrcp.f32 %v1732_v48  ;;  %v4785_v48 = vadd.f32 %v1019_v4, %v933_v12  ;;  %v918_v0 = vmul.f32 %v4647_v53, %v874_v30  ;;  %v832_v55 = vadd.f32 %v816_v33, %v4581_v1 }
 0x110   : > { %6192 = vst [vmem:[#allocation7_spill] sm:$0xff] %v4767_v17  ;;  %v4782_v54 = vpop.eup %4050  ;;  %4068 = vpow2.f32 %v1722_v47  ;;  %v1020_v22 = vmul.f32 %v4758_v16, %v976_v5  ;;  %v978_v12 = vsel %vm963_vm3, %v6187_v44, %v948_v43  ;;  %v732_v1 = vadd.f32 %v4530_v40, %v4585_v2 }
 0x111   : > { %6193 = vst [vmem:[#allocation8_spill] sm:$0xff] %v4782_v54  ;;  %v4053_v37 = vpop.eup %4052  ;;  %4070 = vpow2.f32 %v1720_v24  ;;  %v934_v4 = vadd.f32 %v918_v0, %v832_v55  ;;  %v770_v42 = vsel %vm759_vm1, %v6195_v28, %v748_v3  ;;  %v6196_v43 = vrot.slane %v4567_v57, 6 }
 0x112   : > { %v4055_v58 = vpop.eup %4054  ;;  %v1735_v60 = vadd.f32 1.0, %v4053_v37  ;;  %v1018_v37 = vmul.f32 %v4758_v16, %v978_v12  ;;  %v6197_v2 = vrot.slane %v4574_v61, 6  ;;  %v6199_v30 = vrot.slane %v4574_v61, 7 }
 0x113   : > { %v4802_v47 = vpop.eup %4056  ;;  %v1734_v24 = vadd.f32 1.0, %v4055_v58  ;;  %v4824_v55 = vadd.f32 %v1020_v22, %v934_v4  ;;  %v932_v46 = vadd.f32 %v916_v59, %v830_v41  ;;  %v818_v28 = vmul.f32 %v4624_v21, %v770_v42 }
 0x114   : > { %6194 = vst [vmem:[#allocation9_spill] sm:$0xff] %v4802_v47  ;;  %v4059_v33 = vpop.eup %4058  ;;  %4072 = vrcp.f32 %v1735_v60  ;;  %v872_v58 = vsel %vm861_vm2, %v6197_v2, %v6196_v43  ;;  %v974_v5 = vsel %vm963_vm3, %v6199_v30, %v6198_v51  ;;  %v731_v2 = vadd.f32 %v4530_v40, %v4603_v11 }
 0x115   : > { %4074 = vrcp.f32 %v1734_v24  ;;  %v1737_v0 = vadd.f32 1.0, %v4059_v33  ;;  %v920_v43 = vmul.f32 %v4647_v53, %v872_v58  ;;  %v4835_v51 = vadd.f32 %v1018_v37, %v932_v46 }
 0x116   : > { %v4826_v60 = vpop.eup %4060  ;;  %v1022_v22 = vmul.f32 %v4758_v16, %v974_v5  ;;  %v6202_v59 = vrot.slane %v4574_v61, 5  ;;  %v834_v41 = vadd.f32 %v818_v28, %v732_v1  ;;  %v6203_v11 = vrot.slane %v4574_v61, 6 }
 0x117   : > { %6200 = vst [vmem:[#allocation10_spill] sm:$0xff] %v4826_v60  ;;  %v4833_v27 = vpop.eup %4062  ;;  %4076 = vrcp.f32 %v1737_v0  ;;  %v6204_v42 = vrot.slane %v4525_v39, 6  ;;  %v6205_v58 = vmov %v6199_v30  ;;  %v6206_v30 = vrot.slane %v4525_v39, 7 }
 0x118   : > { %6201 = vst [vmem:[#allocation11_spill] sm:$0xff] %v4833_v27  ;;  %v771_v24 = vsel %vm759_vm1, %v746_v50, %v6202_v59  ;;  %v4065_v4 = vpop.eup %4064  ;;  %v734_v61 = vadd.f32 %v4530_v40, %v4617_v18  ;;  %v6208_v39 = vrot.slane %v4590_v7, 5  ;;  %v6239_v44 = vrot.slane %v4686_v8, 5 }
 0x119   : > { %v817_v33 = vmul.f32 %v4624_v21, %v771_v24  ;;  %v873_v37 = vsel %vm861_vm2, %v6204_v42, %v6203_v11  ;;  %v975_v5 = vsel %vm963_vm3, %v6206_v30, %v6205_v58  ;;  %v4857_v0 = vpop.eup %4066  ;;  %v1736_v50 = vadd.f32 1.0, %v4065_v4 }
 0x11a   : > { %6207 = vst [vmem:[#allocation12_spill] sm:$0xff] %v4857_v0  ;;  %v919_v46 = vmul.f32 %v4647_v53, %v873_v37  ;;  %v1021_v28 = vmul.f32 %v4758_v16, %v975_v5  ;;  %v4069_v59 = vpop.eup %4068  ;;  %v936_v24 = vadd.f32 %v920_v43, %v834_v41  ;;  %v6209_v11 = vrot.slane %v4608_v14, 5 }
 0x11b   : > { %v833_v12 = vadd.f32 %v817_v33, %v731_v2  ;;  %v4071_v4 = vpop.eup %4070  ;;  %4078 = vrcp.f32 %v1736_v50  ;;  %v1739_v58 = vadd.f32 1.0, %v4069_v59  ;;  %v6210_v30 = vrot.slane %v4590_v7, 6 }
 0x11c   : > { %v768_v42 = vsel %vm759_vm1, %v6209_v11, %v6208_v39  ;;  %v6211_v43 = vrot.slane %v4608_v14, 6  ;;  %v1738_v18 = vadd.f32 1.0, %v4071_v4  ;;  %v4877_v41 = vadd.f32 %v1022_v22, %v936_v24 }
 0x11d   : > { %v820_v37 = vmul.f32 %v4624_v21, %v768_v42  ;;  %v935_v33 = vadd.f32 %v919_v46, %v833_v12  ;;  %4080 = vrcp.f32 %v1739_v58  ;;  %v4882_v50 = vadd.f32 %v4530_v40, %v4734_v10 }
 0x11e   : > { %v870_v2 = vsel %vm861_vm2, %v6211_v43, %v6210_v30  ;;  %v6212_v39 = vrot.slane %v4590_v7, 7  ;;  %v6213_v11 = vrot.slane %v4608_v14, 7  ;;  %v4890_v30 = vpop.eup %4072  ;;  %4082 = vrcp.f32 %v1738_v18 }
 0x11f   : > { %v922_v5 = vmul.f32 %v4647_v53, %v870_v2  ;;  %v836_v59 = vadd.f32 %v820_v37, %v734_v61  ;;  %6214 = vst [vmem:[#allocation13_spill] sm:$0xff] %v4890_v30  ;;  %v4892_v22 = vadd.f32 %v1021_v28, %v935_v33  ;;  %v733_v46 = vadd.f32 %v4530_v40, %v4633_v36  ;;  %v4897_v10 = vpop.eup %4074 }
 0x120   : > { %v972_v42 = vsel %vm963_vm3, %v6213_v11, %v6212_v39  ;;  %6215 = vst [vmem:[#allocation14_spill] sm:$0xff] %v4897_v10  ;;  %v6216_v61 = vrot.slane %v4608_v14, 5  ;;  %v6217_v58 = vmov %v6211_v43  ;;  %v6218_v28 = vrot.slane %v4567_v57, 6 }
 0x121   : > { %v1024_v12 = vmul.f32 %v4758_v16, %v972_v42  ;;  %v938_v24 = vadd.f32 %v922_v5, %v836_v59  ;;  %v6219_v43 = vmov %v6213_v11  ;;  %v6220_v36 = vrot.slane %v4567_v57, 7  ;;  %v4923_v59 = vpop.eup %4076 }
 0x122   : > { %v769_v4 = vsel %vm759_vm1, %v748_v3, %v6216_v61  ;;  %v871_v37 = vsel %vm861_vm2, %v6218_v28, %v6217_v58  ;;  %v1055_v18 = vsel %vm488_vm0, %v4785_v48, 0.0  ;;  %v1058_v3 = vsel %vm488_vm0, %v4824_v55, 0.0  ;;  %6221 = vst [vmem:[#allocation15_spill] sm:$0xff] %v4923_v59 }
 0x123   : > { %v973_v2 = vsel %vm963_vm3, %v6220_v36, %v6219_v43  ;;  %v819_v33 = vmul.f32 %v4624_v21, %v769_v4  ;;  %v921_v5 = vmul.f32 %v4647_v53, %v871_v37  ;;  %v4925_v39 = vadd.f32 %v1024_v12, %v938_v24 }
 0x124   : > { %v735_v57 = vadd.f32 %v4530_v40, %v4674_v62  ;;  %v6222_v14 = vrot.slane %v4639_v45, 5  ;;  %v6223_v11 = vrot.slane %v4590_v7, 5  ;;  %v6224_v61 = vrot.slane %v4639_v45, 6 }
 0x125   : > { %v6225_v4 = vrot.slane %v4590_v7, 6  ;;  %v835_v28 = vadd.f32 %v819_v33, %v733_v46  ;;  %v1023_v12 = vmul.f32 %v4758_v16, %v973_v2  ;;  %v955_v62 = vrot.slane %v4639_v45, 7  ;;  %v4964_v1 = vpop.eup %4078 }
 0x126   : > { %v767_v42 = vsel %vm759_vm1, %v6223_v11, %v6222_v14  ;;  %v736_v43 = vadd.f32 %v4530_v40, %v4652_v63  ;;  %v6226_v36 = vrot.slane %v4628_v29, 5  ;;  %v6227_v46 = vrot.slane %v4628_v29, 6  ;;  %6230 = vst [vmem:[#allocation16_spill] sm:$0xff] %v4964_v1 }
 0x127   : > { %v869_v58 = vsel %vm861_vm2, %v6225_v4, %v6224_v61  ;;  %v821_v24 = vmul.f32 %v4624_v21, %v767_v42  ;;  %v6228_v2 = vmov %v6224_v61  ;;  %v937_v42 = vadd.f32 %v921_v5, %v835_v28 }
 0x128   : > { %v923_v37 = vmul.f32 %v4647_v53, %v869_v58  ;;  %v766_v11 = vsel %vm759_vm1, %v6222_v14, %v6226_v36  ;;  %v868_v33 = vsel %vm861_vm2, %v6228_v2, %v6227_v46  ;;  %v6229_v4 = vrot.slane %v4590_v7, 7  ;;  %v4981_v2 = vpop.eup %4080  ;;  %1056 = vadd.xlane.f32.xlu0 %v1055_v18 }
 0x129   : > { %v837_v61 = vadd.f32 %v821_v24, %v735_v57  ;;  %v822_v58 = vmul.f32 %v4624_v21, %v766_v11  ;;  %v924_v14 = vmul.f32 %v4647_v53, %v868_v33  ;;  %v956_v45 = vrot.slane %v4628_v29, 7  ;;  %6233 = vst [vmem:[#allocation17_spill] sm:$0xff] %v4981_v2  ;;  %v4999_v18 = vpop.eup %4082 }
 0x12a   : > { %v971_v63 = vsel %vm963_vm3, %v6229_v4, %v955_v62  ;;  %v738_v46 = vadd.f32 %v4530_v40, %v4665_v25  ;;  %v4973_v7 = vadd.f32 %v1023_v12, %v937_v42  ;;  %v6231_v28 = vrot.slane %v4658_v13, 5  ;;  %6238 = vst [vmem:[#allocation18_spill] sm:$0xff] %v4999_v18 }
 0x12b   : > { %v1025_v36 = vmul.f32 %v4758_v16, %v971_v63  ;;  %v939_v5 = vadd.f32 %v923_v37, %v837_v61  ;;  %v838_v57 = vadd.f32 %v822_v58, %v736_v43  ;;  %v6232_v24 = vrot.slane %v4669_v9, 5 }
 0x12c   : > { %v970_v25 = vsel %vm963_vm3, %v955_v62, %v956_v45  ;;  %v6234_v12 = vrot.slane %v4658_v13, 6  ;;  %v6235_v37 = vrot.slane %v4669_v9, 6  ;;  %v6236_v42 = vrot.slane %v4658_v13, 7  ;;  %1059 = vadd.xlane.f32.xlu0 %v1058_v3 }
 0x12d   : > { %v764_v11 = vsel %vm759_vm1, %v6232_v24, %v6231_v28  ;;  %v6237_v61 = vrot.slane %v4669_v9, 7  ;;  %v1052_v62 = vsel %vm488_vm0, %v4835_v51, 0.0  ;;  %v5003_v63 = vadd.f32 %v1025_v36, %v939_v5 }
 0x12e   : > { %v824_v33 = vmul.f32 %v4624_v21, %v764_v11  ;;  %v866_v43 = vsel %vm861_vm2, %v6235_v37, %v6234_v12  ;;  %v940_v58 = vadd.f32 %v924_v14, %v838_v57  ;;  %v1026_v28 = vmul.f32 %v4758_v16, %v970_v25 }
 0x12f   : > { %v968_v4 = vsel %vm963_vm3, %v6237_v61, %v6236_v42  ;;  %v926_v11 = vmul.f32 %v4647_v53, %v866_v43  ;;  %v740_v37 = vadd.f32 %v4530_v40, %v4697_v34  ;;  %v1064_v42 = vsel %vm488_vm0, %v4877_v41, 0.0 }
 0x130   : > { %v840_v24 = vadd.f32 %v824_v33, %v738_v46  ;;  %v1028_v12 = vmul.f32 %v4758_v16, %v968_v4  ;;  %v5012_v61 = vadd.f32 %v1026_v28, %v940_v58  ;;  %v6240_v36 = vrot.slane %v4691_v56, 5  ;;  %1053 = vadd.xlane.f32.xlu1 %v1052_v62  ;;  %1065 = vadd.xlane.f32.xlu0 %v1064_v42 }
 0x131   : > { %v6241_v46 = vrot.slane %v4686_v8, 6  ;;  %v6242_v5 = vrot.slane %v4691_v56, 6  ;;  %v6243_v43 = vrot.slane %v4686_v8, 7  ;;  %v6244_v4 = vrot.slane %v4691_v56, 7 }
 0x132   : > { %v762_v14 = vsel %vm759_vm1, %v6240_v36, %v6239_v44  ;;  %v942_v34 = vadd.f32 %v926_v11, %v840_v24  ;;  %v1061_v58 = vsel %vm488_vm0, %v4892_v22, 0.0  ;;  %v737_v3 = vadd.f32 %v4530_v40, %v4681_v49 }
 0x133   : > { %v864_v57 = vsel %vm861_vm2, %v6242_v5, %v6241_v46  ;;  %v826_v25 = vmul.f32 %v4624_v21, %v762_v14  ;;  %v966_v44 = vsel %vm963_vm3, %v6244_v4, %v6243_v43  ;;  %v6245_v24 = vrot.slane %v4669_v9, 5 }
 0x134   : > { %v928_v33 = vmul.f32 %v4647_v53, %v864_v57  ;;  %v1030_v28 = vmul.f32 %v4758_v16, %v966_v44  ;;  %v6246_v11 = vrot.slane %v4628_v29, 5  ;;  %v5045_v14 = vadd.f32 %v1028_v12, %v942_v34  ;;  %1062 = vadd.xlane.f32.xlu1 %v1061_v58 }
 0x135   : > { %v842_v46 = vadd.f32 %v826_v25, %v740_v37  ;;  %v6247_v57 = vrot.slane %v4669_v9, 6  ;;  %v6248_v43 = vrot.slane %v4628_v29, 6  ;;  %v6249_v44 = vrot.slane %v4669_v9, 7 }
 0x136   : > { %v765_v36 = vsel %vm759_vm1, %v6246_v11, %v6245_v24  ;;  %v6250_v12 = vrot.slane %v4511_v31, 5  ;;  %v6251_v37 = vrot.slane %v4710_v38, 5  ;;  %v6252_v25 = vrot.slane %v4511_v31, 6 }
 0x137   : > { %v823_v5 = vmul.f32 %v4624_v21, %v765_v36  ;;  %v867_v4 = vsel %vm861_vm2, %v6248_v43, %v6247_v57  ;;  %v969_v18 = vsel %vm963_vm3, %v956_v45, %v6249_v44  ;;  %v6253_v29 = vrot.slane %v4710_v38, 6 }
 0x138   : > { %v925_v49 = vmul.f32 %v4647_v53, %v867_v4  ;;  %v775_v34 = vsel %vm759_vm1, %v6251_v37, %v6250_v12  ;;  %v1070_v9 = vsel %vm488_vm0, %v4925_v39, 0.0  ;;  %v944_v45 = vadd.f32 %v928_v33, %v842_v46 }
 0x139   : > { %v877_v24 = vsel %vm861_vm2, %v6253_v29, %v6252_v25  ;;  %v839_v11 = vadd.f32 %v823_v5, %v737_v3  ;;  %v1027_v36 = vmul.f32 %v4758_v16, %v969_v18  ;;  %v792_v57 = vsel %vm776_vm4, %v775_v34, 0.0  ;;  %1071 = vadd.xlane.f32.xlu0 %v1070_v9 }
 0x13a   : > { %v894_v43 = vsel %vm878_vm5, %v877_v24, 0.0  ;;  %v6254_v4 = vrot.slane %v4511_v31, 7  ;;  %v6255_v44 = vrot.slane %v4710_v38, 7  ;;  %v739_v42 = vadd.f32 %v4530_v40, %v4708_v6 }
 0x13b   : > { %v5086_v33 = vadd.f32 %v1030_v28, %v944_v45  ;;  %v941_v3 = vadd.f32 %v925_v49, %v839_v11  ;;  %v813_v18 = vmul.f32 %v4624_v21, %v792_v57  ;;  %v915_v46 = vmul.f32 %v4647_v53, %v894_v43 }
 0x13c   : > { %v979_v62 = vsel %vm963_vm3, %v6255_v44, %v6254_v4  ;;  %v6256_v31 = vrot.slane %v4691_v56, 5  ;;  %v6257_v12 = vrot.slane %v4658_v13, 5  ;;  %v6258_v34 = vrot.slane %v4691_v56, 6 }
 0x13d   : > { %v996_v5 = vsel %vm980_vm6, %v979_v62, 0.0  ;;  %v6259_v6 = vrot.slane %v4658_v13, 6  ;;  %v6260_v49 = vrot.slane %v4691_v56, 7  ;;  %v6261_v25 = vrot.slane %v4658_v13, 7 }
 0x13e   : > { %v763_v37 = vsel %vm759_vm1, %v6257_v12, %v6256_v31  ;;  %v961_v24 = vrot.slane %v4717_v23, 7  ;;  %v5111_v45 = vadd.f32 %v1027_v36, %v941_v3  ;;  %v829_v11 = vadd.f32 %v813_v18, %v4562_v52 }
 0x13f   : > { %v865_v28 = vsel %vm861_vm2, %v6259_v6, %v6258_v34  ;;  %v967_v29 = vsel %vm963_vm3, %v6261_v25, %v6260_v49  ;;  %v1017_v57 = vmul.f32 %v4758_v16, %v996_v5  ;;  %v825_v43 = vmul.f32 %v4624_v21, %v763_v37 }
 0x140   : > { %v927_v4 = vmul.f32 %v4647_v53, %v865_v28  ;;  %v1029_v56 = vmul.f32 %v4758_v16, %v967_v29  ;;  %v742_v13 = vadd.f32 %v4530_v40, %v4725_v19  ;;  %v1067_v44 = vsel %vm488_vm0, %v4973_v7, 0.0 }
 0x141   : > { %v931_v58 = vadd.f32 %v915_v46, %v829_v11  ;;  %v6262_v9 = vrot.slane %v4710_v38, 5  ;;  %v6263_v36 = vrot.slane %v4717_v23, 5  ;;  %v6264_v62 = vrot.slane %v4710_v38, 6  ;;  %1068 = vadd.xlane.f32.xlu1 %v1067_v44 }
 0x142   : > { %v6265_v3 = vrot.slane %v4717_v23, 6  ;;  %v841_v5 = vadd.f32 %v825_v43, %v739_v42  ;;  %v6266_v46 = vrot.slane %v4710_v38, 7  ;;  %v6268_v6 = vrot.slane %v4686_v8, 5 }
 0x143   : > { %v760_v52 = vsel %vm759_vm1, %v6263_v36, %v6262_v9  ;;  %v5140_v12 = vadd.f32 %v1017_v57, %v931_v58  ;;  %v6267_v34 = vmov %v6263_v36  ;;  %v6270_v49 = vrot.slane %v4686_v8, 6 }
 0x144   : > { %v862_v18 = vsel %vm861_vm2, %v6265_v3, %v6264_v62  ;;  %v828_v40 = vmul.f32 %v4624_v21, %v760_v52  ;;  %v964_v31 = vsel %vm963_vm3, %v961_v24, %v6266_v46  ;;  %v761_v42 = vsel %vm759_vm1, %v6268_v6, %v6267_v34 }
 0x145   : > { %v930_v19 = vmul.f32 %v4647_v53, %v862_v18  ;;  %v1032_v37 = vmul.f32 %v4758_v16, %v964_v31  ;;  %v6269_v28 = vmov %v6265_v3  ;;  %v943_v25 = vadd.f32 %v927_v4, %v841_v5 }
 0x146   : > { %v863_v38 = vsel %vm861_vm2, %v6270_v49, %v6269_v28  ;;  %v844_v29 = vadd.f32 %v828_v40, %v742_v13  ;;  %v827_v11 = vmul.f32 %v4624_v21, %v761_v42  ;;  %v6271_v43 = vrot.slane %v4686_v8, 7 }
 0x147   : > { %v929_v57 = vmul.f32 %v4647_v53, %v863_v38  ;;  %v5161_v58 = vadd.f32 %v1029_v56, %v943_v25  ;;  %v1076_v40 = vsel %vm488_vm0, %v5012_v61, 0.0  ;;  %v1082_v31 = vsel %vm488_vm0, %v5045_v14, 0.0 }
 0x148   : > { %v965_v44 = vsel %vm963_vm3, %v6271_v43, %v961_v24  ;;  %v946_v9 = vadd.f32 %v930_v19, %v844_v29  ;;  %v843_v23 = vadd.f32 %v827_v11, %v4882_v50  ;;  %v1073_v6 = vsel %vm488_vm0, %v5003_v63, 0.0 }
 0x149   : > { %v1031_v36 = vmul.f32 %v4758_v16, %v965_v44  ;;  %v1088_v42 = vsel %vm488_vm0, %v5086_v33, 0.0  ;;  %v1079_v49 = vsel %vm488_vm0, %v5111_v45, 0.0  ;;  %v1049_v38 = vsel %vm488_vm0, %v5140_v12, 0.0 }
 0x14a   : > { %v5165_v52 = vadd.f32 %v1032_v37, %v946_v9  ;;  %v945_v4 = vadd.f32 %v929_v57, %v843_v23  ;;  %v1085_v25 = vsel %vm488_vm0, %v5161_v58, 0.0 }
 0x14c   : > { %v5167_v13 = vadd.f32 %v1031_v36, %v945_v4  ;;  %v1094_v29 = vsel %vm488_vm0, %v5165_v52, 0.0 }
 0x14e   : > { %v1091_v43 = vsel %vm488_vm0, %v5167_v13, 0.0 }
 0x14f   : > { %1790 = vrot.lane.b32.xlu0 %v4835_v51, %s4349_s17 }
 0x152   : > { %1792 = vrot.lane.b32.xlu1 %v4785_v48, %s4349_s17 }
 0x153   : > { %1796 = vrot.lane.b32.xlu0 %v4892_v22, %s4349_s17 }
 0x156   : > { %1794 = vrot.lane.b32.xlu1 %v4824_v55, %s4349_s17 }
 0x157   : > { %1800 = vrot.lane.b32.xlu0 %v4973_v7, %s4349_s17 }
 0x15a   : > { %1798 = vrot.lane.b32.xlu1 %v4877_v41, %s4349_s17 }
 0x15b   : > { %1804 = vrot.lane.b32.xlu0 %v5003_v63, %s4349_s17 }
 0x15e   : > { %1802 = vrot.lane.b32.xlu1 %v4925_v39, %s4349_s17 }
 0x15f   : > { %v1323_v21 = vpop.permute.xlu0 %1322 }
 0x160   : > { %3712 = vmatprep.mubr.msk.f32.mxu1 %vm1354_vm7, %v1323_v21 }
 0x162   : > { %1806 = vrot.lane.b32.xlu1 %v5012_v61, %s4349_s17  ;;  %v1329_v53 = vpop.permute.xlu1 %1328 }
 0x163   : > { %v1325_v8 = vpop.permute.xlu0 %1324 }
 0x164   : > { %3713 = vmatmul.mubr.msk.f32.vlgmr.msra.gmra.mrb[0].mxu1 %vm1354_vm7, %v1325_v8 }
 0x166   : > { %v1327_v16 = vpop.permute.xlu1 %1326 }
 0x167   : > { %3715 = vmatprep.mubr.msk.f32.mxu1 %vm1354_vm7, %v1327_v16  ;;  %v1331_v50 = vpop.permute.xlu0 %1330 }
 0x168   : > { %3716 = vmatmul.mubr.msk.f32.gmra.mrb[2].mxu1 %vm1354_vm7, %v1329_v53 }
 0x169   : > { %3718 = vmatprep.mubr.msk.f32.mxu1 %vm1354_vm7, %v1331_v50 }
 0x16a   : > { %v1333_v24 = vpop.permute.xlu1 %1332 }
 0x16b   : > { %v1335_v56 = vpop.permute.xlu0 %1334 }
 0x16c   : > { %3719 = vmatmul.mubr.msk.f32.gmra.mrb[4].mxu1 %vm1354_vm7, %v1333_v24 }
 0x16d   : > { %3721 = vmatprep.mubr.msk.f32.mxu1 %vm1354_vm7, %v1335_v56 }
 0x16e   : > { %v1337_v62 = vpop.permute.xlu1 %1336 }
 0x16f   : > { %v1339_v3 = vpop.permute.xlu0 %1338 }
 0x170   : > { %3722 = vmatmul.mubr.msk.f32.gmra.mrb[6].mxu1 %vm1354_vm7, %v1337_v62 }
 0x171   : > { %3724 = vmatprep.mubr.msk.f32.mxu1 %vm1354_vm7, %v1339_v3 }
 0x172   : > { %v1341_v18 = vpop.permute.xlu1 %1340 }
 0x173   : > { %v1343_v5 = vpop.permute.xlu0 %1342 }
 0x174   : > { %3725 = vmatmul.mubr.msk.f32.gmra.mrb[8].mxu1 %vm1354_vm7, %v1341_v18 }
 0x175   : > { %3727 = vmatprep.mubr.msk.f32.mxu1 %vm1354_vm7, %v1343_v5 }
 0x176   : > { %v1345_v19 = vpop.permute.xlu1 %1344 }
 0x177   : > { %v1347_v46 = vpop.permute.xlu0 %1346 }
 0x178   : > { %3728 = vmatmul.mubr.msk.f32.gmra.mrb[10].mxu1 %vm1354_vm7, %v1345_v19 }
 0x179   : > { %3730 = vmatprep.mubr.msk.f32.mxu1 %vm1354_vm7, %v1347_v46 }
 0x17a   : > { %1077 = vadd.xlane.f32.xlu0 %v1076_v40  ;;  %v1349_v37 = vpop.permute.xlu1 %1348 }
 0x17b   : > { %v1351_v34 = vpop.permute.xlu0 %1350 }
 0x17c   : > { %3731 = vmatmul.mubr.msk.f32.gmra.mrb[12].mxu1 %vm1354_vm7, %v1349_v37 }
 0x17d   : > { %3733 = vmatprep.mubr.msk.f32.mxu1 %vm1354_vm7, %v1351_v34 }
 0x17e   : > { %1083 = vadd.xlane.f32.xlu0 %v1082_v31  ;;  %v1353_v28 = vpop.permute.xlu1 %1352 }
 0x180   : > { %3734 = vmatmul.mubr.msk.f32.gmra.mrb[14].mxu1 %vm1354_vm7, %v1353_v28 }
 0x182   : > { %1089 = vadd.xlane.f32.xlu0 %v1088_v42 }
 0x186   : > { %1074 = vadd.xlane.f32.xlu1 %v1073_v6  ;;  %1050 = vadd.xlane.f32.xlu0 %v1049_v38 }
 0x18a   : > { %1080 = vadd.xlane.f32.xlu1 %v1079_v49  ;;  %1095 = vadd.xlane.f32.xlu0 %v1094_v29 }
 0x18e   : > { %1086 = vadd.xlane.f32.xlu1 %v1085_v25 }
 0x19f   : > { %1788 = vrot.lane.b32.xlu1 %v5140_v12, %s4349_s17 }
 0x1a0   : > { %1808 = vrot.lane.b32.xlu0 %v5111_v45, %s4349_s17 }
 0x1b5   : > { %v1057_v11 = vpop.xlane.xlu0 %1056 }
 0x1b6   : > { %v1100_v38 = vmul.f32 0.03125, %v1057_v11 }
 0x1b8   : > { %v5261_v25 = vsub.f32 %v4785_v48, %v1100_v38 }
 0x1b9   : > { %v1060_v57 = vpop.xlane.xlu0 %1059 }
 0x1ba   : > { %v1101_v44 = vmul.f32 0.03125, %v1060_v57 }
 0x1bc   : > { %v5226_v4 = vsub.f32 %v4824_v55, %v1101_v44  ;;  %v1132_v44 = vmul.f32 %v5261_v25, %v5261_v25 }
 0x1bd   : > { %v1054_v9 = vpop.xlane.xlu1 %1053  ;;  %v1066_v23 = vpop.xlane.xlu0 %1065 }
 0x1be   : > { %v1099_v36 = vmul.f32 0.03125, %v1054_v9  ;;  %v1103_v53 = vmul.f32 0.03125, %v1066_v23  ;;  %v1133_v3 = vmul.f32 %v5226_v4, %v5226_v4  ;;  %v1152_v23 = vsel %vm488_vm0, %v1132_v44, 0.0 }
 0x1c0   : > { %v5229_v21 = vsub.f32 %v4835_v51, %v1099_v36  ;;  %v5234_v24 = vsub.f32 %v4877_v41, %v1103_v53  ;;  %v1155_v5 = vsel %vm488_vm0, %v1133_v3, 0.0 }
 0x1c1   : > { %v1063_v8 = vpop.xlane.xlu1 %1062 }
 0x1c2   : > { %v1131_v50 = vmul.f32 %v5229_v21, %v5229_v21  ;;  %v1135_v41 = vmul.f32 %v5234_v24, %v5234_v24  ;;  %v1102_v29 = vmul.f32 0.03125, %v1063_v8 }
 0x1c3   : > { %1092 = vadd.xlane.f32.xlu1 %v1091_v43 }
 0x1c4   : > { %v1149_v62 = vsel %vm488_vm0, %v1131_v50, 0.0  ;;  %v1161_v46 = vsel %vm488_vm0, %v1135_v41, 0.0  ;;  %v5264_v57 = vsub.f32 %v4892_v22, %v1102_v29 }
 0x1c5   : > { %1150 = vadd.xlane.f32.xlu0 %v1149_v62 }
 0x1c6   : > { %v1072_v16 = vpop.xlane.xlu0 %1071  ;;  %v1134_v36 = vmul.f32 %v5264_v57, %v5264_v57 }
 0x1c7   : > { %v1105_v56 = vmul.f32 0.03125, %v1072_v16 }
 0x1c8   : > { %v1158_v48 = vsel %vm488_vm0, %v1134_v36, 0.0 }
 0x1c9   : > { %v5241_v51 = vsub.f32 %v4925_v39, %v1105_v56  ;;  %1156 = vadd.xlane.f32.xlu0 %v1155_v5 }
 0x1ca   : > { %v1791_v18 = vpop.permute.xlu0 %1790 }
 0x1cb   : > { %1837 = vst.msk [vmem:[#allocation3 + $0x8] sm:$0xff] %vm488_vm0, %v1791_v18  ;;  %v1137_v39 = vmul.f32 %v5241_v51, %v5241_v51 }
 0x1cd   : > { %1162 = vadd.xlane.f32.xlu0 %v1161_v46  ;;  %v1167_v34 = vsel %vm488_vm0, %v1137_v39, 0.0 }
 0x1ce   : > { %v1069_v55 = vpop.xlane.xlu1 %1068  ;;  %v1797_v19 = vpop.permute.xlu0 %1796 }
 0x1cf   : > { %1840 = vst.msk [vmem:[#allocation3 + $0x20] sm:$0xff] %vm488_vm0, %v1797_v19  ;;  %v1104_v43 = vmul.f32 0.03125, %v1069_v55 }
 0x1d1   : > { %1168 = vadd.xlane.f32.xlu0 %v1167_v34  ;;  %v5269_v9 = vsub.f32 %v4973_v7, %v1104_v43 }
 0x1d2   : > { %v1793_v40 = vpop.permute.xlu1 %1792  ;;  %v1801_v37 = vpop.permute.xlu0 %1800 }
 0x1d3   : > { %1838 = vst.msk [vmem:[#allocation3 + $0x10] sm:$0xff] %vm488_vm0, %v1793_v40  ;;  %1842 = vst.msk [vmem:[#allocation3 + $0x30] sm:$0xff] %vm488_vm0, %v1801_v37  ;;  %v1136_v11 = vmul.f32 %v5269_v9, %v5269_v9 }
 0x1d4   : > { %1810 = vrot.lane.b32.xlu1 %v5045_v14, %s4349_s17 }
 0x1d5   : > { %v1164_v22 = vsel %vm488_vm0, %v1136_v11, 0.0 }
 0x1d6   : > { %v1795_v31 = vpop.permute.xlu1 %1794  ;;  %v1805_v42 = vpop.permute.xlu0 %1804 }
 0x1d7   : > { %1839 = vst.msk [vmem:[#allocation3 + $0x18] sm:$0xff] %vm488_vm0, %v1795_v31  ;;  %1844 = vst.msk [vmem:[#allocation3 + $0x40] sm:$0xff] %vm488_vm0, %v1805_v42 }
 0x1da   : > { %v1799_v6 = vpop.permute.xlu1 %1798 }
 0x1db   : > { %1841 = vst.msk [vmem:[#allocation3 + $0x28] sm:$0xff] %vm488_vm0, %v1799_v6 }
 0x1de   : > { %v1803_v28 = vpop.permute.xlu1 %1802 }
 0x1df   : > { %1843 = vst.msk [vmem:[#allocation3 + $0x38] sm:$0xff] %vm488_vm0, %v1803_v28 }
 0x1e2   : > { %v1807_v49 = vpop.permute.xlu1 %1806 }
 0x1e3   : > { %1845 = vst.msk [vmem:[#allocation3 + $0x48] sm:$0xff] %vm488_vm0, %v1807_v49 }
 0x1f8   : > { %1153 = vadd.xlane.f32.xlu1 %v1152_v23 }
 0x1fc   : > { %1159 = vadd.xlane.f32.xlu1 %v1158_v48 }
 0x200   : > { %1165 = vadd.xlane.f32.xlu1 %v1164_v22 }
 0x207   : > { %v1078_v53 = vpop.xlane.xlu0 %1077 }
 0x208   : > { %v1107_v8 = vmul.f32 0.03125, %v1078_v53 }
 0x20a   : > { %v5279_v7 = vsub.f32 %v5012_v61, %v1107_v8 }
 0x20b   : > { %v1084_v16 = vpop.xlane.xlu0 %1083 }
 0x20c   : > { %v1109_v50 = vmul.f32 0.03125, %v1084_v16  ;;  %v1139_v56 = vmul.f32 %v5279_v7, %v5279_v7 }
 0x20e   : > { %v5284_v62 = vsub.f32 %v5045_v14, %v1109_v50  ;;  %v1173_v3 = vsel %vm488_vm0, %v1139_v56, 0.0 }
 0x20f   : > { %v1090_v18 = vpop.xlane.xlu0 %1089  ;;  %1174 = vadd.xlane.f32.xlu0 %v1173_v3 }
 0x210   : > { %v1111_v41 = vmul.f32 0.03125, %v1090_v18  ;;  %v1141_v40 = vmul.f32 %v5284_v62, %v5284_v62 }
 0x212   : > { %v5293_v19 = vsub.f32 %v5086_v33, %v1111_v41  ;;  %v1179_v46 = vsel %vm488_vm0, %v1141_v40, 0.0 }
 0x213   : > { %v1075_v55 = vpop.xlane.xlu1 %1074  ;;  %v1051_v39 = vpop.xlane.xlu0 %1050  ;;  %1180 = vadd.xlane.f32.xlu0 %v1179_v46 }
 0x214   : > { %v1106_v5 = vmul.f32 0.03125, %v1075_v55  ;;  %v1143_v37 = vmul.f32 %v5293_v19, %v5293_v19 }
 0x216   : > { %v5290_v61 = vsub.f32 %v5003_v63, %v1106_v5  ;;  %v1098_v63 = vmul.f32 0.03125, %v1051_v39  ;;  %v1185_v42 = vsel %vm488_vm0, %v1143_v37, 0.0 }
 0x217   : > { %v1081_v14 = vpop.xlane.xlu1 %1080  ;;  %1186 = vadd.xlane.f32.xlu0 %v1185_v42  ;;  %v1096_v38 = vpop.xlane.xlu0 %1095 }
 0x218   : > { %v1108_v31 = vmul.f32 0.03125, %v1081_v14  ;;  %v1138_v34 = vmul.f32 %v5290_v61, %v5290_v61  ;;  %v1113_v43 = vmul.f32 0.03125, %v1096_v38  ;;  %v5308_v23 = vsub.f32 %v5140_v12, %v1098_v63 }
 0x21a   : > { %v5301_v6 = vsub.f32 %v5111_v45, %v1108_v31  ;;  %v1170_v28 = vsel %vm488_vm0, %v1138_v34, 0.0  ;;  %v5314_v36 = vsub.f32 %v5165_v52, %v1113_v43  ;;  %v1130_v50 = vmul.f32 %v5308_v23, %v5308_v23 }
 0x21b   : > { %v1087_v49 = vpop.xlane.xlu1 %1086  ;;  %1171 = vadd.xlane.f32.xlu1 %v1170_v28  ;;  %v1809_v22 = vpop.permute.xlu0 %1808 }
 0x21c   : > { %v1110_v29 = vmul.f32 0.03125, %v1087_v49  ;;  %v1140_v44 = vmul.f32 %v5301_v6, %v5301_v6  ;;  %1846 = vst.msk [vmem:[#allocation3 + $0x50] sm:$0xff] %vm488_vm0, %v1809_v22  ;;  %v1145_v53 = vmul.f32 %v5314_v36, %v5314_v36  ;;  %v1146_v56 = vsel %vm488_vm0, %v1130_v50, 0.0 }
 0x21e   : > { %v5311_v45 = vsub.f32 %v5161_v58, %v1110_v29  ;;  %v1176_v48 = vsel %vm488_vm0, %v1140_v44, 0.0  ;;  %v1191_v8 = vsel %vm488_vm0, %v1145_v53, 0.0 }
 0x21f   : > { %v1789_v11 = vpop.permute.xlu1 %1788  ;;  %1177 = vadd.xlane.f32.xlu1 %v1176_v48  ;;  %1192 = vadd.xlane.f32.xlu0 %v1191_v8 }
 0x220   : > { %1836 = vst.msk [vmem:[#allocation3] sm:$0xff] %vm488_vm0, %v1789_v11  ;;  %v1142_v12 = vmul.f32 %v5311_v45, %v5311_v45 }
 0x222   : > { %v1182_v16 = vsel %vm488_vm0, %v1142_v12, 0.0 }
 0x223   : > { %1183 = vadd.xlane.f32.xlu1 %v1182_v16 }
 0x227   : > { %1147 = vadd.xlane.f32.xlu1 %v1146_v56 }
 0x235   : > { %1812 = vrot.lane.b32.xlu0 %v5161_v58, %s4349_s17 }
 0x237   : > { %v5332_v3 = vpop.f32.mrb[0].mxu1 }
 0x238   : > { %v1549_v55 = vand.u32 2147483647, %v5332_v3  ;;  %v5335_v18 = vpop.f32.mrb[1].mxu1 }
 0x239   : > { %1816 = vrot.lane.b32.xlu0 %v5167_v13, %s4349_s17  ;;  %v1548_v5 = vand.u32 2147483647, %v5335_v18 }
 0x23a   : > { %v1565_v41 = vsub.f32 0.0, %v1549_v55 }
 0x23b   : > { %v1564_v40 = vsub.f32 0.0, %v1548_v5  ;;  %v5338_v46 = vpop.f32.mrb[2].mxu1 }
 0x23c   : > { %v1582_v14 = vmul.f32 1.442695, %v1565_v41  ;;  %v1551_v39 = vand.u32 2147483647, %v5338_v46  ;;  %v5341_v31 = vpop.f32.mrb[3].mxu1 }
 0x23d   : > { %v1580_v58 = vmul.f32 1.442695, %v1564_v40  ;;  %v1550_v37 = vand.u32 2147483647, %v5341_v31 }
 0x23e   : > { %4084 = vpow2.f32 %v1582_v14  ;;  %v1567_v34 = vsub.f32 0.0, %v1551_v39 }
 0x23f   : > { %4086 = vpow2.f32 %v1580_v58  ;;  %v1566_v63 = vsub.f32 0.0, %v1550_v37  ;;  %v5344_v42 = vpop.f32.mrb[4].mxu1 }
 0x240   : > { %v1586_v28 = vmul.f32 1.442695, %v1567_v34  ;;  %v1553_v49 = vand.u32 2147483647, %v5344_v42  ;;  %v5347_v38 = vpop.f32.mrb[5].mxu1 }
 0x241   : > { %v1584_v29 = vmul.f32 1.442695, %v1566_v63  ;;  %v1552_v43 = vand.u32 2147483647, %v5347_v38 }
 0x242   : > { %4088 = vpow2.f32 %v1586_v28  ;;  %v1569_v44 = vsub.f32 0.0, %v1553_v49 }
 0x243   : > { %4090 = vpow2.f32 %v1584_v29  ;;  %v1568_v48 = vsub.f32 0.0, %v1552_v43  ;;  %v5350_v11 = vpop.f32.mrb[6].mxu1 }
 0x244   : > { %v1590_v22 = vmul.f32 1.442695, %v1569_v44  ;;  %v1555_v53 = vand.u32 2147483647, %v5350_v11  ;;  %v5353_v12 = vpop.f32.mrb[7].mxu1 }
 0x245   : > { %v1588_v8 = vmul.f32 1.442695, %v1568_v48  ;;  %v1554_v16 = vand.u32 2147483647, %v5353_v12 }
 0x246   : > { %4092 = vpow2.f32 %v1590_v22  ;;  %v1571_v50 = vsub.f32 0.0, %v1555_v53 }
 0x247   : > { %4094 = vpow2.f32 %v1588_v8  ;;  %v1570_v56 = vsub.f32 0.0, %v1554_v16  ;;  %v5356_v55 = vpop.f32.mrb[8].mxu1 }
 0x248   : > { %v4085_v41 = vpop.eup %4084  ;;  %v1594_v40 = vmul.f32 1.442695, %v1571_v50  ;;  %v1557_v14 = vand.u32 2147483647, %v5356_v55  ;;  %v5359_v63 = vpop.f32.mrb[9].mxu1 }
 0x249   : > { %v4087_v58 = vpop.eup %4086  ;;  %v1613_v37 = vadd.f32 1.0, %v4085_v41  ;;  %v1592_v34 = vmul.f32 1.442695, %v1570_v56  ;;  %v1556_v43 = vand.u32 2147483647, %v5359_v63 }
 0x24a   : > { %v1612_v28 = vadd.f32 1.0, %v4087_v58  ;;  %4096 = vpow2.f32 %v1594_v40  ;;  %v1573_v49 = vsub.f32 0.0, %v1557_v14 }
 0x24b   : > { %4098 = vlog2.f32 %v1613_v37  ;;  %v5365_v44 = vpop.f32.mrb[10].mxu1 }
 0x24c   : > { %v4089_v22 = vpop.eup %4088  ;;  %4100 = vlog2.f32 %v1612_v28  ;;  %v1598_v53 = vmul.f32 1.442695, %v1573_v49  ;;  %v1559_v8 = vand.u32 2147483647, %v5365_v44  ;;  %v5369_v16 = vpop.f32.mrb[11].mxu1 }
 0x24d   : > { %v4091_v50 = vpop.eup %4090  ;;  %v1615_v56 = vadd.f32 1.0, %v4089_v22  ;;  %4102 = vpow2.f32 %v1592_v34  ;;  %v1558_v40 = vand.u32 2147483647, %v5369_v16 }
 0x24e   : > { %4104 = vpow2.f32 %v1598_v53  ;;  %v1575_v41 = vsub.f32 0.0, %v1559_v8 }
 0x24f   : > { %4106 = vlog2.f32 %v1615_v56  ;;  %v1574_v49 = vsub.f32 0.0, %v1558_v40 }
 0x250   : > { %v1093_v5 = vpop.xlane.xlu1 %1092  ;;  %v4093_v37 = vpop.eup %4092  ;;  %v1602_v28 = vmul.f32 1.442695, %v1575_v41 }
 0x251   : > { %v1112_v39 = vmul.f32 0.03125, %v1093_v5  ;;  %v1572_v5 = vsub.f32 0.0, %v1556_v43  ;;  %v4095_v34 = vpop.eup %4094  ;;  %v1617_v43 = vadd.f32 1.0, %v4093_v37  ;;  %v1533_v37 = vmax.f32 %v5332_v3, 0.0 }
 0x252   : > { %v1616_v8 = vadd.f32 1.0, %v4095_v34  ;;  %v1151_v56 = vpop.xlane.xlu0 %1150 }
 0x253   : > { %v5362_v29 = vsub.f32 %v5167_v13, %v1112_v39  ;;  %v1614_v13 = vadd.f32 1.0, %v4091_v50  ;;  %v1596_v14 = vmul.f32 1.442695, %v1572_v5  ;;  %v5372_v39 = vpop.f32.mrb[12].mxu1  ;;  %v1600_v50 = vmul.f32 1.442695, %v1574_v49 }
 0x254   : > { %v1811_v48 = vpop.permute.xlu1 %1810  ;;  %v1561_v22 = vand.u32 2147483647, %v5372_v39  ;;  %v1195_v41 = vmul.f32 0.03125, %v1151_v56  ;;  %v4097_v2 = vpop.eup %4096 }
 0x255   : > { %1847 = vst.msk [vmem:[#allocation3 + $0x58] sm:$0xff] %vm488_vm0, %v1811_v48  ;;  %v1144_v58 = vmul.f32 %v5362_v29, %v5362_v29  ;;  %4108 = vlog2.f32 %v1614_v13  ;;  %v5376_v48 = vpop.f32.mrb[13].mxu1 }
 0x256   : > { %4110 = vpow2.f32 %v1596_v14  ;;  %v1577_v5 = vsub.f32 0.0, %v1561_v22  ;;  %v1560_v13 = vand.u32 2147483647, %v5376_v48  ;;  %v5381_v40 = vpop.f32.mrb[14].mxu1  ;;  %v1211_v56 = vadd.f32 1e-05, %v1195_v41  ;;  %v1157_v10 = vpop.xlane.xlu0 %1156 }
 0x257   : > { %v1188_v53 = vsel %vm488_vm0, %v1144_v58, 0.0  ;;  %4112 = vpow2.f32 %v1602_v28  ;;  %v1563_v14 = vand.u32 2147483647, %v5381_v40  ;;  %v5385_v1 = vpop.f32.mrb[15].mxu1  ;;  %v4099_v58 = vpop.eup %4098  ;;  %v1619_v28 = vadd.f32 1.0, %v4097_v2 }
 0x258   : > { %1189 = vadd.xlane.f32.xlu1 %v1188_v53  ;;  %4114 = vlog2.f32 %v1617_v43  ;;  %v1606_v49 = vmul.f32 1.442695, %v1577_v5  ;;  %v1576_v34 = vsub.f32 0.0, %v1560_v13  ;;  %v4101_v43 = vpop.eup %4100  ;;  %v1631_v22 = vmul.f32 0.6931472, %v4099_v58 }
 0x259   : > { %4116 = vlog2.f32 %v1616_v8  ;;  %v1532_v53 = vmax.f32 %v5335_v18, 0.0  ;;  %v1579_v59 = vsub.f32 0.0, %v1563_v14  ;;  %v4103_v30 = vpop.eup %4102  ;;  %v1629_v0 = vmul.f32 0.6931472, %v4101_v43 }
 0x25a   : > { %4118 = vpow2.f32 %v1600_v50  ;;  %v1604_v3 = vmul.f32 1.442695, %v1576_v34  ;;  %v1562_v8 = vand.u32 2147483647, %v5385_v1  ;;  %v4105_v27 = vpop.eup %4104  ;;  %v1661_v60 = vadd.f32 %v1631_v22, %v1533_v37  ;;  %v1163_v34 = vpop.xlane.xlu0 %1162 }
 0x25b   : > { %4120 = vlog2.f32 %v1619_v28  ;;  %v1618_v47 = vadd.f32 1.0, %v4103_v30  ;;  %v1610_v2 = vmul.f32 1.442695, %v1579_v59  ;;  %v4107_v50 = vpop.eup %4106  ;;  %v1660_v5 = vadd.f32 %v1629_v0, %v1532_v53 }
 0x25c   : > { %4122 = vpow2.f32 %v1606_v49  ;;  %v1621_v13 = vadd.f32 1.0, %v4105_v27  ;;  %v1578_v58 = vsub.f32 0.0, %v1562_v8  ;;  %1853 = vst.msk [vmem:[#allocation4 + $0x8] sm:$0xff] %vm488_vm0, %v1661_v60  ;;  %v1535_v41 = vmax.f32 %v5338_v46, 0.0 }
 0x25d   : > { %4124 = vpow2.f32 %v1604_v3  ;;  %v1635_v14 = vmul.f32 0.6931472, %v4107_v50  ;;  %v1197_v28 = vmul.f32 0.03125, %v1157_v10  ;;  %1852 = vst.msk [vmem:[#allocation4] sm:$0xff] %vm488_vm0, %v1660_v5  ;;  %v1534_v30 = vmax.f32 %v5341_v31, 0.0 }
 0x25e   : > { %4126 = vlog2.f32 %v1618_v47  ;;  %v1199_v0 = vmul.f32 0.03125, %v1163_v34  ;;  %v1608_v22 = vmul.f32 1.442695, %v1578_v58  ;;  %v1537_v3 = vmax.f32 %v5344_v42, 0.0  ;;  %v1169_v50 = vpop.xlane.xlu0 %1168 }
 0x25f   : > { %v4109_v18 = vpop.eup %4108  ;;  %4128 = vlog2.f32 %v1621_v13  ;;  %v1663_v37 = vadd.f32 %v1635_v14, %v1535_v41  ;;  %v1213_v47 = vadd.f32 1e-05, %v1197_v28  ;;  %v1536_v31 = vmax.f32 %v5347_v38, 0.0 }
 0x260   : > { %v4111_v43 = vpop.eup %4110  ;;  %v1633_v59 = vmul.f32 0.6931472, %v4109_v18  ;;  %4130 = vrsqrt.f32 %v1211_v56  ;;  %v1215_v13 = vadd.f32 1e-05, %v1199_v0  ;;  %v1201_v58 = vmul.f32 0.03125, %v1169_v50 }
 0x261   : > { %v4113_v27 = vpop.eup %4112  ;;  %v1620_v49 = vadd.f32 1.0, %v4111_v43  ;;  %4132 = vpow2.f32 %v1610_v2  ;;  %1855 = vst.msk [vmem:[#allocation4 + $0x18] sm:$0xff] %vm488_vm0, %v1663_v37  ;;  %v1539_v38 = vmax.f32 %v5350_v11, 0.0  ;;  %v1540_v50 = vmax.f32 %v5359_v63, 0.0 }
 0x262   : > { %v4115_v60 = vpop.eup %4114  ;;  %v1662_v53 = vadd.f32 %v1633_v59, %v1534_v30  ;;  %v1623_v46 = vadd.f32 1.0, %v4113_v27  ;;  %v1217_v28 = vadd.f32 1e-05, %v1201_v58 }
 0x263   : > { %v4117_v10 = vpop.eup %4116  ;;  %v1639_v8 = vmul.f32 0.6931472, %v4115_v60  ;;  %4134 = vlog2.f32 %v1620_v49  ;;  %v1538_v49 = vmax.f32 %v5353_v12, 0.0  ;;  %v1541_v60 = vmax.f32 %v5356_v55, 0.0  ;;  %v5416_v55 = vld [vmem:[%s6176_s8] ss:$0 sm:$0xff] }
 0x264   : > { %v4119_v5 = vpop.eup %4118  ;;  %1854 = vst.msk [vmem:[#allocation4 + $0x10] sm:$0xff] %vm488_vm0, %v1662_v53  ;;  %v1637_v56 = vmul.f32 0.6931472, %v4117_v10  ;;  %4136 = vlog2.f32 %v1623_v46 }
 0x265   : > { %v1665_v18 = vadd.f32 %v1639_v8, %v1537_v3  ;;  %v1622_v2 = vadd.f32 1.0, %v4119_v5  ;;  %4138 = vpow2.f32 %v1608_v22  ;;  %v4121_v41 = vpop.eup %4120 }
 0x266   : > { %v1664_v14 = vadd.f32 %v1637_v56, %v1536_v31  ;;  %4140 = vrsqrt.f32 %v1213_v47  ;;  %v4123_v42 = vpop.eup %4122  ;;  %v1643_v34 = vmul.f32 0.6931472, %v4121_v41 }
 0x267   : > { %1857 = vst.msk [vmem:[#allocation4 + $0x28] sm:$0xff] %vm488_vm0, %v1665_v18  ;;  %4142 = vlog2.f32 %v1622_v2  ;;  %v4125_v43 = vpop.eup %4124  ;;  %v1625_v30 = vadd.f32 1.0, %v4123_v42 }
 0x268   : > { %1856 = vst.msk [vmem:[#allocation4 + $0x20] sm:$0xff] %vm488_vm0, %v1664_v14  ;;  %4144 = vrsqrt.f32 %v1215_v13  ;;  %v4127_v59 = vpop.eup %4126  ;;  %v1667_v0 = vadd.f32 %v1643_v34, %v1539_v38  ;;  %v1624_v27 = vadd.f32 1.0, %v4125_v43  ;;  %v1542_v38 = vmax.f32 %v5369_v16, 0.0 }
 0x269   : > { %1814 = vrot.lane.b32.xlu1 %v5086_v33, %s4349_s17  ;;  %4146 = vrsqrt.f32 %v1217_v28  ;;  %v4129_v37 = vpop.eup %4128  ;;  %v1641_v22 = vmul.f32 0.6931472, %v4127_v59  ;;  %v5408_v33 = vld [vmem:[%s6175_s7] ss:$0 sm:$0xff] }
 0x26a   : > { %4148 = vlog2.f32 %v1625_v30  ;;  %v4131_v11 = vpop.eup %4130  ;;  %1859 = vst.msk [vmem:[#allocation4 + $0x38] sm:$0xff] %vm488_vm0, %v1667_v0  ;;  %v1647_v53 = vmul.f32 0.6931472, %v4129_v37  ;;  %v1545_v37 = vmax.f32 %v5372_v39, 0.0 }
 0x26b   : > { %4150 = vlog2.f32 %v1624_v27  ;;  %v4133_v46 = vpop.eup %4132  ;;  %v1666_v47 = vadd.f32 %v1641_v22, %v1538_v49  ;;  %v1243_v10 = vmul.f32 %v4131_v11, %v5229_v21  ;;  %v1544_v11 = vmax.f32 %v5376_v48, 0.0 }
 0x26c   : > { %v1669_v3 = vadd.f32 %v1647_v53, %v1541_v60  ;;  %v1627_v8 = vadd.f32 1.0, %v4133_v46  ;;  %v1547_v48 = vmax.f32 %v5381_v40, 0.0  ;;  %v5464_v40 = vld [vmem:[%s6178_s10 + $0x18] sm:$0xff]  }
 0x26d   : > { %1818 = vrot.lane.b32.xlu1 %v5165_v52, %s4349_s17  ;;  %v4135_v12 = vpop.eup %4134  ;;  %1858 = vst.msk [vmem:[#allocation4 + $0x30] sm:$0xff] %vm488_vm0, %v1666_v47  ;;  %v1266_v56 = vmul.f32 %v5408_v33, %v1243_v10  ;;  %v1543_v52 = vmax.f32 %v5365_v44, 0.0 }
 0x26e   : > { %v4137_v31 = vpop.eup %4136  ;;  %v1645_v5 = vmul.f32 0.6931472, %v4135_v12  ;;  %1861 = vst.msk [vmem:[#allocation4 + $0x48] sm:$0xff] %vm488_vm0, %v1669_v3  ;;  %4152 = vlog2.f32 %v1627_v8  ;;  %v5449_v12 = vld [vmem:[%s6178_s10] sm:$0xff]   ;;  %v5454_v3 = vld [vmem:[%s6178_s10 + $0x8] sm:$0xff]   ;;  %v5459_v8 = vld [vmem:[%s6178_s10 + $0x10] sm:$0xff]  }
 0x26f   : > { %v4139_v21 = vpop.eup %4138  ;;  %v1651_v13 = vmul.f32 0.6931472, %v4137_v31  ;;  %v1289_v2 = vadd.f32 %v5416_v55, %v1266_v56  ;;  %v5469_v31 = vld [vmem:[%s6179_s11] sm:$0x1]  }
 0x270   : > { %v4141_v58 = vpop.eup %4140  ;;  %v1668_v18 = vadd.f32 %v1645_v5, %v1540_v50  ;;  %v1626_v41 = vadd.f32 1.0, %v4139_v21  ;;  %v5474_v50 = vld [vmem:[%s6180_s12] sm:$0xff]   ;;  %v5479_v21 = vld [vmem:[%s6180_s12 + $0x8] sm:$0xff]  }
 0x271   : > { %v4143_v14 = vpop.eup %4142  ;;  %v1671_v28 = vadd.f32 %v1651_v13, %v1543_v52  ;;  %v1245_v42 = vmul.f32 %v4141_v58, %v5226_v4  ;;  %1757 = vst.msk [vmem:[#allocation2 + $0x8] sm:$0xff] %vm488_vm0, %v1289_v2  ;;  %v5484_v52 = vld [vmem:[%s6180_s12 + $0x10] sm:$0xff]   ;;  %v5489_v13 = vld [vmem:[%s6180_s12 + $0x18] sm:$0xff]   ;;  %v1546_v58 = vmax.f32 %v5385_v1, 0.0  ;;  %v5495_v2 = vld [vmem:[%s6181_s13] sm:$0x1]  }
 0x272   : > { %v4145_v63 = vpop.eup %4144  ;;  %1860 = vst.msk [vmem:[#allocation4 + $0x40] sm:$0xff] %vm488_vm0, %v1668_v18  ;;  %v1649_v34 = vmul.f32 0.6931472, %v4143_v14  ;;  %4154 = vlog2.f32 %v1626_v41 }
 0x273   : > { %v4147_v44 = vpop.eup %4146  ;;  %1863 = vst.msk [vmem:[#allocation4 + $0x58] sm:$0xff] %vm488_vm0, %v1671_v28  ;;  %v1268_v43 = vmul.f32 %v5408_v33, %v1245_v42  ;;  %v1247_v30 = vmul.f32 %v4145_v63, %v5234_v24 }
 0x274   : > { %v4149_v59 = vpop.eup %4148  ;;  %v1670_v0 = vadd.f32 %v1649_v34, %v1542_v38  ;;  %v1249_v4 = vmul.f32 %v4147_v44, %v5241_v51 }
 0x275   : > { %v4151_v27 = vpop.eup %4150  ;;  %v1655_v49 = vmul.f32 0.6931472, %v4149_v59  ;;  %v1291_v16 = vadd.f32 %v5416_v55, %v1268_v43  ;;  %v1270_v22 = vmul.f32 %v5408_v33, %v1247_v30 }
 0x276   : > { %1862 = vst.msk [vmem:[#allocation4 + $0x50] sm:$0xff] %vm488_vm0, %v1670_v0  ;;  %v1653_v60 = vmul.f32 0.6931472, %v4151_v27  ;;  %v1272_v53 = vmul.f32 %v5408_v33, %v1249_v4 }
 0x277   : > { %v1673_v24 = vadd.f32 %v1655_v49, %v1545_v37  ;;  %1759 = vst.msk [vmem:[#allocation2 + $0x18] sm:$0xff] %vm488_vm0, %v1291_v16  ;;  %v1293_v51 = vadd.f32 %v5416_v55, %v1270_v22 }
 0x278   : > { %v1672_v46 = vadd.f32 %v1653_v60, %v1544_v11  ;;  %v1295_v39 = vadd.f32 %v5416_v55, %v1272_v53  ;;  %v4153_v47 = vpop.eup %4152 }
 0x279   : > { %1865 = vst.msk [vmem:[#allocation4 + $0x68] sm:$0xff] %vm488_vm0, %v1673_v24  ;;  %1761 = vst.msk [vmem:[#allocation2 + $0x28] sm:$0xff] %vm488_vm0, %v1293_v51  ;;  %v1659_v10 = vmul.f32 0.6931472, %v4153_v47 }
 0x27a   : > { %1864 = vst.msk [vmem:[#allocation4 + $0x60] sm:$0xff] %vm488_vm0, %v1672_v46  ;;  %1763 = vst.msk [vmem:[#allocation2 + $0x38] sm:$0xff] %vm488_vm0, %v1295_v39 }
 0x27b   : > { %v1675_v56 = vadd.f32 %v1659_v10, %v1547_v48 }
 0x27c   : > { %v4155_v5 = vpop.eup %4154 }
 0x27d   : > { %v1657_v18 = vmul.f32 0.6931472, %v4155_v5  ;;  %1867 = vst.msk [vmem:[#allocation4 + $0x78] sm:$0xff] %vm488_vm0, %v1675_v56 }
 0x27f   : > { %v1674_v41 = vadd.f32 %v1657_v18, %v1546_v58 }
 0x281   : > { %1866 = vst.msk [vmem:[#allocation4 + $0x70] sm:$0xff] %vm488_vm0, %v1674_v41 }
 0x285   : > { %v1154_v14 = vpop.xlane.xlu1 %1153 }
 0x286   : > { %v1196_v28 = vmul.f32 0.03125, %v1154_v14 }
 0x288   : > { %v1212_v42 = vadd.f32 1e-05, %v1196_v28 }
 0x289   : > { %v1160_v63 = vpop.xlane.xlu1 %1159 }
 0x28a   : > { %4156 = vrsqrt.f32 %v1212_v42  ;;  %v1198_v38 = vmul.f32 0.03125, %v1160_v63 }
 0x28c   : > { %v1214_v34 = vadd.f32 1e-05, %v1198_v38 }
 0x28d   : > { %v1166_v44 = vpop.xlane.xlu1 %1165 }
 0x28e   : > { %4158 = vrsqrt.f32 %v1214_v34  ;;  %v1200_v1 = vmul.f32 0.03125, %v1166_v44 }
 0x290   : > { %v1216_v43 = vadd.f32 1e-05, %v1200_v1 }
 0x292   : > { %4160 = vrsqrt.f32 %v1216_v43 }
 0x294   : > { %v4157_v30 = vpop.eup %4156 }
 0x295   : > { %v1244_v59 = vmul.f32 %v4157_v30, %v5261_v25 }
 0x297   : > { %v1267_v0 = vmul.f32 %v5408_v33, %v1244_v59 }
 0x298   : > { %v4159_v4 = vpop.eup %4158 }
 0x299   : > { %v1290_v27 = vadd.f32 %v5416_v55, %v1267_v0  ;;  %v1246_v37 = vmul.f32 %v4159_v4, %v5264_v57 }
 0x29b   : > { %1758 = vst.msk [vmem:[#allocation2 + $0x10] sm:$0xff] %vm488_vm0, %v1290_v27  ;;  %v1269_v49 = vmul.f32 %v5408_v33, %v1246_v37 }
 0x29c   : > { %v4161_v16 = vpop.eup %4160  ;;  %v1175_v60 = vpop.xlane.xlu0 %1174 }
 0x29d   : > { %v1292_v22 = vadd.f32 %v5416_v55, %v1269_v49  ;;  %v1248_v11 = vmul.f32 %v4161_v16, %v5269_v9  ;;  %v1203_v24 = vmul.f32 0.03125, %v1175_v60 }
 0x29f   : > { %1760 = vst.msk [vmem:[#allocation2 + $0x20] sm:$0xff] %vm488_vm0, %v1292_v22  ;;  %v1271_v25 = vmul.f32 %v5408_v33, %v1248_v11  ;;  %v1219_v57 = vadd.f32 1e-05, %v1203_v24 }
 0x2a0   : > { %v1181_v51 = vpop.xlane.xlu0 %1180 }
 0x2a1   : > { %v1294_v53 = vadd.f32 %v5416_v55, %v1271_v25  ;;  %4162 = vrsqrt.f32 %v1219_v57  ;;  %v1205_v46 = vmul.f32 0.03125, %v1181_v51 }
 0x2a3   : > { %1762 = vst.msk [vmem:[#allocation2 + $0x30] sm:$0xff] %vm488_vm0, %v1294_v53  ;;  %v1221_v39 = vadd.f32 1e-05, %v1205_v46 }
 0x2a4   : > { %v1187_v47 = vpop.xlane.xlu0 %1186 }
 0x2a5   : > { %4164 = vrsqrt.f32 %v1221_v39  ;;  %v1207_v10 = vmul.f32 0.03125, %v1187_v47 }
 0x2a7   : > { %v1223_v5 = vadd.f32 1e-05, %v1207_v10 }
 0x2a8   : > { %v1172_v48 = vpop.xlane.xlu1 %1171 }
 0x2a9   : > { %v1202_v9 = vmul.f32 0.03125, %v1172_v48  ;;  %4166 = vrsqrt.f32 %v1223_v5 }
 0x2ab   : > { %v1218_v56 = vadd.f32 1e-05, %v1202_v9  ;;  %v4163_v41 = vpop.eup %4162 }
 0x2ac   : > { %v1178_v58 = vpop.xlane.xlu1 %1177  ;;  %v1251_v28 = vmul.f32 %v4163_v41, %v5279_v7  ;;  %v1193_v42 = vpop.xlane.xlu0 %1192 }
 0x2ad   : > { %v1204_v18 = vmul.f32 0.03125, %v1178_v58  ;;  %4168 = vrsqrt.f32 %v1218_v56  ;;  %v1209_v38 = vmul.f32 0.03125, %v1193_v42 }
 0x2ae   : > { %v1274_v44 = vmul.f32 %v5408_v33, %v1251_v28 }
 0x2af   : > { %v1220_v14 = vadd.f32 1e-05, %v1204_v18  ;;  %v4165_v1 = vpop.eup %4164  ;;  %v1225_v43 = vadd.f32 1e-05, %v1209_v38 }
 0x2b0   : > { %v1184_v63 = vpop.xlane.xlu1 %1183  ;;  %v1297_v59 = vadd.f32 %v5416_v55, %v1274_v44  ;;  %v1253_v0 = vmul.f32 %v4165_v1, %v5284_v62  ;;  %v1813_v4 = vpop.permute.xlu0 %1812 }
 0x2b1   : > { %4170 = vrsqrt.f32 %v1220_v14  ;;  %v1206_v34 = vmul.f32 0.03125, %v1184_v63  ;;  %1848 = vst.msk [vmem:[#allocation3 + $0x60] sm:$0xff] %vm488_vm0, %v1813_v4 }
 0x2b2   : > { %4172 = vrsqrt.f32 %v1225_v43  ;;  %1765 = vst.msk [vmem:[#allocation2 + $0x48] sm:$0xff] %vm488_vm0, %v1297_v59  ;;  %v1276_v37 = vmul.f32 %v5408_v33, %v1253_v0 }
 0x2b3   : > { %v1222_v30 = vadd.f32 1e-05, %v1206_v34  ;;  %v4167_v49 = vpop.eup %4166 }
 0x2b4   : > { %v1148_v27 = vpop.xlane.xlu1 %1147  ;;  %v1299_v11 = vadd.f32 %v5416_v55, %v1276_v37  ;;  %v1255_v25 = vmul.f32 %v4167_v49, %v5293_v19  ;;  %v1817_v60 = vpop.permute.xlu0 %1816 }
 0x2b5   : > { %v1194_v7 = vmul.f32 0.03125, %v1148_v27  ;;  %4174 = vrsqrt.f32 %v1222_v30  ;;  %1850 = vst.msk [vmem:[#allocation3 + $0x70] sm:$0xff] %vm488_vm0, %v1817_v60 }
 0x2b6   : > { %1767 = vst.msk [vmem:[#allocation2 + $0x58] sm:$0xff] %vm488_vm0, %v1299_v11  ;;  %v1278_v53 = vmul.f32 %v5408_v33, %v1255_v25 }
 0x2b7   : > { %v1210_v16 = vadd.f32 1e-05, %v1194_v7  ;;  %v4169_v22 = vpop.eup %4168 }
 0x2b8   : > { %v1250_v62 = vmul.f32 %v4169_v22, %v5290_v61  ;;  %v1301_v51 = vadd.f32 %v5416_v55, %v1278_v53 }
 0x2b9   : > { %4176 = vrsqrt.f32 %v1210_v16 }
 0x2ba   : > { %v1273_v57 = vmul.f32 %v5408_v33, %v1250_v62  ;;  %1769 = vst.msk [vmem:[#allocation2 + $0x68] sm:$0xff] %vm488_vm0, %v1301_v51 }
 0x2bb   : > { %v4171_v24 = vpop.eup %4170 }
 0x2bc   : > { %v1252_v46 = vmul.f32 %v4171_v24, %v5301_v6  ;;  %v1296_v39 = vadd.f32 %v5416_v55, %v1273_v57  ;;  %v4173_v19 = vpop.eup %4172 }
 0x2bd   : > { %v1257_v10 = vmul.f32 %v4173_v19, %v5314_v36 }
 0x2be   : > { %v1275_v61 = vmul.f32 %v5408_v33, %v1252_v46  ;;  %1764 = vst.msk [vmem:[#allocation2 + $0x40] sm:$0xff] %vm488_vm0, %v1296_v39 }
 0x2bf   : > { %v4175_v47 = vpop.eup %4174  ;;  %v1280_v6 = vmul.f32 %v5408_v33, %v1257_v10 }
 0x2c0   : > { %v1298_v48 = vadd.f32 %v5416_v55, %v1275_v61  ;;  %v1254_v9 = vmul.f32 %v4175_v47, %v5311_v45 }
 0x2c1   : > { %v1303_v58 = vadd.f32 %v5416_v55, %v1280_v6 }
 0x2c2   : > { %1766 = vst.msk [vmem:[#allocation2 + $0x50] sm:$0xff] %vm488_vm0, %v1298_v48  ;;  %v1277_v56 = vmul.f32 %v5408_v33, %v1254_v9 }
 0x2c3   : > { %v4177_v5 = vpop.eup %4176  ;;  %1771 = vst.msk [vmem:[#allocation2 + $0x78] sm:$0xff] %vm488_vm0, %v1303_v58 }
 0x2c4   : > { %v1242_v18 = vmul.f32 %v4177_v5, %v5308_v23  ;;  %v1300_v41 = vadd.f32 %v5416_v55, %v1277_v56 }
 0x2c6   : > { %v1265_v14 = vmul.f32 %v5408_v33, %v1242_v18  ;;  %1768 = vst.msk [vmem:[#allocation2 + $0x60] sm:$0xff] %vm488_vm0, %v1300_v41 }
 0x2c8   : > { %v1288_v45 = vadd.f32 %v5416_v55, %v1265_v14 }
 0x2ca   : > { %1756 = vst.msk [vmem:[#allocation2] sm:$0xff] %vm488_vm0, %v1288_v45 }
 0x2e5   : > { %v1190_v36 = vpop.xlane.xlu1 %1189 }
 0x2e6   : > { %v1208_v28 = vmul.f32 0.03125, %v1190_v36 }
 0x2e8   : > { %v1224_v42 = vadd.f32 1e-05, %v1208_v28 }
 0x2e9   : > { %v1815_v63 = vpop.permute.xlu1 %1814 }
 0x2ea   : > { %4178 = vrsqrt.f32 %v1224_v42  ;;  %1849 = vst.msk [vmem:[#allocation3 + $0x68] sm:$0xff] %vm488_vm0, %v1815_v63 }
 0x2ed   : > { %v1819_v23 = vpop.permute.xlu1 %1818 }
 0x2ee   : > { %1851 = vst.msk [vmem:[#allocation3 + $0x78] sm:$0xff] %vm488_vm0, %v1819_v23 }
 0x2f4   : > { %v4179_v38 = vpop.eup %4178 }
 0x2f5   : > { %v1256_v34 = vmul.f32 %v4179_v38, %v5362_v29 }
 0x2f7   : > { %v1279_v44 = vmul.f32 %v5408_v33, %v1256_v34 }
 0x2f9   : > { %v1302_v1 = vadd.f32 %v5416_v55, %v1279_v44 }
 0x2fb   : > { %1770 = vst.msk [vmem:[#allocation2 + $0x70] sm:$0xff] %vm488_vm0, %v1302_v1 }
 0x2fc LB: >> { %v3861_v29 = vpack.c.bf16 %v4338_v3, %v4342_v12  ;;  %v3865_v33 = vpack.c.bf16 %v4330_v40, %v4334_v8  ;;  %s5621_s17 = sshll.u32 %s4346_s16, 6  ;;  %v2430_v43 = vld [vmem:[%s6171_s3] sm:$0xff]  ;;  %v2431_v30 = vld [vmem:[%s6171_s3 + $0x8] sm:$0xff]  ;;  %v4350_v27 = vmov 0.0|0.0   ;;  %v2432_v7 = vld [vmem:[%s6171_s3 + $0x10] sm:$0xff]  ;;  %vm4351_vm8 = vmmov 0   ;;  %s4346_s16 = sphi %s5581_s16, %s1883_s16   ;;  %v4342_v12 = vphi %v5449_v12, %v3035_v12   ;;  %v4338_v3 = vphi %v5454_v3, %v3036_v3   ;;  %v4334_v8 = vphi %v5459_v8, %v3037_v8   ;;  %v4330_v40 = vphi %v5464_v40, %v3038_v40   ;;  %v4326_v31 = vphi %v5469_v31, %v3060_v31   ;;  %v4322_v50 = vphi %v5474_v50, %v3043_v50   ;;  %v4318_v21 = vphi %v5479_v21, %v3044_v21   ;;  %v4314_v52 = vphi %v5484_v52, %v3045_v52   ;;  %v4310_v13 = vphi %v5489_v13, %v3046_v13   ;;  %v4306_v2 = vphi %v5495_v2, %v3063_v2  }
 0x2fd   : >> { %s1895_s18 = scalar_lea.vmem [#allocation2], %s5621_s17  ;;  %v3882_v0 = vpack.c.bf16 %v2431_v30, %v2430_v43  ;;  %v2433_v37 = vld [vmem:[%s6171_s3 + $0x18] sm:$0xff]  ;;  %s3414_s28 = scalar_lea.vmem %s4455_s26, %s5621_s17  ;;  %v4352_v62 = vmov 0.0   ;;  %vm3870_vm9 = vmpackc.low %vm488_vm0, %vm488_vm0  ;;  %v5658_v24 = vpack.c.bf16 %v4318_v21, %v4322_v50  ;;  %v5662_v57 = vpack.c.bf16 %v4310_v13, %v4314_v52  ;;  %v2507_v51 = vld [vmem:[%s6172_s4] sm:$0xff] }
 0x2fe   : >> { %3862 = vmatprep.subr.bf16.mxu0 %v3861_v29  ;;  %v3885_v16 = vpack.c.bf16 %v2433_v37, %v2432_v7  ;;  %v3545_v53 = vld [vmem:[%s3414_s28 + $0x3f] sm:$0x1]  ;;  %v2508_v46 = vld [vmem:[%s6172_s4 + $0x8] sm:$0xff]  ;;  %v2509_v39 = vld [vmem:[%s6172_s4 + $0x10] sm:$0xff]  ;;  %v6188_v48 = vsub.s32 0, %v4500_v26  ;;  %vm2863_vm3 = vcmask 1040384  }
 0x2ff   : >> { %3864 = vmatpush3.bf16.msra.mxu0 %v3861_v29  ;;  %3871 = vmatprep.subr.msk.bf16.mxu1 %vm3870_vm9, %v5658_v24  ;;  %v3888_v61 = vpack.c.bf16 %v2508_v46, %v2507_v51  ;;  %v2510_v19 = vld [vmem:[%s6172_s4 + $0x18] sm:$0xff]  ;;  %s5866_s25 = scalar_lea.vmem [#allocation3], %s5621_s17  ;;  %s5871_s27 = scalar_lea.vmem [#allocation5], %s5621_s17 }
 0x300   : >> { %3866 = vmatprep.subr.bf16.mxu0 %v3865_v33  ;;  %3874 = vmatpush3.bf16.xpose.msk.msra.mxu1 %vm3870_vm9, %v5658_v24  ;;  %v3891_v47 = vpack.c.bf16 %v2510_v19, %v2509_v39  ;;  %v1926_v10 = vrot.slane %v4326_v31, %v6188_v48  ;;  %s4354_s28 = smov 96   ;;  %s5984_s30 = scalar_lea.vmem [#allocation4], %s5621_s17 }
 0x301   : >> { %3877 = vmatprep.subr.msk.bf16.mxu1 %vm3870_vm9, %v5662_v57  ;;  %s4355_s17 = smov 32   ;;  %s1883_s16 = sadd.s32 1, %s4346_s16  }
 0x302   : >> { %v1896_v55 = vld [vmem:[%s1895_s18] sm:$0xff]  ;;  %v1897_v59 = vld [vmem:[%s1895_s18 + $0x8] sm:$0xff]  ;;  %v1898_v4 = vld [vmem:[%s1895_s18 + $0x10] sm:$0xff]  ;;  %p1880_p4 = scmp.ge.s32.totalorder %s1883_s16, 2  }
 0x303   : >> { %3744 = vmatprep.mubr.msk.f32.mxu0 %vm488_vm0, %v1896_v55  ;;  %3868 = vmatpush3.bf16.msra.mxu0 %v3865_v33  ;;  %v1899_v49 = vld [vmem:[%s1895_s18 + $0x18] sm:$0xff]  ;;  %v1900_v22 = vld [vmem:[%s1895_s18 + $0x20] sm:$0xff]  ;;  %v1901_v11 = vld [vmem:[%s1895_s18 + $0x28] sm:$0xff]  ;;  %s4356_s16 = smov (%p1880_p4), 64  }
 0x304   : >> { %3881 = vmatprep.subr.bf16.mxu0 %v4350_v27  ;;  %v1902_v25 = vld [vmem:[%s1895_s18 + $0x30] sm:$0xff]  ;;  %v1903_v60 = vld [vmem:[%s1895_s18 + $0x38] sm:$0xff] }
 0x306   : >> { %3745 = vmatmul.mubr.msk.f32.vlgmr.msra.gmra.mrb[0].mxu0 %vm488_vm0, %v1897_v59 }
 0x307   : >> { %3747 = vmatprep.mubr.msk.f32.mxu0 %vm488_vm0, %v1898_v4  ;;  %3883 = vmatpush3.bf16.msra.mxu0 %v3882_v0 }
 0x308   : >> { %3884 = vmatprep.subr.bf16.mxu0 %v4350_v27  ;;  %3880 = vmatpush3.bf16.xpose.msk.msra.mxu1 %vm3870_vm9, %v5662_v57 }
 0x30a   : >> { %3748 = vmatmul.mubr.msk.f32.gmra.mrb[2].mxu0 %vm488_vm0, %v1899_v49 }
 0x30b   : >> { %3750 = vmatprep.mubr.msk.f32.mxu0 %vm488_vm0, %v1900_v22  ;;  %3886 = vmatpush3.bf16.msra.mxu0 %v3885_v16 }
 0x30c   : >> { %3887 = vmatprep.subr.bf16.mxu0 %v4350_v27 }
 0x30e   : >> { %3751 = vmatmul.mubr.msk.f32.gmra.mrb[4].mxu0 %vm488_vm0, %v1901_v11 }
 0x30f   : >> { %3753 = vmatprep.mubr.msk.f32.mxu0 %vm488_vm0, %v1902_v25 }
 0x312   : >> { %3754 = vmatmul.mubr.msk.f32.gmra.mrb[6].mxu0 %vm488_vm0, %v1903_v60 }
 0x313   : >> { %3784 = vmatprep.mubr.msk.f32.mxu0 %vm4351_vm8, %v4352_v62 }
 0x316   : >> { %3785 = vmatmul.mubr.msk.f32.vlgmr.msra.gmra.mrb[8].mxu0 %vm488_vm0, %v3545_v53 }
 0x317   : >> { %3795 = vmatprep.mubr.msk.f32.mxu0 %vm4351_vm8, %v4352_v62  ;;  %3889 = vmatpush3.bf16.msra.mxu0 %v3888_v61 }
 0x318   : >> { %3890 = vmatprep.subr.bf16.mxu0 %v4350_v27 }
 0x31b   : >> { %3892 = vmatpush3.bf16.msra.mxu0 %v3891_v47 }
 0x31c   : >> { %3893 = vmatprep.subr.bf16.mxu0 %v4350_v27 }
 0x3d9   : >> { %v3746_v9 = vpop.f32.mrb[0].mxu0 }
 0x3da   : >> { %v2024_v6 = vadd.f32 %v3746_v9, %v1926_v10  ;;  %v2018_v5 = vpop.f32.mrb[1].mxu0 }
 0x3db   : >> { %v2019_v56 = vadd.f32 %v2018_v5, %v1926_v10  ;;  %v6189_v5 = vmov -1.0  }
 0x3dc   : >> { %v2066_v58 = vmul.f32 0.70710677, %v2024_v6  ;;  %v5712_v9 = vmul.f32 0.5, %v2024_v6 }
 0x3dd   : >> { %v5686_v18 = vmul.f32 0.70710677, %v2019_v56  ;;  %v3749_v41 = vpop.f32.mrb[2].mxu0 }
 0x3de   : >> { %v2090_v14 = vand.u32 2147483647, %v2066_v58  ;;  %v2034_v45 = vadd.f32 %v3749_v41, %v1926_v10  ;;  %v2028_v36 = vpop.f32.mrb[3].mxu0  ;;  %vm2074_vm10 = vcmp.ge.f32.partialorder %v2066_v58, 0.0  ;;  %v5717_v41 = vmul.f32 0.5, %v2019_v56 }
 0x3df   : >> { %v2089_v28 = vand.u32 2147483647, %v5686_v18  ;;  %v2029_v42 = vadd.f32 %v2028_v36, %v1926_v10  ;;  %v5715_v58 = vsel %vm2074_vm10, 1.0, %v6189_v5  ;;  %vm2073_vm13 = vcmp.ge.f32.partialorder %v5686_v18, 0.0 }
 0x3e0   : >> { %v2098_v63 = vmul.f32 0.3275911, %v2090_v14  ;;  %v5689_v23 = vmul.f32 0.70710677, %v2034_v45  ;;  %v2202_v30 = vsub.f32 0.0, %v2090_v14  ;;  %vm2602_vm10 = vcmask 253952  }
 0x3e1   : >> { %v2097_v38 = vmul.f32 0.3275911, %v2089_v28  ;;  %v5691_v34 = vmul.f32 0.70710677, %v2029_v42  ;;  %v3752_v29 = vpop.f32.mrb[4].mxu0  ;;  %v2201_v4 = vsub.f32 0.0, %v2089_v28 }
 0x3e2   : >> { %v2106_v44 = vadd.f32 1.0, %v2098_v63  ;;  %v2092_v1 = vand.u32 2147483647, %v5689_v23  ;;  %v2038_v55 = vpop.f32.mrb[5].mxu0  ;;  %v5697_v37 = vadd.f32 %v3752_v29, %v1926_v10  ;;  %v2210_v25 = vmul.f32 %v2202_v30, %v2090_v14 }
 0x3e3   : >> { %v2105_v33 = vadd.f32 1.0, %v2097_v38  ;;  %v5695_v59 = vand.u32 2147483647, %v5691_v34  ;;  %v5700_v22 = vadd.f32 %v2038_v55, %v1926_v10  ;;  %v2209_v46 = vmul.f32 %v2201_v4, %v2089_v28 }
 0x3e4   : >> { %v2100_v43 = vmul.f32 0.3275911, %v2092_v1  ;;  %4180 = vrcp.f32 %v2106_v44  ;;  %v5703_v11 = vmul.f32 0.70710677, %v5697_v37  ;;  %v2204_v39 = vsub.f32 0.0, %v2092_v1 }
 0x3e5   : >> { %v3755_v0 = vpop.f32.mrb[6].mxu0  ;;  %4182 = vrcp.f32 %v2105_v33  ;;  %v2099_v16 = vmul.f32 0.3275911, %v5695_v59  ;;  %v5706_v53 = vmul.f32 0.70710677, %v5700_v22  ;;  %v5722_v14 = vmul.f32 0.5, %v2034_v45 }
 0x3e6   : >> { %v2108_v7 = vadd.f32 1.0, %v2100_v43  ;;  %v2048_v49 = vpop.f32.mrb[7].mxu0  ;;  %v2094_v61 = vand.u32 2147483647, %v5703_v11  ;;  %v5709_v19 = vadd.f32 %v3755_v0, %v1926_v10  ;;  %vm2076_vm11 = vcmp.ge.f32.partialorder %v5689_v23, 0.0 }
 0x3e7   : >> { %v2107_v60 = vadd.f32 1.0, %v2099_v16  ;;  %v2093_v6 = vand.u32 2147483647, %v5706_v53  ;;  %v2219_v28 = vmul.f32 1.442695, %v2210_v25  ;;  %vm2075_vm12 = vcmp.ge.f32.partialorder %v5691_v34, 0.0 }
 0x3e8   : >> { %4184 = vrcp.f32 %v2108_v7  ;;  %v2102_v36 = vmul.f32 0.3275911, %v2094_v61  ;;  %v5729_v56 = vmul.f32 0.70710677, %v5709_v19  ;;  %v5731_v63 = vadd.f32 %v2048_v49, %v1926_v10 }
 0x3e9   : >> { %v2503_v51 = vpop.f32.mrb[8].mxu0  ;;  %4186 = vrcp.f32 %v2107_v60  ;;  %v2212_v38 = vmul.f32 %v2204_v39, %v2092_v1  ;;  %v2101_v45 = vmul.f32 0.3275911, %v2093_v6  ;;  %v5733_v44 = vmul.f32 0.5, %v2029_v42 }
 0x3ea   : >> { %3796 = vmatmul.mubr.msk.f32.vlgmr.msra.gmra.mrb[10].mxu0 %vm488_vm0, %v2503_v51  ;;  %v3786_v47 = vpop.f32.mrb[9].mxu0  ;;  %v2203_v29 = vsub.f32 0.0, %v5695_v59  ;;  %v2096_v33 = vand.u32 2147483647, %v5729_v56  ;;  %v2206_v10 = vsub.f32 0.0, %v2094_v61  ;;  %v2205_v30 = vsub.f32 0.0, %v2093_v6 }
 0x3eb   : >> { %3895 = vmatpush3.bf16.msra.mxu0 %v5658_v24  ;;  %3814 = vmatprep.mubr.msk.f32.mxu0 %vm4351_vm8, %v4352_v62  ;;  %v2217_v24 = vmul.f32 1.442695, %v2209_v46  ;;  %v2110_v62 = vadd.f32 1.0, %v2102_v36  ;;  %v2109_v43 = vadd.f32 1.0, %v2101_v45  ;;  %v5749_v42 = vsel %vm2076_vm11, 1.0, %v6189_v5 }
 0x3ec   : >> { %3896 = vmatprep.subr.bf16.mxu0 %v4350_v27  ;;  %v5738_v27 = vmul.f32 0.70710677, %v5731_v63  ;;  %v2104_v0 = vmul.f32 0.3275911, %v2096_v33  ;;  %v2223_v7 = vmul.f32 1.442695, %v2212_v38  ;;  %v2211_v25 = vmul.f32 %v2203_v29, %v5695_v59 }
 0x3ed   : >> { %4188 = vrcp.f32 %v2110_v62  ;;  %v2208_v49 = vsub.f32 0.0, %v2096_v33  ;;  %vm2078_vm14 = vcmp.ge.f32.partialorder %v5703_v11, 0.0  ;;  %v2214_v60 = vmul.f32 %v2206_v10, %v2094_v61 }
 0x3ee   : >> { %v5741_v55 = vpop.eup %4180  ;;  %4190 = vpow2.f32 %v2219_v28  ;;  %v2095_v16 = vand.u32 2147483647, %v5738_v27  ;;  %v2112_v23 = vadd.f32 1.0, %v2104_v0  ;;  %v2213_v51 = vmul.f32 %v2205_v30, %v2093_v6 }
 0x3ef   : >> { %3898 = vmatpush3.bf16.msra.mxu0 %v5662_v57  ;;  %v5743_v1 = vpop.eup %4182  ;;  %v5754_v57 = vsel %vm2075_vm12, 1.0, %v6189_v5  ;;  %4192 = vpow2.f32 %v2217_v24  ;;  %v2130_v36 = vmul.f32 1.0614054, %v5741_v55  ;;  %v2216_v24 = vmul.f32 %v2208_v49, %v2096_v33 }
 0x3f0   : >> { %4194 = vrcp.f32 %v2109_v43  ;;  %v2103_v46 = vmul.f32 0.3275911, %v2095_v16  ;;  %v2129_v34 = vmul.f32 1.0614054, %v5743_v1  ;;  %v2207_v47 = vsub.f32 0.0, %v2095_v16 }
 0x3f1   : >> { %4196 = vrcp.f32 %v2112_v23  ;;  %v2221_v45 = vmul.f32 1.442695, %v2211_v25  ;;  %v2138_v61 = vadd.f32 -1.4531521, %v2130_v36  ;;  %v2227_v29 = vmul.f32 1.442695, %v2214_v60 }
 0x3f2   : >> { %v5756_v4 = vpop.eup %4184  ;;  %v2111_v38 = vadd.f32 1.0, %v2103_v46  ;;  %v2137_v59 = vadd.f32 -1.4531521, %v2129_v34  ;;  %4198 = vpow2.f32 %v2223_v7  ;;  %v5771_v30 = vsel %vm2078_vm14, 1.0, %v6189_v5 }
 0x3f3   : >> { %v5762_v39 = vpop.eup %4186  ;;  %v2132_v28 = vmul.f32 1.0614054, %v5756_v4  ;;  %v2215_v0 = vmul.f32 %v2207_v47, %v2095_v16  ;;  %v2146_v33 = vmul.f32 %v5741_v55, %v2138_v61  ;;  %v2225_v7 = vmul.f32 1.442695, %v2213_v51 }
 0x3f4   : >> { %v2131_v62 = vmul.f32 1.0614054, %v5762_v39  ;;  %4200 = vrcp.f32 %v2111_v38  ;;  %v2145_v10 = vmul.f32 %v5743_v1, %v2137_v59  ;;  %v2231_v25 = vmul.f32 1.442695, %v2216_v24 }
 0x3f5   : >> { %v2140_v6 = vadd.f32 -1.4531521, %v2132_v28  ;;  %4202 = vpow2.f32 %v2221_v45  ;;  %v2154_v36 = vadd.f32 1.4214138, %v2146_v33  ;;  %v5782_v16 = vsel %vm2073_vm13, 1.0, %v6189_v5 }
 0x3f6   : >> { %v2139_v43 = vadd.f32 -1.4531521, %v2131_v62  ;;  %v2153_v46 = vadd.f32 1.4214138, %v2145_v10  ;;  %4204 = vpow2.f32 %v2227_v29  ;;  %v2229_v59 = vmul.f32 1.442695, %v2215_v0 }
 0x3f7   : >> { %v2148_v49 = vmul.f32 %v5756_v4, %v2140_v6  ;;  %v5775_v23 = vpop.eup %4188  ;;  %v2162_v62 = vmul.f32 %v5741_v55, %v2154_v36  ;;  %4206 = vpow2.f32 %v2225_v7  ;;  %vm2077_vm15 = vcmp.ge.f32.partialorder %v5706_v53, 0.0 }
 0x3f8   : >> { %v2147_v60 = vmul.f32 %v5762_v39, %v2139_v43  ;;  %v4191_v34 = vpop.eup %4190  ;;  %v2134_v11 = vmul.f32 1.0614054, %v5775_v23  ;;  %v2161_v47 = vmul.f32 %v5743_v1, %v2153_v46  ;;  %4208 = vpow2.f32 %v2231_v25 }
 0x3f9   : >> { %v2156_v28 = vadd.f32 1.4214138, %v2148_v49  ;;  %v4193_v38 = vpop.eup %4192  ;;  %v2170_v43 = vadd.f32 -0.28449672, %v2162_v62  ;;  %4210 = vpow2.f32 %v2229_v59  ;;  %vm2080_vm1 = vcmp.ge.f32.partialorder %v5729_v56, 0.0 }
 0x3fa   : >> { %v2155_v51 = vadd.f32 1.4214138, %v2147_v60  ;;  %v5785_v24 = vpop.eup %4194  ;;  %v2142_v61 = vadd.f32 -1.4531521, %v2134_v11  ;;  %v2169_v6 = vadd.f32 -0.28449672, %v2161_v47 }
 0x3fb   : >> { %v2164_v45 = vmul.f32 %v5756_v4, %v2156_v28  ;;  %v2133_v10 = vmul.f32 1.0614054, %v5785_v24  ;;  %v5791_v18 = vpop.eup %4196  ;;  %v2178_v7 = vmul.f32 %v5741_v55, %v2170_v43  ;;  %vm2079_vm2 = vcmp.ge.f32.partialorder %v5738_v27, 0.0 }
 0x3fc   : >> { %v2163_v29 = vmul.f32 %v5762_v39, %v2155_v51  ;;  %v2150_v49 = vmul.f32 %v5775_v23, %v2142_v61  ;;  %v2177_v0 = vmul.f32 %v5743_v1, %v2169_v6  ;;  %v2136_v36 = vmul.f32 1.0614054, %v5791_v18  ;;  %v4199_v28 = vpop.eup %4198 }
 0x3fd   : >> { %v2172_v33 = vadd.f32 -0.28449672, %v2164_v45  ;;  %v2141_v60 = vadd.f32 -1.4531521, %v2133_v10  ;;  %v2186_v6 = vadd.f32 0.2548296, %v2178_v7 }
 0x3fe   : >> { %v2171_v46 = vadd.f32 -0.28449672, %v2163_v29  ;;  %v2158_v47 = vadd.f32 1.4214138, %v2150_v49  ;;  %v5798_v51 = vpop.eup %4200  ;;  %v2185_v25 = vadd.f32 0.2548296, %v2177_v0 }
 0x3ff   : >> { %v2180_v11 = vmul.f32 %v5756_v4, %v2172_v33  ;;  %v2149_v45 = vmul.f32 %v5785_v24, %v2141_v60  ;;  %v2144_v61 = vadd.f32 -1.4531521, %v2136_v36  ;;  %v2135_v48 = vmul.f32 1.0614054, %v5798_v51  ;;  %v4203_v49 = vpop.eup %4202 }
 0x400   : >> { %v2179_v62 = vmul.f32 %v5762_v39, %v2171_v46  ;;  %v2166_v10 = vmul.f32 %v5775_v23, %v2158_v47  ;;  %v2193_v59 = vmul.f32 %v5743_v1, %v2185_v25  ;;  %v2194_v0 = vmul.f32 %v5741_v55, %v2186_v6  ;;  %v4205_v36 = vpop.eup %4204 }
 0x401   : >> { %v2188_v29 = vadd.f32 0.2548296, %v2180_v11  ;;  %v2157_v5 = vadd.f32 1.4214138, %v2149_v45  ;;  %v2152_v33 = vmul.f32 %v5791_v18, %v2144_v61  ;;  %v2143_v60 = vadd.f32 -1.4531521, %v2135_v48  ;;  %v4207_v45 = vpop.eup %4206 }
 0x402   : >> { %v2187_v43 = vadd.f32 0.2548296, %v2179_v62  ;;  %v2174_v54 = vadd.f32 -0.28449672, %v2166_v10  ;;  %v2233_v7 = vmul.f32 %v4193_v38, %v2193_v59  ;;  %v2234_v20 = vmul.f32 %v4191_v34, %v2194_v0  ;;  %v4209_v38 = vpop.eup %4208 }
 0x403   : >> { %v2196_v46 = vmul.f32 %v5756_v4, %v2188_v29  ;;  %v2165_v47 = vmul.f32 %v5785_v24, %v2157_v5  ;;  %v2160_v17 = vadd.f32 1.4214138, %v2152_v33  ;;  %v2151_v62 = vmul.f32 %v5798_v51, %v2143_v60  ;;  %v4211_v59 = vpop.eup %4210 }
 0x404   : >> { %v2195_v11 = vmul.f32 %v5762_v39, %v2187_v43  ;;  %v2182_v25 = vmul.f32 %v5775_v23, %v2174_v54  ;;  %v2241_v55 = vsub.f32 1.0, %v2233_v7  ;;  %v2242_v6 = vsub.f32 1.0, %v2234_v20 }
 0x405   : >> { %v2236_v1 = vmul.f32 %v4199_v28, %v2196_v46  ;;  %v2173_v61 = vadd.f32 -0.28449672, %v2165_v47  ;;  %v2168_v48 = vmul.f32 %v5791_v18, %v2160_v17  ;;  %v2159_v5 = vadd.f32 1.4214138, %v2151_v62 }
 0x406   : >> { %v2235_v4 = vmul.f32 %v4203_v49, %v2195_v11  ;;  %v2190_v29 = vadd.f32 0.2548296, %v2182_v25  ;;  %v2249_v34 = vmul.f32 %v2241_v55, %v5782_v16  ;;  %v2250_v43 = vmul.f32 %v2242_v6, %v5715_v58 }
 0x407   : >> { %v2244_v39 = vsub.f32 1.0, %v2236_v1  ;;  %v2181_v54 = vmul.f32 %v5785_v24, %v2173_v61  ;;  %v2176_v10 = vadd.f32 -0.28449672, %v2168_v48  ;;  %v2167_v17 = vmul.f32 %v5798_v51, %v2159_v5 }
 0x408   : >> { %v2243_v28 = vsub.f32 1.0, %v2235_v4  ;;  %v2198_v49 = vmul.f32 %v5775_v23, %v2190_v29  ;;  %v2257_v0 = vadd.f32 1.0, %v2249_v34  ;;  %v2258_v16 = vadd.f32 1.0, %v2250_v43 }
 0x409   : >> { %v2252_v33 = vmul.f32 %v2244_v39, %v5749_v42  ;;  %v2189_v46 = vadd.f32 0.2548296, %v2181_v54  ;;  %v2184_v60 = vmul.f32 %v5791_v18, %v2176_v10  ;;  %v2175_v47 = vadd.f32 -0.28449672, %v2167_v17 }
 0x40a   : >> { %v2251_v20 = vmul.f32 %v2243_v28, %v5754_v57  ;;  %v2238_v11 = vmul.f32 %v4205_v36, %v2198_v49  ;;  %v2265_v1 = vmul.f32 %v2257_v0, %v5717_v41  ;;  %v2266_v23 = vmul.f32 %v2258_v16, %v5712_v9 }
 0x40b   : >> { %v2260_v7 = vadd.f32 1.0, %v2252_v33  ;;  %v2197_v58 = vmul.f32 %v5785_v24, %v2189_v46  ;;  %v2192_v42 = vadd.f32 0.2548296, %v2184_v60  ;;  %v2183_v57 = vmul.f32 %v5798_v51, %v2175_v47 }
 0x40c   : >> { %v2259_v25 = vadd.f32 1.0, %v2251_v20  ;;  %v2246_v62 = vsub.f32 1.0, %v2238_v11  ;;  %3764 = vmatprep.mubr.msk.f32.mxu1 %vm488_vm0, %v2265_v1  ;;  %v2796_v55 = vsel %vm488_vm0, %v2265_v1, 0.0  ;;  %v2797_v24 = vsel %vm488_vm0, %v2266_v23, 0.0 }
 0x40d   : >> { %v2237_v4 = vmul.f32 %v4207_v45, %v2197_v58  ;;  %v2200_v41 = vmul.f32 %v5791_v18, %v2192_v42  ;;  %3765 = vmatmul.mubr.msk.f32.vlgmr.msra.gmra.mrb[0].mxu1 %vm488_vm0, %v2266_v23  ;;  %v2268_v61 = vmul.f32 %v2260_v7, %v5722_v14  ;;  %v2191_v48 = vadd.f32 0.2548296, %v2183_v57 }
 0x40e   : >> { %v2267_v36 = vmul.f32 %v2259_v25, %v5733_v44  ;;  %v2254_v9 = vmul.f32 %v2246_v62, %v5771_v30  ;;  %v2798_v6 = vadd.f32 %v2797_v24, %v2796_v55  ;;  %v2062_v44 = vmul.f32 0.5, %v5697_v37 }
 0x40f   : >> { %v2245_v29 = vsub.f32 1.0, %v2237_v4  ;;  %v2240_v5 = vmul.f32 %v4209_v38, %v2200_v41  ;;  %v6272_v45 = vmov -1.0   ;;  %v2199_v34 = vmul.f32 %v5798_v51, %v2191_v48 }
 0x410   : >> { %3767 = vmatprep.mubr.msk.f32.mxu1 %vm488_vm0, %v2267_v36  ;;  %v2799_v39 = vsel %vm488_vm0, %v2267_v36, 0.0  ;;  %v2085_v18 = vsel %vm2077_vm15, 1.0, %v6272_v45  ;;  %v2262_v54 = vadd.f32 1.0, %v2254_v9  ;;  %v2088_v10 = vsel %vm2080_vm1, 1.0, %v6272_v45 }
 0x411   : >> { %v2800_v28 = vadd.f32 %v2799_v39, %v2798_v6  ;;  %v2253_v14 = vmul.f32 %v2245_v29, %v2085_v18  ;;  %v2248_v30 = vsub.f32 1.0, %v2240_v5  ;;  %3768 = vmatmul.mubr.msk.f32.gmra.mrb[2].mxu1 %vm488_vm0, %v2268_v61  ;;  %v2801_v37 = vsel %vm488_vm0, %v2268_v61, 0.0  ;;  %v1906_v6 = vld [vmem:[%s5866_s25 + $0x8] sm:$0xff]  ;;  %v1905_v29 = vld [vmem:[%s5866_s25] sm:$0xff] }
 0x412   : >> { %v2239_v38 = vmul.f32 %v4211_v59, %v2199_v34  ;;  %v2061_v53 = vmul.f32 0.5, %v5700_v22  ;;  %v2087_v17 = vsel %vm2079_vm2, 1.0, %v6272_v45  ;;  %v2270_v20 = vmul.f32 %v2262_v54, %v2062_v44 }
 0x413   : >> { %v2802_v43 = vadd.f32 %v2801_v37, %v2800_v28  ;;  %v2261_v33 = vadd.f32 1.0, %v2253_v14  ;;  %v2256_v51 = vmul.f32 %v2248_v30, %v2088_v10  ;;  %v2064_v60 = vmul.f32 0.5, %v5709_v19  ;;  %v1908_v14 = vld [vmem:[%s5866_s25 + $0x18] sm:$0xff]  ;;  %v1907_v30 = vld [vmem:[%s5866_s25 + $0x10] sm:$0xff] }
 0x414   : >> { %v2247_v49 = vsub.f32 1.0, %v2239_v38  ;;  %v2063_v59 = vmul.f32 0.5, %v5731_v63  ;;  %v2805_v7 = vsel %vm488_vm0, %v2270_v20, 0.0  ;;  %v6273_v61 = vsub.s32 0, %v4500_v26 }
 0x415   : >> { %v2269_v0 = vmul.f32 %v2261_v33, %v2061_v53  ;;  %v2264_v56 = vadd.f32 1.0, %v2256_v51 }
 0x416   : >> { %v2255_v46 = vmul.f32 %v2247_v49, %v2087_v17  ;;  %v2276_v9 = vrot.slane %v4306_v2, %v6273_v61  ;;  %v1910_v17 = vld [vmem:[%s5866_s25 + $0x28] sm:$0xff] }
 0x417   : >> { %3770 = vmatprep.mubr.msk.f32.mxu1 %vm488_vm0, %v2269_v0  ;;  %v2803_v27 = vsel %vm488_vm0, %v2269_v0, 0.0  ;;  %v2272_v1 = vmul.f32 %v2264_v56, %v2064_v60  ;;  %v1909_v56 = vld [vmem:[%s5866_s25 + $0x20] sm:$0xff] }
 0x418   : >> { %v2804_v16 = vadd.f32 %v2803_v27, %v2802_v43  ;;  %3771 = vmatmul.mubr.msk.f32.gmra.mrb[4].mxu1 %vm488_vm0, %v2270_v20  ;;  %v2263_v22 = vadd.f32 1.0, %v2255_v46 }
 0x419   : >> { %v2809_v19 = vsel %vm488_vm0, %v2272_v1, 0.0 }
 0x41a   : >> { %v2806_v11 = vadd.f32 %v2805_v7, %v2804_v16  ;;  %v2271_v47 = vmul.f32 %v2263_v22, %v2063_v59 }
 0x41c   : >> { %3773 = vmatprep.mubr.msk.f32.mxu1 %vm488_vm0, %v2271_v47  ;;  %v2807_v25 = vsel %vm488_vm0, %v2271_v47, 0.0  ;;  %v1912_v47 = vld [vmem:[%s5866_s25 + $0x38] sm:$0xff] }
 0x41d   : >> { %v2808_v58 = vadd.f32 %v2807_v25, %v2806_v11  ;;  %3774 = vmatmul.mubr.msk.f32.gmra.mrb[6].mxu1 %vm488_vm0, %v2272_v1 }
 0x41f   : >> { %v2810_v63 = vadd.f32 %v2809_v19, %v2808_v58  ;;  %v1911_v58 = vld [vmem:[%s5866_s25 + $0x30] sm:$0xff] }
 0x421   : >> { %v2811_v42 = vrot.slane %v2810_v63, 4 }
 0x423   : >> { %v2812_v23 = vadd.f32 %v2811_v42, %v2810_v63 }
 0x425   : >> { %v2813_v62 = vrot.slane %v2812_v23, 2 }
 0x427   : >> { %v2814_v57 = vadd.f32 %v2813_v62, %v2812_v23 }
 0x429   : >> { %v2815_v55 = vrot.slane %v2814_v57, 1 }
 0x42b   : >> { %v2816_v36 = vadd.f32 %v2815_v55, %v2814_v57 }
 0x42d   : >> { %v2817_v4 = vmul.f32 0.015625, %v2816_v36 }
 0x42f   : >> { %3798 = vmatprep.subr.msk.mxu1 %vm2863_vm3, %v2817_v4 }
 0x430   : >> { %3799 = vmatpush3.msk.msra.mxu1 %vm2863_vm3, %v2817_v4 }
 0x4bd   : >> { %v5860_v41 = vpop.f32.mrb[10].mxu0 }
 0x4be   : >> { %v3797_v24 = vpop.f32.mrb[11].mxu0  ;;  %v2593_v45 = vsub.f32 0.0, %v5860_v41 }
 0x4c0   : >> { %v2594_v53 = vmul.f32 1.442695, %v2593_v45 }
 0x4c2   : >> { %4212 = vpow2.f32 %v2594_v53 }
 0x4cc   : >> { %v4213_v61 = vpop.eup %4212 }
 0x4e0   : >> { %v3766_v48 = vpop.f32.mrb[0].mxu1 }
 0x4e1   : >> { %v2385_v39 = vadd.f32 %v3766_v48, %v2276_v9  ;;  %v2379_v5 = vpop.f32.mrb[1].mxu1 }
 0x4e2   : >> { %v2380_v44 = vadd.f32 %v2379_v5, %v2276_v9 }
 0x4e3   : >> { %2420 = vst.msk [vmem:[%s5871_s27 + $0x8] sm:$0xff] %vm488_vm0, %v2385_v39  ;;  %v5876_v18 = vsub.f32 %v2385_v39, %v1906_v6  ;;  %v2596_v39 = vadd.f32 1.0, %v4213_v61 }
 0x4e4   : >> { %2419 = vst.msk [vmem:[%s5871_s27] sm:$0xff] %vm488_vm0, %v2380_v44  ;;  %v5880_v34 = vsub.f32 %v2380_v44, %v1905_v29  ;;  %v3769_v28 = vpop.f32.mrb[2].mxu1 }
 0x4e5   : >> { %v2395_v54 = vadd.f32 %v3769_v28, %v2276_v9  ;;  %v2389_v10 = vpop.f32.mrb[3].mxu1  ;;  %v2638_v49 = vmul.f32 %v5876_v18, %v5876_v18  ;;  %4214 = vrcp.f32 %v2596_v39 }
 0x4e6   : >> { %v2390_v37 = vadd.f32 %v2389_v10, %v2276_v9  ;;  %v2637_v38 = vmul.f32 %v5880_v34, %v5880_v34 }
 0x4e7   : >> { %2422 = vst.msk [vmem:[%s5871_s27 + $0x18] sm:$0xff] %vm488_vm0, %v2395_v54  ;;  %v5888_v43 = vsub.f32 %v2395_v54, %v1908_v14  ;;  %v2648_v16 = vsel %vm488_vm0, %v2638_v49, 0.0 }
 0x4e8   : >> { %2421 = vst.msk [vmem:[%s5871_s27 + $0x10] sm:$0xff] %vm488_vm0, %v2390_v37  ;;  %v5892_v33 = vsub.f32 %v2390_v37, %v1907_v30  ;;  %v2645_v51 = vsel %vm488_vm0, %v2637_v38, 0.0  ;;  %v2585_v30 = vand.u32 2147483647, %v5860_v41 }
 0x4e9   : >> { %2646 = vadd.xlane.f32.xlu0 %v2645_v51  ;;  %v2640_v22 = vmul.f32 %v5888_v43, %v5888_v43 }
 0x4ea   : >> { %v2639_v20 = vmul.f32 %v5892_v33, %v5892_v33 }
 0x4eb   : >> { %v3772_v0 = vpop.f32.mrb[4].mxu1  ;;  %v2654_v63 = vsel %vm488_vm0, %v2640_v22, 0.0 }
 0x4ec   : >> { %v2405_v46 = vadd.f32 %v3772_v0, %v2276_v9  ;;  %v2399_v27 = vpop.f32.mrb[5].mxu1  ;;  %v2651_v59 = vsel %vm488_vm0, %v2639_v20, 0.0  ;;  %v2586_v20 = vsub.f32 0.0, %v2585_v30 }
 0x4ed   : >> { %v2400_v60 = vadd.f32 %v2399_v27, %v2276_v9  ;;  %2652 = vadd.xlane.f32.xlu1 %v2651_v59  ;;  %2649 = vadd.xlane.f32.xlu0 %v2648_v16 }
 0x4ee   : >> { %2424 = vst.msk [vmem:[%s5871_s27 + $0x28] sm:$0xff] %vm488_vm0, %v2405_v46  ;;  %v5907_v7 = vsub.f32 %v2405_v46, %v1910_v17 }
 0x4ef   : >> { %2423 = vst.msk [vmem:[%s5871_s27 + $0x20] sm:$0xff] %vm488_vm0, %v2400_v60  ;;  %v5911_v11 = vsub.f32 %v2400_v60, %v1909_v56  ;;  %v5936_v29 = vpop.eup %4214 }
 0x4f0   : >> { %v3775_v1 = vpop.f32.mrb[6].mxu1  ;;  %v2642_v23 = vmul.f32 %v5907_v7, %v5907_v7 }
 0x4f1   : >> { %v2415_v25 = vadd.f32 %v3775_v1, %v2276_v9  ;;  %v2409_v19 = vpop.f32.mrb[7].mxu1  ;;  %v2641_v42 = vmul.f32 %v5911_v11, %v5911_v11  ;;  %2655 = vadd.xlane.f32.xlu1 %v2654_v63 }
 0x4f2   : >> { %v2410_v62 = vadd.f32 %v2409_v19, %v2276_v9  ;;  %v2660_v4 = vsel %vm488_vm0, %v2642_v23, 0.0 }
 0x4f3   : >> { %2426 = vst.msk [vmem:[%s5871_s27 + $0x38] sm:$0xff] %vm488_vm0, %v2415_v25  ;;  %v5922_v57 = vsub.f32 %v2415_v25, %v1912_v47  ;;  %v2657_v55 = vsel %vm488_vm0, %v2641_v42, 0.0 }
 0x4f4   : >> { %2425 = vst.msk [vmem:[%s5871_s27 + $0x30] sm:$0xff] %vm488_vm0, %v2410_v62  ;;  %v5927_v36 = vsub.f32 %v2410_v62, %v1911_v58  ;;  %2658 = vadd.xlane.f32.xlu0 %v2657_v55 }
 0x4f5   : >> { %v2644_v24 = vmul.f32 %v5922_v57, %v5922_v57  ;;  %2661 = vadd.xlane.f32.xlu1 %v2660_v4 }
 0x4f6   : >> { %v2643_v9 = vmul.f32 %v5927_v36, %v5927_v36 }
 0x4f7   : >> { %v2666_v6 = vsel %vm488_vm0, %v2644_v24, 0.0 }
 0x4f8   : >> { %v2663_v48 = vsel %vm488_vm0, %v2643_v9, 0.0 }
 0x4f9   : >> { %2664 = vadd.xlane.f32.xlu0 %v2663_v48  ;;  %2667 = vadd.xlane.f32.xlu1 %v2666_v6 }
 0x50a   : >> { %2599 = vrot.lane.b32.xlu1 %v5936_v29, %s4354_s28 }
 0x576   : >> { %v2647_v5 = vpop.xlane.xlu0 %2646 }
 0x577   : >> { %4216 = vrsqrt.f32 %v2647_v5  ;;  %vm2671_vm4 = vcmp.eq.f32.partialorder %v2647_v5, inf  ;;  %v2674_v38 = vand.u32 2147483648, %v2647_v5  ;;  %vm2673_vm5 = vcmp.eq.f32.partialorder %v2647_v5, 0.0 }
 0x57a   : >> { %v2653_v44 = vpop.xlane.xlu1 %2652  ;;  %v2650_v45 = vpop.xlane.xlu0 %2649 }
 0x57b   : >> { %4218 = vrsqrt.f32 %v2653_v44  ;;  %vm2685_vm6 = vcmp.eq.f32.partialorder %v2653_v44, inf  ;;  %vm2687_vm7 = vcmp.eq.f32.partialorder %v2653_v44, 0.0  ;;  %v2688_v60 = vand.u32 2147483648, %v2653_v44 }
 0x57c   : >> { %4220 = vrsqrt.f32 %v2650_v45  ;;  %vm2678_vm8 = vcmp.eq.f32.partialorder %v2650_v45, inf  ;;  %v2681_v22 = vand.u32 2147483648, %v2650_v45  ;;  %vm2680_vm9 = vcmp.eq.f32.partialorder %v2650_v45, 0.0 }
 0x57e   : >> { %v2656_v28 = vpop.xlane.xlu1 %2655 }
 0x57f   : >> { %4222 = vrsqrt.f32 %v2656_v28  ;;  %vm2692_vm11 = vcmp.eq.f32.partialorder %v2656_v28, inf  ;;  %v2695_v55 = vand.u32 2147483648, %v2656_v28  ;;  %vm2694_vm12 = vcmp.eq.f32.partialorder %v2656_v28, 0.0 }
 0x581   : >> { %v2659_v14 = vpop.xlane.xlu0 %2658  ;;  %v4217_v54 = vpop.eup %4216 }
 0x582   : >> { %4224 = vrsqrt.f32 %v2659_v14  ;;  %v2670_v10 = vmul.f32 %v4217_v54, %v2647_v5  ;;  %v5941_v37 = vpop.xlane.xlu1 %2661  ;;  %vm2699_vm13 = vcmp.eq.f32.partialorder %v2659_v14, inf  ;;  %v2702_v6 = vand.u32 2147483648, %v2659_v14 }
 0x583   : >> { %4226 = vrsqrt.f32 %v5941_v37  ;;  %vm2701_vm14 = vcmp.eq.f32.partialorder %v2659_v14, 0.0  ;;  %vm2706_vm15 = vcmp.eq.f32.partialorder %v5941_v37, inf  ;;  %vm2708_vm1 = vcmp.eq.f32.partialorder %v5941_v37, 0.0 }
 0x584   : >> { %v2672_v53 = vsel %vm2671_vm4, %v2647_v5, %v2670_v10 }
 0x585   : >> { %v4219_v51 = vpop.eup %4218  ;;  %v5944_v49 = vsel %vm2673_vm5, %v2674_v38, %v2672_v53  ;;  %v2587_v38 = vmul.f32 1.442695, %v2586_v20 }
 0x586   : >> { %v5946_v17 = vpop.xlane.xlu0 %2664  ;;  %v4221_v0 = vpop.eup %4220  ;;  %v2725_v46 = vadd.f32 1e-09, %v5944_v49  ;;  %v2684_v56 = vmul.f32 %v4219_v51, %v2653_v44 }
 0x587   : >> { %4228 = vrsqrt.f32 %v5946_v17  ;;  %v5950_v27 = vpop.xlane.xlu1 %2667  ;;  %v2677_v59 = vmul.f32 %v4221_v0, %v2650_v45  ;;  %vm2713_vm2 = vcmp.eq.f32.partialorder %v5946_v17, inf  ;;  %vm2715_vm3 = vcmp.eq.f32.partialorder %v5946_v17, 0.0 }
 0x588   : >> { %4230 = vrcp.f32 %v2725_v46  ;;  %v2686_v16 = vsel %vm2685_vm6, %v2653_v44, %v2684_v56  ;;  %v2716_v46 = vand.u32 2147483648, %v5946_v17  ;;  %vm2720_vm4 = vcmp.eq.f32.partialorder %v5950_v27, inf }
 0x589   : >> { %v4223_v47 = vpop.eup %4222  ;;  %v5952_v1 = vsel %vm2687_vm7, %v2688_v60, %v2686_v16  ;;  %v2679_v25 = vsel %vm2678_vm8, %v2650_v45, %v2677_v59  ;;  %4232 = vrsqrt.f32 %v5950_v27  ;;  %v1914_v16 = vld [vmem:[%s5984_s30] sm:$0xff]  ;;  %vm2722_vm5 = vcmp.eq.f32.partialorder %v5950_v27, 0.0 }
 0x58a   : >> { %v2727_v58 = vadd.f32 1e-09, %v5952_v1  ;;  %v5956_v19 = vsel %vm2680_vm9, %v2681_v22, %v2679_v25  ;;  %v2691_v63 = vmul.f32 %v4223_v47, %v2656_v28  ;;  %v2723_v47 = vand.u32 2147483648, %v5950_v27 }
 0x58b   : >> { %v2600_v42 = vpop.permute.xlu1 %2599  ;;  %v2726_v62 = vadd.f32 1e-09, %v5956_v19  ;;  %vm2741_vm6 = vcmp.gt.f32.partialorder %v5944_v49, %v1914_v16 }
 0x58c   : >> { %v4225_v23 = vpop.eup %4224  ;;  %v2603_v4 = vsel %vm2602_vm10, %v2600_v42, 0.0  ;;  %4234 = vrcp.f32 %v2727_v58  ;;  %v2693_v24 = vsel %vm2692_vm11, %v2656_v28, %v2691_v63  ;;  %v2709_v28 = vand.u32 2147483648, %v5941_v37 }
 0x58d   : >> { %v2698_v61 = vmul.f32 %v4225_v23, %v2659_v14  ;;  %2604 = vadd.xlane.f32.xlu1 %v2603_v4  ;;  %v4227_v9 = vpop.eup %4226  ;;  %4236 = vrcp.f32 %v2726_v62  ;;  %v5960_v48 = vsel %vm2694_vm12, %v2695_v55, %v2693_v24  ;;  %v1916_v62 = vld [vmem:[%s5984_s30 + $0x10] sm:$0xff]  ;;  %v1915_v55 = vld [vmem:[%s5984_s30 + $0x8] sm:$0xff] }
 0x58e   : >> { %v2728_v39 = vadd.f32 1e-09, %v5960_v48  ;;  %v2705_v44 = vmul.f32 %v4227_v9, %v5941_v37  ;;  %vm2743_vm7 = vcmp.gt.f32.partialorder %v5952_v1, %v1916_v62  ;;  %vm2742_vm8 = vcmp.gt.f32.partialorder %v5956_v19, %v1915_v55 }
 0x58f   : >> { %v2700_v5 = vsel %vm2699_vm13, %v2659_v14, %v2698_v61 }
 0x590   : >> { %v5964_v45 = vsel %vm2701_vm14, %v2702_v6, %v2700_v5  ;;  %4238 = vrcp.f32 %v2728_v39  ;;  %v2707_v10 = vsel %vm2706_vm15, %v5941_v37, %v2705_v44  ;;  %v1917_v39 = vld [vmem:[%s5984_s30 + $0x18] sm:$0xff]  ;;  %vm2850_vm15 = vcmask 7168  }
 0x591   : >> { %v4229_v54 = vpop.eup %4228  ;;  %v2729_v30 = vadd.f32 1e-09, %v5964_v45  ;;  %v5971_v53 = vsel %vm2708_vm1, %v2709_v28, %v2707_v10  ;;  %v1918_v10 = vld [vmem:[%s5984_s30 + $0x20] sm:$0xff]  ;;  %vm2744_vm9 = vcmp.gt.f32.partialorder %v5960_v48, %v1917_v39  ;;  %v1920_v48 = vld [vmem:[%s5984_s30 + $0x30] sm:$0xff] }
 0x592   : >> { %v2712_v14 = vmul.f32 %v4229_v54, %v5946_v17  ;;  %v4231_v51 = vpop.eup %4230  ;;  %v2730_v0 = vadd.f32 1e-09, %v5971_v53  ;;  %vm2745_vm11 = vcmp.gt.f32.partialorder %v5964_v45, %v1918_v10 }
 0x593   : >> { %4240 = vrcp.f32 %v2729_v30  ;;  %v4233_v56 = vpop.eup %4232  ;;  %v2749_v60 = vmul.f32 %v4231_v51, %v5880_v34  ;;  %v1919_v51 = vld [vmem:[%s5984_s30 + $0x28] sm:$0xff] }
 0x594   : >> { %v2714_v59 = vsel %vm2713_vm2, %v5946_v17, %v2712_v14  ;;  %4242 = vrcp.f32 %v2730_v0  ;;  %v2719_v20 = vmul.f32 %v4233_v56, %v5950_v27  ;;  %vm2746_vm12 = vcmp.gt.f32.partialorder %v5971_v53, %v1919_v51 }
 0x595   : >> { %v5980_v37 = vsel %vm2715_vm3, %v2716_v46, %v2714_v59  ;;  %4244 = vpow2.f32 %v2587_v38  ;;  %v2757_v17 = vmul.f32 %v2749_v60, %v1914_v16 }
 0x596   : >> { %v2731_v22 = vadd.f32 1e-09, %v5980_v37  ;;  %v4235_v25 = vpop.eup %4234  ;;  %v2721_v58 = vsel %vm2720_vm4, %v5950_v27, %v2719_v20  ;;  %vm2747_vm13 = vcmp.gt.f32.partialorder %v5980_v37, %v1920_v48 }
 0x597   : >> { %v4237_v63 = vpop.eup %4236  ;;  %v2751_v42 = vmul.f32 %v4235_v25, %v5892_v33  ;;  %v5993_v23 = vsel %vm2722_vm5, %v2723_v47, %v2721_v58  ;;  %v2765_v27 = vsel %vm2741_vm6, %v2757_v17, %v5880_v34 }
 0x598   : >> { %4246 = vrcp.f32 %v2731_v22  ;;  %v2750_v4 = vmul.f32 %v4237_v63, %v5876_v18  ;;  %v2732_v24 = vadd.f32 1e-09, %v5993_v23  ;;  %v2773_v54 = vsel %vm488_vm0, %v2765_v27, 0.0 }
 0x599   : >> { %v2759_v61 = vmul.f32 %v2751_v42, %v1916_v62 }
 0x59a   : >> { %v4239_v9 = vpop.eup %4238  ;;  %v2758_v6 = vmul.f32 %v2750_v4, %v1915_v55  ;;  %4248 = vrcp.f32 %v2732_v24 }
 0x59b   : >> { %v2752_v5 = vmul.f32 %v4239_v9, %v5888_v43  ;;  %v2767_v28 = vsel %vm2743_vm7, %v2759_v61, %v5892_v33 }
 0x59c   : >> { %v2766_v49 = vsel %vm2742_vm8, %v2758_v6, %v5876_v18  ;;  %v2776_v33 = vsel %vm488_vm0, %v2767_v28, 0.0 }
 0x59d   : >> { %v4241_v44 = vpop.eup %4240  ;;  %v2774_v30 = vsel %vm488_vm0, %v2766_v49, 0.0  ;;  %v2760_v34 = vmul.f32 %v2752_v5, %v1917_v39 }
 0x59e   : >> { %v2753_v38 = vmul.f32 %v4241_v44, %v5911_v11  ;;  %3048 = vrot.lane.b32.xlu1 %v4306_v2, %s4355_s17  ;;  %v4243_v1 = vpop.eup %4242  ;;  %v2775_v19 = vadd.f32 %v2774_v30, %v2773_v54 }
 0x59f   : >> { %v2768_v18 = vsel %vm2744_vm9, %v2760_v34, %v5888_v43  ;;  %v2754_v0 = vmul.f32 %v4243_v1, %v5907_v7  ;;  %v4245_v46 = vpop.eup %4244 }
 0x5a0   : >> { %v2761_v14 = vmul.f32 %v2753_v38, %v1918_v10  ;;  %v2778_v56 = vsel %vm488_vm0, %v2768_v18, 0.0  ;;  %v2777_v60 = vadd.f32 %v2776_v33, %v2775_v19  ;;  %v2589_v17 = vadd.f32 1.0, %v4245_v46 }
 0x5a1   : >> { %v2762_v20 = vmul.f32 %v2754_v0, %v1919_v51 }
 0x5a2   : >> { %v4247_v2 = vpop.eup %4246  ;;  %v2769_v59 = vsel %vm2745_vm11, %v2761_v14, %v5911_v11  ;;  %v2779_v16 = vadd.f32 %v2778_v56, %v2777_v60  ;;  %v1921_v11 = vld [vmem:[%s5984_s30 + $0x38] sm:$0xff]  ;;  %4250 = vlog2.f32 %v2589_v17 }
 0x5a3   : >> { %v2755_v43 = vmul.f32 %v4247_v2, %v5927_v36  ;;  %v2770_v22 = vsel %vm2746_vm12, %v2762_v20, %v5907_v7  ;;  %v2780_v47 = vsel %vm488_vm0, %v2769_v59, 0.0  ;;  %vm2748_vm14 = vcmp.gt.f32.partialorder %v5993_v23, %v1921_v11 }
 0x5a4   : >> { %v4249_v25 = vpop.eup %4248  ;;  %v2781_v45 = vadd.f32 %v2780_v47, %v2779_v16  ;;  %v2782_v63 = vsel %vm488_vm0, %v2770_v22, 0.0 }
 0x5a5   : >> { %v2763_v58 = vmul.f32 %v2755_v43, %v1920_v48  ;;  %v2756_v42 = vmul.f32 %v4249_v25, %v5922_v57 }
 0x5a6   : >> { %v2783_v62 = vadd.f32 %v2782_v63, %v2781_v45 }
 0x5a7   : >> { %v2771_v53 = vsel %vm2747_vm13, %v2763_v58, %v5927_v36  ;;  %v2764_v55 = vmul.f32 %v2756_v42, %v1921_v11  ;;  %v2584_v36 = vmax.f32 %v5860_v41, 0.0 }
 0x5a8   : >> { %v2784_v4 = vsel %vm488_vm0, %v2771_v53, 0.0 }
 0x5a9   : >> { %v2785_v7 = vadd.f32 %v2784_v4, %v2783_v62  ;;  %v2772_v24 = vsel %vm2748_vm14, %v2764_v55, %v5922_v57 }
 0x5aa   : >> { %v2786_v61 = vsel %vm488_vm0, %v2772_v24, 0.0 }
 0x5ab   : >> { %v2787_v9 = vadd.f32 %v2786_v61, %v2785_v7 }
 0x5ac   : >> { %v4251_v39 = vpop.eup %4250 }
 0x5ad   : >> { %v2788_v27 = vrot.slane %v2787_v9, 4  ;;  %v2591_v44 = vmul.f32 0.6931472, %v4251_v39 }
 0x5af   : >> { %v2789_v37 = vadd.f32 %v2788_v27, %v2787_v9  ;;  %v2592_v54 = vadd.f32 %v2591_v44, %v2584_v36  ;;  %v3081_v44 = vld [vmem:[%s6177_s9] sm:$0xff] (%p1880_p4) }
 0x5b1   : >> { %v2790_v6 = vrot.slane %v2789_v37, 2  ;;  %v2616_v57 = vsel %vm2602_vm10, %v2592_v54, 0.0 }
 0x5b3   : >> { %v2791_v5 = vadd.f32 %v2790_v6, %v2789_v37 }
 0x5b5   : >> { %v2792_v28 = vrot.slane %v2791_v5, 1 }
 0x5b7   : >> { %v2793_v49 = vadd.f32 %v2792_v28, %v2791_v5  ;;  %v3082_v28 = vld [vmem:[%s6177_s9 + $0x8] sm:$0xff] (%p1880_p4) }
 0x5b9   : >> { %v2795_v30 = vmul.f32 0.015625, %v2793_v49  ;;  %v3083_v49 = vld [vmem:[%s6177_s9 + $0x10] sm:$0xff] (%p1880_p4) }
 0x5bb   : >> { %2818 = vxpose.xlu0.b32.start.end [1/1] (short) (narrow) %v2795_v30, 32  ;;  %3815 = vmatmul.mubr.msk.f32.vlgmr.msra.gmra.mrb[12].mxu0 %vm488_vm0, %v2795_v30  ;;  %v3052_v23 = vmul.f32 %v2795_v30, %v2592_v54  ;;  %v3899_v54 = vpack.c.bf16 (%p1880_p4), %v3082_v28, %v3081_v44  ;;  %v3065_v30 = vld [vmem:[#allocation5] sm:$0xff] (%p1880_p4) }
 0x5bc   : > { %3825 = vmatprep.mubr.msk.f32.mxu0 (%p1880_p4), %vm488_vm0, %v3065_v30 }
 0x5bd   : >> { %3054 = vrot.lane.b32.xlu1 %v3052_v23, %s4355_s17  ;;  %v3073_v23 = vld [vmem:[#allocation5 + $0x40] sm:$0xff] (%p1880_p4)  ;;  %3900 = vmatprep.subr.bf16.mxu0 (%p1880_p4), %v3899_v54 }
 0x5be   : > { %3907 = vmatprep.subr.bf16.mxu1 (%p1880_p4), %v3899_v54  ;;  %3902 = vmatpush3.bf16.msra.mxu0 (%p1880_p4), %v3899_v54 }
 0x5f4   : >> { %2617 = vadd.xlane.f32.xlu0 %v2616_v57  ;;  %v6277_v57 = vld [vmem:[#allocation9_spill] sm:$0xff] (%p1880_p4) }
 0x60a   : > { %3294 = vrot.lane.b32.xlu0 (%p1880_p4), %v4719_v35, %s4356_s16  ;;  %v3066_v35 = vld [vmem:[#allocation5 + $0x8] sm:$0xff] (%p1880_p4) }
 0x61a   : >> { %v2605_v34 = vpop.xlane.xlu1 %2604 }
 0x61b   : >> { %v2606_v10 = vrot.slane %v2605_v34, 4 }
 0x61d   : >> { %v2607_v38 = vadd.f32 %v2606_v10, %v2605_v34  ;;  %v6278_v34 = vld [vmem:[#allocation10_spill] sm:$0xff] (%p1880_p4)  ;;  %v3070_v10 = vld [vmem:[#allocation5 + $0x28] sm:$0xff] (%p1880_p4) }
 0x61e   : >> { %v3049_v18 = vpop.permute.xlu1 %3048 }
 0x61f   : >> { %v2608_v1 = vrot.slane %v2607_v38, 2  ;;  %v3051_v14 = vmul.f32 %v5936_v29, %v3049_v18  ;;  %v3072_v18 = vld [vmem:[#allocation5 + $0x38] sm:$0xff] (%p1880_p4) }
 0x621   : >> { %v2609_v19 = vadd.f32 %v2608_v1, %v2607_v38  ;;  %v3078_v38 = vld [vmem:[#allocation5 + $0x68] sm:$0xff] (%p1880_p4)  ;;  %v3071_v1 = vld [vmem:[#allocation5 + $0x30] sm:$0xff] (%p1880_p4) }
 0x623   : >> { %v2610_v41 = vrot.slane %v2609_v19, 1 }
 0x625   : >> { %v2611_v33 = vadd.f32 %v2610_v41, %v2609_v19  ;;  %v3079_v19 = vld [vmem:[#allocation5 + $0x70] sm:$0xff] (%p1880_p4)  ;;  %v6279_v41 = vld [vmem:[#allocation11_spill] sm:$0xff] (%p1880_p4) }
 0x627   : >> { %3911 = vpush %v2611_v33  ;;  %v6280_v33 = vld [vmem:[#allocation12_spill] sm:$0xff] (%p1880_p4) }
 0x62f   : >> { %v3055_v51 = vpop.permute.xlu1 %3054 }
 0x630   : >> { %v3057_v0 = vsub.f32 %v3051_v14, %v3055_v51  ;;  %v3080_v14 = vld [vmem:[#allocation5 + $0x78] sm:$0xff] (%p1880_p4) }
 0x631   : > { %v6281_v51 = vld [vmem:[#allocation13_spill] sm:$0xff] (%p1880_p4) }
 0x632   : >> { %3062 = vrot.lane.b32.xlu1 %v3057_v0, %s4354_s28  ;;  %v6282_v0 = vld [vmem:[#allocation14_spill] sm:$0xff] (%p1880_p4) }
 0x636   : > { %3298 = vrot.lane.b32.xlu1 (%p1880_p4), %v4745_v32, %s4356_s16  ;;  %v3074_v32 = vld [vmem:[#allocation5 + $0x48] sm:$0xff] (%p1880_p4) }
 0x63a   : > { %3300 = vrot.lane.b32.xlu1 (%p1880_p4), %v4736_v15, %s4356_s16  ;;  %v3068_v15 = vld [vmem:[#allocation5 + $0x18] sm:$0xff] (%p1880_p4) }
 0x63b   : >> { %v2834_v46 = vpop.trf.xlu0 }
 0x63c   : >> { %3800 = vmatprep.mubr.msk.f32.mxu1 %vm2850_vm15, %v2834_v46  ;;  %v6283_v46 = vld [vmem:[#allocation15_spill] sm:$0xff] (%p1880_p4) }
 0x63f   : >> { %v2835_v56 = vpop.trf.xlu0 }
 0x640   : >> { %3801 = vmatmul.mubr.msk.f32.vlgmr.msra.gmra.mrb[8].mxu1 %vm2850_vm15, %v2835_v56  ;;  %v6284_v56 = vld [vmem:[#allocation16_spill] sm:$0xff] (%p1880_p4) }
 0x641   : > { %3909 = vmatpush3.bf16.msra.mxu1 (%p1880_p4), %v3899_v54 }
 0x643   : >> { %v2836_v60 = vpop.trf.xlu0 }
 0x644   : >> { %3803 = vmatprep.mubr.msk.f32.mxu1 %vm2850_vm15, %v2836_v60  ;;  %v6285_v60 = vld [vmem:[#allocation17_spill] sm:$0xff] (%p1880_p4) }
 0x647   : >> { %v2837_v2 = vpop.trf.xlu0 }
 0x648   : >> { %3804 = vmatmul.mubr.msk.f32.gmra.mrb[10].mxu1 %vm2850_vm15, %v2837_v2 }
 0x649   : > { %3837 = vmatprep.mubr.msk.f32.mxu1 (%p1880_p4), %vm488_vm0, %v3073_v23 }
 0x658   : >> { %s3912_s18 = spop %3911 }
 0x659   : >> { %s2615_s19 = smul.f32 0.03125, %s3912_s18 }
 0x65b   : >> { %v3025_v17 = vstv %s2615_s19 }
 0x65c   : >> { %v3058_v58 = vmul.f32 %v4326_v31, %v3025_v17  ;;  %v3027_v42 = vmul.f32 %v4338_v3, %v3025_v17  ;;  %v3040_v62 = vmul.f32 %v4318_v21, %v3025_v17  ;;  %v3026_v4 = vmul.f32 %v4342_v12, %v3025_v17 }
 0x65d   : >> { %v3039_v24 = vmul.f32 %v4322_v50, %v3025_v17  ;;  %v3029_v9 = vmul.f32 %v4330_v40, %v3025_v17  ;;  %v3042_v37 = vmul.f32 %v4310_v13, %v3025_v17  ;;  %v3028_v39 = vmul.f32 %v4334_v8, %v3025_v17 }
 0x65e   : >> { %v3041_v36 = vmul.f32 %v4314_v52, %v3025_v17 }
 0x681   : >> { %v2618_v59 = vpop.xlane.xlu0 %2617 }
 0x682   : >> { %v2619_v20 = vrot.slane %v2618_v59, 4 }
 0x684   : >> { %v2620_v48 = vadd.f32 %v2619_v20, %v2618_v59 }
 0x685   : > { %v3295_v20 = vpop.permute.xlu0 (%p1880_p4), %3294 }
 0x686   : >> { %v2621_v43 = vrot.slane %v2620_v48, 2 }
 0x688   : >> { %v2622_v16 = vadd.f32 %v2621_v43, %v2620_v48 }
 0x68a   : >> { %v2623_v22 = vrot.slane %v2622_v16, 1 }
 0x68c   : >> { %v2624_v29 = vadd.f32 %v2623_v22, %v2622_v16 }
 0x68e   : >> { %3913 = vpush %v2624_v29  ;;  %v3021_v47 = vpop.f32.mrb[12].mxu0 }
 0x68f   : >> { %v3816_v25 = vpop.f32.mrb[13].mxu0 }
 0x6a4   : >> { %v3063_v2 = vpop.permute.xlu1 %3062  }
 0x6a5   : > { %v6286_v2 = vld [vmem:[#allocation18_spill] sm:$0xff] (%p1880_p4) }
 0x6a8   : > { %v3299_v59 = vpop.permute.xlu1 (%p1880_p4), %3298 }
 0x6ac   : > { %v3301_v48 = vpop.permute.xlu1 (%p1880_p4), %3300 }
 0x6bf   : >> { %s3914_s20 = spop %3913 }
 0x6c0   : >> { %s2628_s21 = smul.f32 0.03125, %s3914_s20 }
 0x6c2   : >> { %v3030_v45 = vstv %s2628_s21 }
 0x6c3   : >> { %v3059_v63 = vmul.f32 %v3030_v45, %v3021_v47 }
 0x6c5   : >> { %v3060_v31 = vsub.f32 %v3058_v58, %v3059_v63  }
 0x6c6   : > { %v6275_v31 = vld [vmem:[#allocation7_spill] sm:$0xff] (%p1880_p4) }
 0x6c7   : > { %3304 = vrot.lane.b32.xlu1 (%p1880_p4), %v6275_v31, %s4356_s16 }
 0x6cb   : > { %3308 = vrot.lane.b32.xlu1 (%p1880_p4), %v6277_v57, %s4356_s16 }
 0x6cf   : > { %3312 = vrot.lane.b32.xlu1 (%p1880_p4), %v6279_v41, %s4356_s16 }
 0x6d3   : > { %3316 = vrot.lane.b32.xlu1 (%p1880_p4), %v6281_v51, %s4356_s16 }
 0x6d7   : > { %3320 = vrot.lane.b32.xlu1 (%p1880_p4), %v6283_v46, %s4356_s16 }
 0x6db   : > { %3324 = vrot.lane.b32.xlu1 (%p1880_p4), %v6285_v60, %s4356_s16 }
 0x713   : >> { %v3802_v11 = vpop.f32.mrb[8].mxu1 }
 0x714   : >> { %v3032_v53 = vmul.f32 %v3802_v11, %v3030_v45  ;;  %v2933_v55 = vpop.f32.mrb[9].mxu1 }
 0x715   : >> { %v3031_v7 = vmul.f32 %v3030_v45, %v2933_v55 }
 0x716   : >> { %v3036_v3 = vsub.f32 %v3027_v42, %v3032_v53   ;;  %v3044_v21 = vsub.f32 %v3040_v62, %v3032_v53  }
 0x717   : >> { %v3035_v12 = vsub.f32 %v3026_v4, %v3031_v7   ;;  %v3043_v50 = vsub.f32 %v3039_v24, %v3031_v7   ;;  %v6274_v3 = vld [vmem:[#allocation6_spill] sm:$0xff] (%p1880_p4)  ;;  %v3076_v21 = vld [vmem:[#allocation5 + $0x58] sm:$0xff] (%p1880_p4) }
 0x718   : > { %v3084_v12 = vld [vmem:[%s6177_s9 + $0x18] sm:$0xff] (%p1880_p4)  ;;  %3296 = vrot.lane.b32.xlu0 (%p1880_p4), %v6274_v3, %s4356_s16  ;;  %v6276_v50 = vld [vmem:[#allocation8_spill] sm:$0xff] (%p1880_p4) }
 0x719   : > { %1882 = sbr.rel (!%p1880_p4) target bundleno = 764 (0x2fc), region = 118  ;;  %v3903_v26 = vpack.c.bf16 (%p1880_p4), %v3084_v12, %v3083_v49 }
 0x71b   : >> { %v3805_v61 = vpop.f32.mrb[10].mxu1  ;;  %3904 = vmatprep.subr.bf16.mxu0 (%p1880_p4), %v3903_v26  ;;  %3908 = vmatprep.subr.bf16.mxu1 (%p1880_p4), %v3903_v26 }
 0x71c   : >> { %v3034_v27 = vmul.f32 %v3805_v61, %v3030_v45  ;;  %v2943_v6 = vpop.f32.mrb[11].mxu1  ;;  %3906 = vmatpush3.bf16.msra.mxu0 (%p1880_p4), %v3903_v26  ;;  %3910 = vmatpush3.bf16.msra.mxu1 (%p1880_p4), %v3903_v26 }
 0x71d   : >> { %v3033_v5 = vmul.f32 %v3030_v45, %v2943_v6  ;;  %3302 = vrot.lane.b32.xlu0 (%p1880_p4), %v6276_v50, %s4356_s16 }
 0x71e   : >> { %v3038_v40 = vsub.f32 %v3029_v9, %v3034_v27   ;;  %v3046_v13 = vsub.f32 %v3042_v37, %v3034_v27  }
 0x71f   : >> { %v3037_v8 = vsub.f32 %v3028_v39, %v3033_v5   ;;  %v3045_v52 = vsub.f32 %v3041_v36, %v3033_v5   ;;  %v3075_v40 = vld [vmem:[#allocation5 + $0x50] sm:$0xff] (%p1880_p4)  ;;  %3826 = vmatmul.mubr.msk.f32.vlgmr.msra.gmra.mrb[0].mxu0 (%p1880_p4), %vm488_vm0, %v3066_v35  ;;  %3838 = vmatmul.mubr.msk.f32.vlgmr.msra.gmra.mrb[0].mxu1 (%p1880_p4), %vm488_vm0, %v3074_v32  ;;  %v3077_v13 = vld [vmem:[#allocation5 + $0x60] sm:$0xff] (%p1880_p4) }
 0x720   : > { %v3067_v8 = vld [vmem:[#allocation5 + $0x10] sm:$0xff]  ;;  %3840 = vmatprep.mubr.msk.f32.mxu1 %vm488_vm0, %v3075_v40  ;;  %v3069_v52 = vld [vmem:[#allocation5 + $0x20] sm:$0xff] }
 0x721   : > { %3828 = vmatprep.mubr.msk.f32.mxu0 %vm488_vm0, %v3067_v8  ;;  %3306 = vrot.lane.b32.xlu0 %v6278_v34, %s4356_s16 }
 0x723   : > { %3829 = vmatmul.mubr.msk.f32.gmra.mrb[2].mxu0 %vm488_vm0, %v3068_v15  ;;  %3841 = vmatmul.mubr.msk.f32.gmra.mrb[2].mxu1 %vm488_vm0, %v3076_v21 }
 0x724   : > { %3831 = vmatprep.mubr.msk.f32.mxu0 %vm488_vm0, %v3069_v52  ;;  %3843 = vmatprep.mubr.msk.f32.mxu1 %vm488_vm0, %v3077_v13 }
 0x725   : > { %3310 = vrot.lane.b32.xlu0 %v6280_v33, %s4356_s16 }
 0x727   : > { %3832 = vmatmul.mubr.msk.f32.gmra.mrb[4].mxu0 %vm488_vm0, %v3070_v10  ;;  %3844 = vmatmul.mubr.msk.f32.gmra.mrb[4].mxu1 %vm488_vm0, %v3078_v38 }
 0x728   : > { %3834 = vmatprep.mubr.msk.f32.mxu0 %vm488_vm0, %v3071_v1  ;;  %3846 = vmatprep.mubr.msk.f32.mxu1 %vm488_vm0, %v3079_v19 }
 0x729   : > { %3314 = vrot.lane.b32.xlu0 %v6282_v0, %s4356_s16 }
 0x72b   : > { %3835 = vmatmul.mubr.msk.f32.gmra.mrb[6].mxu0 %vm488_vm0, %v3072_v18  ;;  %3847 = vmatmul.mubr.msk.f32.gmra.mrb[6].mxu1 %vm488_vm0, %v3080_v14 }
 0x72d   : > { %3318 = vrot.lane.b32.xlu0 %v6284_v56, %s4356_s16 }
 0x731   : > { %3322 = vrot.lane.b32.xlu0 %v6286_v2, %s4356_s16 }
 0x739   : > { %v3305_v16 = vpop.permute.xlu1 %3304 }
 0x73d   : > { %v3309_v29 = vpop.permute.xlu1 %3308 }
 0x741   : > { %v3313_v25 = vpop.permute.xlu1 %3312 }
 0x745   : > { %v3317_v58 = vpop.permute.xlu1 %3316 }
 0x749   : > { %v3321_v24 = vpop.permute.xlu1 %3320 }
 0x74d   : > { %v3325_v35 = vpop.permute.xlu1 %3324 }
 0x78a   : > { %v3297_v43 = vpop.permute.xlu0 %3296 }
 0x78f   : > { %v3303_v22 = vpop.permute.xlu0 %3302 }
 0x793   : > { %v3307_v47 = vpop.permute.xlu0 %3306 }
 0x797   : > { %v3311_v17 = vpop.permute.xlu0 %3310 }
 0x79b   : > { %v3315_v45 = vpop.permute.xlu0 %3314 }
 0x79f   : > { %v3319_v61 = vpop.permute.xlu0 %3318 }
 0x7a3   : > { %v3323_v32 = vpop.permute.xlu0 %3322 }
 0x7f2   : > { %v3827_v63 = vpop.f32.mrb[0].mxu0  ;;  %v3839_v11 = vpop.f32.mrb[0].mxu1 }
 0x7f3   : > { %v3343_v42 = vmul.f32 %v3827_v63, %v3297_v43  ;;  %v3351_v53 = vmul.f32 %v3839_v11, %v3313_v25  ;;  %v3199_v62 = vpop.f32.mrb[1].mxu0  ;;  %v3239_v55 = vpop.f32.mrb[1].mxu1 }
 0x7f4   : > { %v3342_v4 = vmul.f32 %v3295_v20, %v3199_v62  ;;  %v3350_v7 = vmul.f32 %v3311_v17, %v3239_v55 }
 0x7f5   : > { %3359 = vst.msk [vmem:[%s4460_s15 + $0x8] sm:$0xff] %vm488_vm0, %v3343_v42  ;;  %3367 = vst.msk [vmem:[%s4460_s15 + $0x48] sm:$0xff] %vm488_vm0, %v3351_v53 }
 0x7f6   : > { %3358 = vst.msk [vmem:[%s4460_s15] sm:$0xff] %vm488_vm0, %v3342_v4  ;;  %3366 = vst.msk [vmem:[%s4460_s15 + $0x40] sm:$0xff] %vm488_vm0, %v3350_v7  ;;  %v3830_v9 = vpop.f32.mrb[2].mxu0  ;;  %v3842_v27 = vpop.f32.mrb[2].mxu1 }
 0x7f7   : > { %v3345_v37 = vmul.f32 %v3830_v9, %v3301_v48  ;;  %v3353_v6 = vmul.f32 %v3842_v27, %v3317_v58  ;;  %v3209_v39 = vpop.f32.mrb[3].mxu0  ;;  %v3249_v5 = vpop.f32.mrb[3].mxu1 }
 0x7f8   : > { %v3344_v36 = vmul.f32 %v3299_v59, %v3209_v39  ;;  %v3352_v44 = vmul.f32 %v3315_v45, %v3249_v5 }
 0x7f9   : > { %3361 = vst.msk [vmem:[%s4460_s15 + $0x18] sm:$0xff] %vm488_vm0, %v3345_v37  ;;  %3369 = vst.msk [vmem:[%s4460_s15 + $0x58] sm:$0xff] %vm488_vm0, %v3353_v6 }
 0x7fa   : > { %3360 = vst.msk [vmem:[%s4460_s15 + $0x10] sm:$0xff] %vm488_vm0, %v3344_v36  ;;  %3368 = vst.msk [vmem:[%s4460_s15 + $0x50] sm:$0xff] %vm488_vm0, %v3352_v44  ;;  %v3833_v28 = vpop.f32.mrb[4].mxu0  ;;  %v3845_v49 = vpop.f32.mrb[4].mxu1 }
 0x7fb   : > { %v3347_v54 = vmul.f32 %v3833_v28, %v3305_v16  ;;  %v3355_v12 = vmul.f32 %v3845_v49, %v3321_v24  ;;  %v3219_v30 = vpop.f32.mrb[5].mxu0  ;;  %v3259_v23 = vpop.f32.mrb[5].mxu1 }
 0x7fc   : > { %v3346_v26 = vmul.f32 %v3303_v22, %v3219_v30  ;;  %v3354_v3 = vmul.f32 %v3319_v61, %v3259_v23 }
 0x7fd   : > { %3363 = vst.msk [vmem:[%s4460_s15 + $0x28] sm:$0xff] %vm488_vm0, %v3347_v54  ;;  %3371 = vst.msk [vmem:[%s4460_s15 + $0x68] sm:$0xff] %vm488_vm0, %v3355_v12 }
 0x7fe   : > { %3362 = vst.msk [vmem:[%s4460_s15 + $0x20] sm:$0xff] %vm488_vm0, %v3346_v26  ;;  %3370 = vst.msk [vmem:[%s4460_s15 + $0x60] sm:$0xff] %vm488_vm0, %v3354_v3  ;;  %v3836_v8 = vpop.f32.mrb[6].mxu0  ;;  %v3848_v40 = vpop.f32.mrb[6].mxu1 }
 0x7ff   : > { %v3349_v31 = vmul.f32 %v3836_v8, %v3309_v29  ;;  %v3357_v50 = vmul.f32 %v3848_v40, %v3325_v35  ;;  %v3229_v15 = vpop.f32.mrb[7].mxu0  ;;  %v3269_v21 = vpop.f32.mrb[7].mxu1 }
 0x800   : > { %v3348_v52 = vmul.f32 %v3307_v47, %v3229_v15  ;;  %v3356_v13 = vmul.f32 %v3323_v32, %v3269_v21 }
 0x801   : > { %3365 = vst.msk [vmem:[%s4460_s15 + $0x38] sm:$0xff] %vm488_vm0, %v3349_v31  ;;  %3373 = vst.msk [vmem:[%s4460_s15 + $0x78] sm:$0xff] %vm488_vm0, %v3357_v50 }
 0x802   : > { %3364 = vst.msk [vmem:[%s4460_s15 + $0x30] sm:$0xff] %vm488_vm0, %v3348_v52  ;;  %3372 = vst.msk [vmem:[%s4460_s15 + $0x70] sm:$0xff] %vm488_vm0, %v3356_v13 }
 0x803 PF: > { %s24_s29 = sadd.s32 1, %s4302_s29  }
 0x804   : > { %p21_p5 = scmp.ge.s32.totalorder %s24_s29, 4  }
 0x806   :  { %23 = sbr.rel (!%p21_p5) target bundleno = 1 (0x1), region = 129 }

</bundles_post_ra>
